<compile_context>
chip_gen: v7x
topology: tpu7x:2x2x1
jax: 0.10.0
libtpu: 0.0.40
codegen_flags: <defaults>
</compile_context>

<pallas_src>
import functools

import jax
import jax.numpy as jnp
import numpy as np
from jax.experimental import pallas as pl
from jax.experimental.pallas import tpu as pltpu

K = 7            # conv kernel size
PAD = K // 2     # padding = 3


def _spatial_attention_kernel(w_ref, m_ref, x_ref, o_ref, sum_ref, max_ref,
                              *, C, W):
    """Grid = (batch blocks, channel blocks); the channel axis is the reduction.

    w_ref   : SMEM (2*K*K,) f32      flattened conv weight (OIHW, O=1)
    m_ref   : VMEM (K*K, H*W) f32    boundary masks (1 inside image, 0 at pad)
    x_ref   : VMEM (Bt, Ct, H*W)     input block (lane-dense minor axis)
    o_ref   : VMEM (Bt, 1, H*W)      output block
    sum_ref : VMEM (Bt, H*W) f32     running channel sum
    max_ref : VMEM (Bt, H*W) f32     running channel max
    """
    c_idx = pl.program_id(1)
    n_c = pl.num_programs(1)

    x = x_ref[...].astype(jnp.float32)            # (Bt, Ct, HW)
    part_sum = jnp.sum(x, axis=1)                 # (Bt, HW)
    part_max = jnp.max(x, axis=1)                 # (Bt, HW)

    @pl.when(c_idx == 0)
    def _():
        sum_ref[...] = part_sum
        max_ref[...] = part_max

    @pl.when(c_idx > 0)
    def _():
        sum_ref[...] = sum_ref[...] + part_sum
        max_ref[...] = jnp.maximum(max_ref[...], part_max)

    @pl.when(c_idx == n_c - 1)
    def _():
        avg = sum_ref[...] * (1.0 / C)            # (Bt, HW) f32
        mx = max_ref[...]
        hw = avg.shape[-1]

        # 7x7 conv over the 2 descriptor channels: each tap = circular roll
        # along the flattened spatial (lane) axis + boundary mask.  Four
        # independent accumulators keep the 4 VALU slots fed.
        accs = [jnp.zeros_like(avg) for _ in range(4)]
        tap = 0
        for di in range(K):
            for dj in range(K):
                delta = (di - PAD) * W + (dj - PAD)
                shift = (-delta) % hw
                r_avg = pltpu.roll(avg, shift, axis=1) if shift else avg
                r_mx = pltpu.roll(mx, shift, axis=1) if shift else mx
                w_a = w_ref[di * K + dj]              # scalar (avg channel)
                w_m = w_ref[K * K + di * K + dj]      # scalar (max channel)
                mask = m_ref[di * K + dj]             # (HW,)
                accs[tap % 4] = accs[tap % 4] + mask * (w_a * r_avg + w_m * r_mx)
                tap += 1
        conv = (accs[0] + accs[1]) + (accs[2] + accs[3])

        o_ref[:, 0, :] = jax.nn.sigmoid(conv).astype(o_ref.dtype)


def _conv_boundary_masks(H, W):
    """(K*K, H*W) f32: mask[di*K+dj, p] = 1 iff tap (di, dj) at flattened
    position p stays inside the image (reproduces conv2d zero-padding=3)."""
    h = np.arange(H)[:, None]
    w = np.arange(W)[None, :]
    rows = []
    for di in range(K):
        for dj in range(K):
            hv = (h + di - PAD >= 0) & (h + di - PAD < H)
            wv = (w + dj - PAD >= 0) & (w + dj - PAD < W)
            rows.append((hv & wv).astype(np.float32).reshape(H * W))
    return jnp.asarray(np.stack(rows, axis=0))


def _choose_tiles(B, C, HW, itemsize):
    """Pick (batch_tile, channel_tile): move ~MiBs per grid step (amortize the
    ~0.35us/step overhead), keep blocks well under v7x's 64 MiB VMEM, and keep
    >= 2 steps on the parallel batch axis when B >= 2 (two TensorCores)."""
    target = 2 * 1024 * 1024
    ct = C
    if C * HW * itemsize > target:
        for d in range(C, 0, -1):
            # second-minor block dim must be a multiple of 8 (or the full dim)
            if C % d == 0 and d % 8 == 0 and d * HW * itemsize <= target:
                ct = d
                break
    bt = max(1, min(B, target // max(ct * HW * itemsize, 1)))
    if B >= 2:
        bt = min(bt, max(1, B // 2))
    while B % bt:
        bt -= 1
    return bt, ct


def spatial_attention(x, weight):
    """x: (B, C, H, W), weight: (1, 2, K, K) -> (B, 1, H, W)."""
    B, C, H, W = x.shape
    HW = H * W

    x_flat = x.reshape(B, C, HW)                       # contiguous: free
    w_flat = weight.reshape(-1).astype(jnp.float32)    # (2*K*K,)
    masks = _conv_boundary_masks(H, W)                 # (K*K, HW)

    bt, ct = _choose_tiles(B, C, HW, x.dtype.itemsize)
    grid = (B // bt, C // ct)

    kernel = functools.partial(_spatial_attention_kernel, C=C, W=W)

    out = pl.pallas_call(
        kernel,
        out_shape=jax.ShapeDtypeStruct((B, 1, HW), x.dtype),
        grid=grid,
        in_specs=[
            pl.BlockSpec(memory_space=pltpu.MemorySpace.SMEM),      # weights
            pl.BlockSpec((K * K, HW), lambda b, c: (0, 0)),         # masks
            pl.BlockSpec((bt, ct, HW), lambda b, c: (b, c, 0)),     # input
        ],
        out_specs=pl.BlockSpec((bt, 1, HW), lambda b, c: (b, 0, 0)),
        scratch_shapes=[pltpu.VMEM((bt, HW), jnp.float32),
                        pltpu.VMEM((bt, HW), jnp.float32)],
        compiler_params=pltpu.CompilerParams(
            dimension_semantics=("parallel", "arbitrary"),
            vmem_limit_bytes=32 * 1024 * 1024),
    )(w_flat, masks, x_flat)

    return out.reshape(B, 1, H, W)


def reference(x, weight):
    """Pure-JAX reference of the PyTorch forward pass."""
    avg = jnp.mean(x, axis=1, keepdims=True)
    mx = jnp.max(x, axis=1, keepdims=True)
    xc = jnp.concatenate([avg, mx], axis=1)
    out = jax.lax.conv_general_dilated(
        xc, weight, window_strides=(1, 1),
        padding=((PAD, PAD), (PAD, PAD)),
        dimension_numbers=("NCHW", "OIHW", "NCHW"))
    return jax.nn.sigmoid(out)


if __name__ == "__main__":
    B, C, H, W = 2, 4, 16, 16
    key = jax.random.PRNGKey(0)
    kx, kw = jax.random.split(key)

    x = jax.random.normal(kx, (B, C, H, W), dtype=jnp.float32)
    # Deterministic synthetic conv weight (Conv2d(2, 1, 7, bias=False) shape).
    weight = 0.1 * jax.random.normal(kw, (1, 2, K, K), dtype=jnp.float32)

    out = jax.block_until_ready(spatial_attention(x, weight))
    ref = jax.block_until_ready(reference(x, weight))

    assert out.shape == (B, 1, H, W)
    np.testing.assert_allclose(np.asarray(out), np.asarray(ref),
                               rtol=1e-4, atol=1e-5)
    print("KERNEL_OK")
</pallas_src>

<mosaic_0001>
module attributes {stable_mosaic.version = 11 : i64} {
  func.func @_spatial_attention_kernel(%arg0: i32, %arg1: i32, %arg2: memref<98xf32, #tpu.memory_space<smem>>, %arg3: memref<49x256xf32, #tpu.memory_space<vmem>>, %arg4: memref<1x4x256xf32, #tpu.memory_space<vmem>>, %arg5: memref<1x1x256xf32, #tpu.memory_space<vmem>>, %arg6: memref<1x256xf32, #tpu.memory_space<vmem>>, %arg7: memref<1x256xf32, #tpu.memory_space<vmem>>) attributes {dimension_semantics = [#tpu.dimension_semantics<parallel>, #tpu.dimension_semantics<arbitrary>], iteration_bounds = array<i64: 2, 1>, scalar_prefetch = 0 : i64, scratch_operands = 2 : i64, tpu.core_type = #tpu.core_type<tc>, window_params = [{transform_indices = @transform_0, window_bounds = array<i64: 98>}, {pipeline_mode = #tpu.pipeline_mode<synchronous>, transform_indices = @transform_1, window_bounds = array<i64: 49, 256>}, {transform_indices = @transform_2, window_bounds = array<i64: 1, 4, 256>}, {transform_indices = @transform_3, window_bounds = array<i64: 1, 1, 256>}]} {
    %c0 = arith.constant 0 : index
    %c0_0 = arith.constant 0 : index
    %c0_1 = arith.constant 0 : index
    %0 = vector.load %arg4[%c0, %c0_0, %c0_1] : memref<1x4x256xf32, #tpu.memory_space<vmem>>, vector<1x4x256xf32>
    %cst = arith.constant dense<0.000000e+00> : vector<1x256xf32>
    %1 = vector.multi_reduction <add>, %0, %cst [1] : vector<1x4x256xf32> to vector<1x256xf32>
    %cst_2 = arith.constant dense<0xFF800000> : vector<1x256xf32>
    %2 = vector.multi_reduction <maximumf>, %0, %cst_2 [1] : vector<1x4x256xf32> to vector<1x256xf32>
    %c0_i32 = arith.constant 0 : i32
    %3 = arith.cmpi eq, %arg1, %c0_i32 : i32
    %4 = arith.extui %3 : i1 to i32
    %c0_i32_3 = arith.constant 0 : i32
    %5 = arith.cmpi ne, %4, %c0_i32_3 : i32
    scf.if %5 {
      %c0_8 = arith.constant 0 : index
      %c0_9 = arith.constant 0 : index
      %12 = vector.load %arg6[%c0_8, %c0_9] : memref<1x256xf32, #tpu.memory_space<vmem>>, vector<1x256xf32>
      tpu.vector_store %arg6[%c0_8, %c0_9], %1 {strides = array<i32>} : memref<1x256xf32, #tpu.memory_space<vmem>>, vector<1x256xf32>,
      %c0_10 = arith.constant 0 : index
      %c0_11 = arith.constant 0 : index
      %13 = vector.load %arg7[%c0_10, %c0_11] : memref<1x256xf32, #tpu.memory_space<vmem>>, vector<1x256xf32>
      tpu.vector_store %arg7[%c0_10, %c0_11], %2 {strides = array<i32>} : memref<1x256xf32, #tpu.memory_space<vmem>>, vector<1x256xf32>,
    } else {
    }
    %c0_i32_4 = arith.constant 0 : i32
    %6 = arith.cmpi sgt, %arg1, %c0_i32_4 : i32
    %7 = arith.extui %6 : i1 to i32
    %c0_i32_5 = arith.constant 0 : i32
    %8 = arith.cmpi ne, %7, %c0_i32_5 : i32
    scf.if %8 {
      %c0_8 = arith.constant 0 : index
      %c0_9 = arith.constant 0 : index
      %12 = vector.load %arg6[%c0_8, %c0_9] : memref<1x256xf32, #tpu.memory_space<vmem>>, vector<1x256xf32>
      %13 = arith.addf %12, %1 : vector<1x256xf32>
      %c0_10 = arith.constant 0 : index
      %c0_11 = arith.constant 0 : index
      %14 = vector.load %arg6[%c0_10, %c0_11] : memref<1x256xf32, #tpu.memory_space<vmem>>, vector<1x256xf32>
      tpu.vector_store %arg6[%c0_10, %c0_11], %13 {strides = array<i32>} : memref<1x256xf32, #tpu.memory_space<vmem>>, vector<1x256xf32>,
      %c0_12 = arith.constant 0 : index
      %c0_13 = arith.constant 0 : index
      %15 = vector.load %arg7[%c0_12, %c0_13] : memref<1x256xf32, #tpu.memory_space<vmem>>, vector<1x256xf32>
      %16 = arith.maximumf %15, %2 : vector<1x256xf32>
      %c0_14 = arith.constant 0 : index
      %c0_15 = arith.constant 0 : index
      %17 = vector.load %arg7[%c0_14, %c0_15] : memref<1x256xf32, #tpu.memory_space<vmem>>, vector<1x256xf32>
      tpu.vector_store %arg7[%c0_14, %c0_15], %16 {strides = array<i32>} : memref<1x256xf32, #tpu.memory_space<vmem>>, vector<1x256xf32>,
    } else {
    }
    %c0_i32_6 = arith.constant 0 : i32
    %9 = arith.cmpi eq, %arg1, %c0_i32_6 : i32
    %10 = arith.extui %9 : i1 to i32
    %c0_i32_7 = arith.constant 0 : i32
    %11 = arith.cmpi ne, %10, %c0_i32_7 : i32
    scf.if %11 {
      %c0_8 = arith.constant 0 : index
      %c0_9 = arith.constant 0 : index
      %12 = vector.load %arg6[%c0_8, %c0_9] : memref<1x256xf32, #tpu.memory_space<vmem>>, vector<1x256xf32>
      %cst_10 = arith.constant 2.500000e-01 : f32
      %13 = vector.broadcast %cst_10 : f32 to vector<1x256xf32>
      %14 = arith.mulf %12, %13 : vector<1x256xf32>
      %c0_11 = arith.constant 0 : index
      %c0_12 = arith.constant 0 : index
      %15 = vector.load %arg7[%c0_11, %c0_12] : memref<1x256xf32, #tpu.memory_space<vmem>>, vector<1x256xf32>
      %cst_13 = arith.constant 0.000000e+00 : f32
      %16 = vector.broadcast %cst_13 : f32 to vector<1x256xf32>
      %cst_14 = arith.constant 0.000000e+00 : f32
      %17 = vector.broadcast %cst_14 : f32 to vector<1x256xf32>
      %cst_15 = arith.constant 0.000000e+00 : f32
      %18 = vector.broadcast %cst_15 : f32 to vector<1x256xf32>
      %cst_16 = arith.constant 0.000000e+00 : f32
      %19 = vector.broadcast %cst_16 : f32 to vector<1x256xf32>
      %c51_i32 = arith.constant 51 : i32
      %20 = tpu.dynamic_rotate %14 by %c51_i32 dim 1 : vector<1x256xf32>, i32 -> vector<1x256xf32>
      %c51_i32_17 = arith.constant 51 : i32
      %21 = tpu.dynamic_rotate %15 by %c51_i32_17 dim 1 : vector<1x256xf32>, i32 -> vector<1x256xf32>
      %c0_18 = arith.constant 0 : index
      %22 = memref.load %arg2[%c0_18] : memref<98xf32, #tpu.memory_space<smem>>
      %c49 = arith.constant 49 : index
      %23 = memref.load %arg2[%c49] : memref<98xf32, #tpu.memory_space<smem>>
      %c0_19 = arith.constant 0 : index
      %c0_20 = arith.constant 0 : index
      %24 = vector.load %arg3[%c0_19, %c0_20] : memref<49x256xf32, #tpu.memory_space<vmem>>, vector<1x256xf32>
      %25 = vector.shape_cast %24 : vector<1x256xf32> to vector<256xf32>
      %26 = vector.broadcast %22 : f32 to vector<1x256xf32>
      %27 = arith.mulf %26, %20 : vector<1x256xf32>
      %28 = vector.broadcast %23 : f32 to vector<1x256xf32>
      %29 = arith.mulf %28, %21 : vector<1x256xf32>
      %30 = arith.addf %27, %29 : vector<1x256xf32>
      %31 = vector.shape_cast %25 : vector<256xf32> to vector<1x256xf32>
      %32 = arith.mulf %31, %30 : vector<1x256xf32>
      %33 = arith.addf %16, %32 : vector<1x256xf32>
      %c50_i32 = arith.constant 50 : i32
      %34 = tpu.dynamic_rotate %14 by %c50_i32 dim 1 : vector<1x256xf32>, i32 -> vector<1x256xf32>
      %c50_i32_21 = arith.constant 50 : i32
      %35 = tpu.dynamic_rotate %15 by %c50_i32_21 dim 1 : vector<1x256xf32>, i32 -> vector<1x256xf32>
      %c1 = arith.constant 1 : index
      %36 = memref.load %arg2[%c1] : memref<98xf32, #tpu.memory_space<smem>>
      %c50 = arith.constant 50 : index
      %37 = memref.load %arg2[%c50] : memref<98xf32, #tpu.memory_space<smem>>
      %c1_22 = arith.constant 1 : index
      %c0_23 = arith.constant 0 : index
      %38 = vector.load %arg3[%c1_22, %c0_23] : memref<49x256xf32, #tpu.memory_space<vmem>>, vector<1x256xf32>
      %39 = vector.shape_cast %38 : vector<1x256xf32> to vector<256xf32>
      %40 = vector.broadcast %36 : f32 to vector<1x256xf32>
      %41 = arith.mulf %40, %34 : vector<1x256xf32>
      %42 = vector.broadcast %37 : f32 to vector<1x256xf32>
      %43 = arith.mulf %42, %35 : vector<1x256xf32>
      %44 = arith.addf %41, %43 : vector<1x256xf32>
      %45 = vector.shape_cast %39 : vector<256xf32> to vector<1x256xf32>
      %46 = arith.mulf %45, %44 : vector<1x256xf32>
      %47 = arith.addf %17, %46 : vector<1x256xf32>
      %c49_i32 = arith.constant 49 : i32
      %48 = tpu.dynamic_rotate %14 by %c49_i32 dim 1 : vector<1x256xf32>, i32 -> vector<1x256xf32>
      %c49_i32_24 = arith.constant 49 : i32
      %49 = tpu.dynamic_rotate %15 by %c49_i32_24 dim 1 : vector<1x256xf32>, i32 -> vector<1x256xf32>
      %c2 = arith.constant 2 : index
      %50 = memref.load %arg2[%c2] : memref<98xf32, #tpu.memory_space<smem>>
      %c51 = arith.constant 51 : index
      %51 = memref.load %arg2[%c51] : memref<98xf32, #tpu.memory_space<smem>>
      %c2_25 = arith.constant 2 : index
      %c0_26 = arith.constant 0 : index
      %52 = vector.load %arg3[%c2_25, %c0_26] : memref<49x256xf32, #tpu.memory_space<vmem>>, vector<1x256xf32>
      %53 = vector.shape_cast %52 : vector<1x256xf32> to vector<256xf32>
      %54 = vector.broadcast %50 : f32 to vector<1x256xf32>
      %55 = arith.mulf %54, %48 : vector<1x256xf32>
      %56 = vector.broadcast %51 : f32 to vector<1x256xf32>
      %57 = arith.mulf %56, %49 : vector<1x256xf32>
      %58 = arith.addf %55, %57 : vector<1x256xf32>
      %59 = vector.shape_cast %53 : vector<256xf32> to vector<1x256xf32>
      %60 = arith.mulf %59, %58 : vector<1x256xf32>
      %61 = arith.addf %18, %60 : vector<1x256xf32>
      %c48_i32 = arith.constant 48 : i32
      %62 = tpu.dynamic_rotate %14 by %c48_i32 dim 1 : vector<1x256xf32>, i32 -> vector<1x256xf32>
      %c48_i32_27 = arith.constant 48 : i32
      %63 = tpu.dynamic_rotate %15 by %c48_i32_27 dim 1 : vector<1x256xf32>, i32 -> vector<1x256xf32>
      %c3 = arith.constant 3 : index
      %64 = memref.load %arg2[%c3] : memref<98xf32, #tpu.memory_space<smem>>
      %c52 = arith.constant 52 : index
      %65 = memref.load %arg2[%c52] : memref<98xf32, #tpu.memory_space<smem>>
      %c3_28 = arith.constant 3 : index
      %c0_29 = arith.constant 0 : index
      %66 = vector.load %arg3[%c3_28, %c0_29] : memref<49x256xf32, #tpu.memory_space<vmem>>, vector<1x256xf32>
      %67 = vector.shape_cast %66 : vector<1x256xf32> to vector<256xf32>
      %68 = vector.broadcast %64 : f32 to vector<1x256xf32>
      %69 = arith.mulf %68, %62 : vector<1x256xf32>
      %70 = vector.broadcast %65 : f32 to vector<1x256xf32>
      %71 = arith.mulf %70, %63 : vector<1x256xf32>
      %72 = arith.addf %69, %71 : vector<1x256xf32>
      %73 = vector.shape_cast %67 : vector<256xf32> to vector<1x256xf32>
      %74 = arith.mulf %73, %72 : vector<1x256xf32>
      %75 = arith.addf %19, %74 : vector<1x256xf32>
      %c47_i32 = arith.constant 47 : i32
      %76 = tpu.dynamic_rotate %14 by %c47_i32 dim 1 : vector<1x256xf32>, i32 -> vector<1x256xf32>
      %c47_i32_30 = arith.constant 47 : i32
      %77 = tpu.dynamic_rotate %15 by %c47_i32_30 dim 1 : vector<1x256xf32>, i32 -> vector<1x256xf32>
      %c4 = arith.constant 4 : index
      %78 = memref.load %arg2[%c4] : memref<98xf32, #tpu.memory_space<smem>>
      %c53 = arith.constant 53 : index
      %79 = memref.load %arg2[%c53] : memref<98xf32, #tpu.memory_space<smem>>
      %c4_31 = arith.constant 4 : index
      %c0_32 = arith.constant 0 : index
      %80 = vector.load %arg3[%c4_31, %c0_32] : memref<49x256xf32, #tpu.memory_space<vmem>>, vector<1x256xf32>
      %81 = vector.shape_cast %80 : vector<1x256xf32> to vector<256xf32>
      %82 = vector.broadcast %78 : f32 to vector<1x256xf32>
      %83 = arith.mulf %82, %76 : vector<1x256xf32>
      %84 = vector.broadcast %79 : f32 to vector<1x256xf32>
      %85 = arith.mulf %84, %77 : vector<1x256xf32>
      %86 = arith.addf %83, %85 : vector<1x256xf32>
      %87 = vector.shape_cast %81 : vector<256xf32> to vector<1x256xf32>
      %88 = arith.mulf %87, %86 : vector<1x256xf32>
      %89 = arith.addf %33, %88 : vector<1x256xf32>
      %c46_i32 = arith.constant 46 : i32
      %90 = tpu.dynamic_rotate %14 by %c46_i32 dim 1 : vector<1x256xf32>, i32 -> vector<1x256xf32>
      %c46_i32_33 = arith.constant 46 : i32
      %91 = tpu.dynamic_rotate %15 by %c46_i32_33 dim 1 : vector<1x256xf32>, i32 -> vector<1x256xf32>
      %c5 = arith.constant 5 : index
      %92 = memref.load %arg2[%c5] : memref<98xf32, #tpu.memory_space<smem>>
      %c54 = arith.constant 54 : index
      %93 = memref.load %arg2[%c54] : memref<98xf32, #tpu.memory_space<smem>>
      %c5_34 = arith.constant 5 : index
      %c0_35 = arith.constant 0 : index
      %94 = vector.load %arg3[%c5_34, %c0_35] : memref<49x256xf32, #tpu.memory_space<vmem>>, vector<1x256xf32>
      %95 = vector.shape_cast %94 : vector<1x256xf32> to vector<256xf32>
      %96 = vector.broadcast %92 : f32 to vector<1x256xf32>
      %97 = arith.mulf %96, %90 : vector<1x256xf32>
      %98 = vector.broadcast %93 : f32 to vector<1x256xf32>
      %99 = arith.mulf %98, %91 : vector<1x256xf32>
      %100 = arith.addf %97, %99 : vector<1x256xf32>
      %101 = vector.shape_cast %95 : vector<256xf32> to vector<1x256xf32>
      %102 = arith.mulf %101, %100 : vector<1x256xf32>
      %103 = arith.addf %47, %102 : vector<1x256xf32>
      %c45_i32 = arith.constant 45 : i32
      %104 = tpu.dynamic_rotate %14 by %c45_i32 dim 1 : vector<1x256xf32>, i32 -> vector<1x256xf32>
      %c45_i32_36 = arith.constant 45 : i32
      %105 = tpu.dynamic_rotate %15 by %c45_i32_36 dim 1 : vector<1x256xf32>, i32 -> vector<1x256xf32>
      %c6 = arith.constant 6 : index
      %106 = memref.load %arg2[%c6] : memref<98xf32, #tpu.memory_space<smem>>
      %c55 = arith.constant 55 : index
      %107 = memref.load %arg2[%c55] : memref<98xf32, #tpu.memory_space<smem>>
      %c6_37 = arith.constant 6 : index
      %c0_38 = arith.constant 0 : index
      %108 = vector.load %arg3[%c6_37, %c0_38] : memref<49x256xf32, #tpu.memory_space<vmem>>, vector<1x256xf32>
      %109 = vector.shape_cast %108 : vector<1x256xf32> to vector<256xf32>
      %110 = vector.broadcast %106 : f32 to vector<1x256xf32>
      %111 = arith.mulf %110, %104 : vector<1x256xf32>
      %112 = vector.broadcast %107 : f32 to vector<1x256xf32>
      %113 = arith.mulf %112, %105 : vector<1x256xf32>
      %114 = arith.addf %111, %113 : vector<1x256xf32>
      %115 = vector.shape_cast %109 : vector<256xf32> to vector<1x256xf32>
      %116 = arith.mulf %115, %114 : vector<1x256xf32>
      %117 = arith.addf %61, %116 : vector<1x256xf32>
      %c35_i32 = arith.constant 35 : i32
      %118 = tpu.dynamic_rotate %14 by %c35_i32 dim 1 : vector<1x256xf32>, i32 -> vector<1x256xf32>
      %c35_i32_39 = arith.constant 35 : i32
      %119 = tpu.dynamic_rotate %15 by %c35_i32_39 dim 1 : vector<1x256xf32>, i32 -> vector<1x256xf32>
      %c7 = arith.constant 7 : index
      %120 = memref.load %arg2[%c7] : memref<98xf32, #tpu.memory_space<smem>>
      %c56 = arith.constant 56 : index
      %121 = memref.load %arg2[%c56] : memref<98xf32, #tpu.memory_space<smem>>
      %c7_40 = arith.constant 7 : index
      %c0_41 = arith.constant 0 : index
      %122 = vector.load %arg3[%c7_40, %c0_41] : memref<49x256xf32, #tpu.memory_space<vmem>>, vector<1x256xf32>
      %123 = vector.shape_cast %122 : vector<1x256xf32> to vector<256xf32>
      %124 = vector.broadcast %120 : f32 to vector<1x256xf32>
      %125 = arith.mulf %124, %118 : vector<1x256xf32>
      %126 = vector.broadcast %121 : f32 to vector<1x256xf32>
      %127 = arith.mulf %126, %119 : vector<1x256xf32>
      %128 = arith.addf %125, %127 : vector<1x256xf32>
      %129 = vector.shape_cast %123 : vector<256xf32> to vector<1x256xf32>
      %130 = arith.mulf %129, %128 : vector<1x256xf32>
      %131 = arith.addf %75, %130 : vector<1x256xf32>
      %c34_i32 = arith.constant 34 : i32
      %132 = tpu.dynamic_rotate %14 by %c34_i32 dim 1 : vector<1x256xf32>, i32 -> vector<1x256xf32>
      %c34_i32_42 = arith.constant 34 : i32
      %133 = tpu.dynamic_rotate %15 by %c34_i32_42 dim 1 : vector<1x256xf32>, i32 -> vector<1x256xf32>
      %c8 = arith.constant 8 : index
      %134 = memref.load %arg2[%c8] : memref<98xf32, #tpu.memory_space<smem>>
      %c57 = arith.constant 57 : index
      %135 = memref.load %arg2[%c57] : memref<98xf32, #tpu.memory_space<smem>>
      %c8_43 = arith.constant 8 : index
      %c0_44 = arith.constant 0 : index
      %136 = vector.load %arg3[%c8_43, %c0_44] : memref<49x256xf32, #tpu.memory_space<vmem>>, vector<1x256xf32>
      %137 = vector.shape_cast %136 : vector<1x256xf32> to vector<256xf32>
      %138 = vector.broadcast %134 : f32 to vector<1x256xf32>
      %139 = arith.mulf %138, %132 : vector<1x256xf32>
      %140 = vector.broadcast %135 : f32 to vector<1x256xf32>
      %141 = arith.mulf %140, %133 : vector<1x256xf32>
      %142 = arith.addf %139, %141 : vector<1x256xf32>
      %143 = vector.shape_cast %137 : vector<256xf32> to vector<1x256xf32>
      %144 = arith.mulf %143, %142 : vector<1x256xf32>
      %145 = arith.addf %89, %144 : vector<1x256xf32>
      %c33_i32 = arith.constant 33 : i32
      %146 = tpu.dynamic_rotate %14 by %c33_i32 dim 1 : vector<1x256xf32>, i32 -> vector<1x256xf32>
      %c33_i32_45 = arith.constant 33 : i32
      %147 = tpu.dynamic_rotate %15 by %c33_i32_45 dim 1 : vector<1x256xf32>, i32 -> vector<1x256xf32>
      %c9 = arith.constant 9 : index
      %148 = memref.load %arg2[%c9] : memref<98xf32, #tpu.memory_space<smem>>
      %c58 = arith.constant 58 : index
      %149 = memref.load %arg2[%c58] : memref<98xf32, #tpu.memory_space<smem>>
      %c9_46 = arith.constant 9 : index
      %c0_47 = arith.constant 0 : index
      %150 = vector.load %arg3[%c9_46, %c0_47] : memref<49x256xf32, #tpu.memory_space<vmem>>, vector<1x256xf32>
      %151 = vector.shape_cast %150 : vector<1x256xf32> to vector<256xf32>
      %152 = vector.broadcast %148 : f32 to vector<1x256xf32>
      %153 = arith.mulf %152, %146 : vector<1x256xf32>
      %154 = vector.broadcast %149 : f32 to vector<1x256xf32>
      %155 = arith.mulf %154, %147 : vector<1x256xf32>
      %156 = arith.addf %153, %155 : vector<1x256xf32>
      %157 = vector.shape_cast %151 : vector<256xf32> to vector<1x256xf32>
      %158 = arith.mulf %157, %156 : vector<1x256xf32>
      %159 = arith.addf %103, %158 : vector<1x256xf32>
      %c32_i32 = arith.constant 32 : i32
      %160 = tpu.dynamic_rotate %14 by %c32_i32 dim 1 : vector<1x256xf32>, i32 -> vector<1x256xf32>
      %c32_i32_48 = arith.constant 32 : i32
      %161 = tpu.dynamic_rotate %15 by %c32_i32_48 dim 1 : vector<1x256xf32>, i32 -> vector<1x256xf32>
      %c10 = arith.constant 10 : index
      %162 = memref.load %arg2[%c10] : memref<98xf32, #tpu.memory_space<smem>>
      %c59 = arith.constant 59 : index
      %163 = memref.load %arg2[%c59] : memref<98xf32, #tpu.memory_space<smem>>
      %c10_49 = arith.constant 10 : index
      %c0_50 = arith.constant 0 : index
      %164 = vector.load %arg3[%c10_49, %c0_50] : memref<49x256xf32, #tpu.memory_space<vmem>>, vector<1x256xf32>
      %165 = vector.shape_cast %164 : vector<1x256xf32> to vector<256xf32>
      %166 = vector.broadcast %162 : f32 to vector<1x256xf32>
      %167 = arith.mulf %166, %160 : vector<1x256xf32>
      %168 = vector.broadcast %163 : f32 to vector<1x256xf32>
      %169 = arith.mulf %168, %161 : vector<1x256xf32>
      %170 = arith.addf %167, %169 : vector<1x256xf32>
      %171 = vector.shape_cast %165 : vector<256xf32> to vector<1x256xf32>
      %172 = arith.mulf %171, %170 : vector<1x256xf32>
      %173 = arith.addf %117, %172 : vector<1x256xf32>
      %c31_i32 = arith.constant 31 : i32
      %174 = tpu.dynamic_rotate %14 by %c31_i32 dim 1 : vector<1x256xf32>, i32 -> vector<1x256xf32>
      %c31_i32_51 = arith.constant 31 : i32
      %175 = tpu.dynamic_rotate %15 by %c31_i32_51 dim 1 : vector<1x256xf32>, i32 -> vector<1x256xf32>
      %c11 = arith.constant 11 : index
      %176 = memref.load %arg2[%c11] : memref<98xf32, #tpu.memory_space<smem>>
      %c60 = arith.constant 60 : index
      %177 = memref.load %arg2[%c60] : memref<98xf32, #tpu.memory_space<smem>>
      %c11_52 = arith.constant 11 : index
      %c0_53 = arith.constant 0 : index
      %178 = vector.load %arg3[%c11_52, %c0_53] : memref<49x256xf32, #tpu.memory_space<vmem>>, vector<1x256xf32>
      %179 = vector.shape_cast %178 : vector<1x256xf32> to vector<256xf32>
      %180 = vector.broadcast %176 : f32 to vector<1x256xf32>
      %181 = arith.mulf %180, %174 : vector<1x256xf32>
      %182 = vector.broadcast %177 : f32 to vector<1x256xf32>
      %183 = arith.mulf %182, %175 : vector<1x256xf32>
      %184 = arith.addf %181, %183 : vector<1x256xf32>
      %185 = vector.shape_cast %179 : vector<256xf32> to vector<1x256xf32>
      %186 = arith.mulf %185, %184 : vector<1x256xf32>
      %187 = arith.addf %131, %186 : vector<1x256xf32>
      %c30_i32 = arith.constant 30 : i32
      %188 = tpu.dynamic_rotate %14 by %c30_i32 dim 1 : vector<1x256xf32>, i32 -> vector<1x256xf32>
      %c30_i32_54 = arith.constant 30 : i32
      %189 = tpu.dynamic_rotate %15 by %c30_i32_54 dim 1 : vector<1x256xf32>, i32 -> vector<1x256xf32>
      %c12 = arith.constant 12 : index
      %190 = memref.load %arg2[%c12] : memref<98xf32, #tpu.memory_space<smem>>
      %c61 = arith.constant 61 : index
      %191 = memref.load %arg2[%c61] : memref<98xf32, #tpu.memory_space<smem>>
      %c12_55 = arith.constant 12 : index
      %c0_56 = arith.constant 0 : index
      %192 = vector.load %arg3[%c12_55, %c0_56] : memref<49x256xf32, #tpu.memory_space<vmem>>, vector<1x256xf32>
      %193 = vector.shape_cast %192 : vector<1x256xf32> to vector<256xf32>
      %194 = vector.broadcast %190 : f32 to vector<1x256xf32>
      %195 = arith.mulf %194, %188 : vector<1x256xf32>
      %196 = vector.broadcast %191 : f32 to vector<1x256xf32>
      %197 = arith.mulf %196, %189 : vector<1x256xf32>
      %198 = arith.addf %195, %197 : vector<1x256xf32>
      %199 = vector.shape_cast %193 : vector<256xf32> to vector<1x256xf32>
      %200 = arith.mulf %199, %198 : vector<1x256xf32>
      %201 = arith.addf %145, %200 : vector<1x256xf32>
      %c29_i32 = arith.constant 29 : i32
      %202 = tpu.dynamic_rotate %14 by %c29_i32 dim 1 : vector<1x256xf32>, i32 -> vector<1x256xf32>
      %c29_i32_57 = arith.constant 29 : i32
      %203 = tpu.dynamic_rotate %15 by %c29_i32_57 dim 1 : vector<1x256xf32>, i32 -> vector<1x256xf32>
      %c13 = arith.constant 13 : index
      %204 = memref.load %arg2[%c13] : memref<98xf32, #tpu.memory_space<smem>>
      %c62 = arith.constant 62 : index
      %205 = memref.load %arg2[%c62] : memref<98xf32, #tpu.memory_space<smem>>
      %c13_58 = arith.constant 13 : index
      %c0_59 = arith.constant 0 : index
      %206 = vector.load %arg3[%c13_58, %c0_59] : memref<49x256xf32, #tpu.memory_space<vmem>>, vector<1x256xf32>
      %207 = vector.shape_cast %206 : vector<1x256xf32> to vector<256xf32>
      %208 = vector.broadcast %204 : f32 to vector<1x256xf32>
      %209 = arith.mulf %208, %202 : vector<1x256xf32>
      %210 = vector.broadcast %205 : f32 to vector<1x256xf32>
      %211 = arith.mulf %210, %203 : vector<1x256xf32>
      %212 = arith.addf %209, %211 : vector<1x256xf32>
      %213 = vector.shape_cast %207 : vector<256xf32> to vector<1x256xf32>
      %214 = arith.mulf %213, %212 : vector<1x256xf32>
      %215 = arith.addf %159, %214 : vector<1x256xf32>
      %c19_i32 = arith.constant 19 : i32
      %216 = tpu.dynamic_rotate %14 by %c19_i32 dim 1 : vector<1x256xf32>, i32 -> vector<1x256xf32>
      %c19_i32_60 = arith.constant 19 : i32
      %217 = tpu.dynamic_rotate %15 by %c19_i32_60 dim 1 : vector<1x256xf32>, i32 -> vector<1x256xf32>
      %c14 = arith.constant 14 : index
      %218 = memref.load %arg2[%c14] : memref<98xf32, #tpu.memory_space<smem>>
      %c63 = arith.constant 63 : index
      %219 = memref.load %arg2[%c63] : memref<98xf32, #tpu.memory_space<smem>>
      %c14_61 = arith.constant 14 : index
      %c0_62 = arith.constant 0 : index
      %220 = vector.load %arg3[%c14_61, %c0_62] : memref<49x256xf32, #tpu.memory_space<vmem>>, vector<1x256xf32>
      %221 = vector.shape_cast %220 : vector<1x256xf32> to vector<256xf32>
      %222 = vector.broadcast %218 : f32 to vector<1x256xf32>
      %223 = arith.mulf %222, %216 : vector<1x256xf32>
      %224 = vector.broadcast %219 : f32 to vector<1x256xf32>
      %225 = arith.mulf %224, %217 : vector<1x256xf32>
      %226 = arith.addf %223, %225 : vector<1x256xf32>
      %227 = vector.shape_cast %221 : vector<256xf32> to vector<1x256xf32>
      %228 = arith.mulf %227, %226 : vector<1x256xf32>
      %229 = arith.addf %173, %228 : vector<1x256xf32>
      %c18_i32 = arith.constant 18 : i32
      %230 = tpu.dynamic_rotate %14 by %c18_i32 dim 1 : vector<1x256xf32>, i32 -> vector<1x256xf32>
      %c18_i32_63 = arith.constant 18 : i32
      %231 = tpu.dynamic_rotate %15 by %c18_i32_63 dim 1 : vector<1x256xf32>, i32 -> vector<1x256xf32>
      %c15 = arith.constant 15 : index
      %232 = memref.load %arg2[%c15] : memref<98xf32, #tpu.memory_space<smem>>
      %c64 = arith.constant 64 : index
      %233 = memref.load %arg2[%c64] : memref<98xf32, #tpu.memory_space<smem>>
      %c15_64 = arith.constant 15 : index
      %c0_65 = arith.constant 0 : index
      %234 = vector.load %arg3[%c15_64, %c0_65] : memref<49x256xf32, #tpu.memory_space<vmem>>, vector<1x256xf32>
      %235 = vector.shape_cast %234 : vector<1x256xf32> to vector<256xf32>
      %236 = vector.broadcast %232 : f32 to vector<1x256xf32>
      %237 = arith.mulf %236, %230 : vector<1x256xf32>
      %238 = vector.broadcast %233 : f32 to vector<1x256xf32>
      %239 = arith.mulf %238, %231 : vector<1x256xf32>
      %240 = arith.addf %237, %239 : vector<1x256xf32>
      %241 = vector.shape_cast %235 : vector<256xf32> to vector<1x256xf32>
      %242 = arith.mulf %241, %240 : vector<1x256xf32>
      %243 = arith.addf %187, %242 : vector<1x256xf32>
      %c17_i32 = arith.constant 17 : i32
      %244 = tpu.dynamic_rotate %14 by %c17_i32 dim 1 : vector<1x256xf32>, i32 -> vector<1x256xf32>
      %c17_i32_66 = arith.constant 17 : i32
      %245 = tpu.dynamic_rotate %15 by %c17_i32_66 dim 1 : vector<1x256xf32>, i32 -> vector<1x256xf32>
      %c16 = arith.constant 16 : index
      %246 = memref.load %arg2[%c16] : memref<98xf32, #tpu.memory_space<smem>>
      %c65 = arith.constant 65 : index
      %247 = memref.load %arg2[%c65] : memref<98xf32, #tpu.memory_space<smem>>
      %c16_67 = arith.constant 16 : index
      %c0_68 = arith.constant 0 : index
      %248 = vector.load %arg3[%c16_67, %c0_68] : memref<49x256xf32, #tpu.memory_space<vmem>>, vector<1x256xf32>
      %249 = vector.shape_cast %248 : vector<1x256xf32> to vector<256xf32>
      %250 = vector.broadcast %246 : f32 to vector<1x256xf32>
      %251 = arith.mulf %250, %244 : vector<1x256xf32>
      %252 = vector.broadcast %247 : f32 to vector<1x256xf32>
      %253 = arith.mulf %252, %245 : vector<1x256xf32>
      %254 = arith.addf %251, %253 : vector<1x256xf32>
      %255 = vector.shape_cast %249 : vector<256xf32> to vector<1x256xf32>
      %256 = arith.mulf %255, %254 : vector<1x256xf32>
      %257 = arith.addf %201, %256 : vector<1x256xf32>
      %c16_i32 = arith.constant 16 : i32
      %258 = tpu.dynamic_rotate %14 by %c16_i32 dim 1 : vector<1x256xf32>, i32 -> vector<1x256xf32>
      %c16_i32_69 = arith.constant 16 : i32
      %259 = tpu.dynamic_rotate %15 by %c16_i32_69 dim 1 : vector<1x256xf32>, i32 -> vector<1x256xf32>
      %c17 = arith.constant 17 : index
      %260 = memref.load %arg2[%c17] : memref<98xf32, #tpu.memory_space<smem>>
      %c66 = arith.constant 66 : index
      %261 = memref.load %arg2[%c66] : memref<98xf32, #tpu.memory_space<smem>>
      %c17_70 = arith.constant 17 : index
      %c0_71 = arith.constant 0 : index
      %262 = vector.load %arg3[%c17_70, %c0_71] : memref<49x256xf32, #tpu.memory_space<vmem>>, vector<1x256xf32>
      %263 = vector.shape_cast %262 : vector<1x256xf32> to vector<256xf32>
      %264 = vector.broadcast %260 : f32 to vector<1x256xf32>
      %265 = arith.mulf %264, %258 : vector<1x256xf32>
      %266 = vector.broadcast %261 : f32 to vector<1x256xf32>
      %267 = arith.mulf %266, %259 : vector<1x256xf32>
      %268 = arith.addf %265, %267 : vector<1x256xf32>
      %269 = vector.shape_cast %263 : vector<256xf32> to vector<1x256xf32>
      %270 = arith.mulf %269, %268 : vector<1x256xf32>
      %271 = arith.addf %215, %270 : vector<1x256xf32>
      %c15_i32 = arith.constant 15 : i32
      %272 = tpu.dynamic_rotate %14 by %c15_i32 dim 1 : vector<1x256xf32>, i32 -> vector<1x256xf32>
      %c15_i32_72 = arith.constant 15 : i32
      %273 = tpu.dynamic_rotate %15 by %c15_i32_72 dim 1 : vector<1x256xf32>, i32 -> vector<1x256xf32>
      %c18 = arith.constant 18 : index
      %274 = memref.load %arg2[%c18] : memref<98xf32, #tpu.memory_space<smem>>
      %c67 = arith.constant 67 : index
      %275 = memref.load %arg2[%c67] : memref<98xf32, #tpu.memory_space<smem>>
      %c18_73 = arith.constant 18 : index
      %c0_74 = arith.constant 0 : index
      %276 = vector.load %arg3[%c18_73, %c0_74] : memref<49x256xf32, #tpu.memory_space<vmem>>, vector<1x256xf32>
      %277 = vector.shape_cast %276 : vector<1x256xf32> to vector<256xf32>
      %278 = vector.broadcast %274 : f32 to vector<1x256xf32>
      %279 = arith.mulf %278, %272 : vector<1x256xf32>
      %280 = vector.broadcast %275 : f32 to vector<1x256xf32>
      %281 = arith.mulf %280, %273 : vector<1x256xf32>
      %282 = arith.addf %279, %281 : vector<1x256xf32>
      %283 = vector.shape_cast %277 : vector<256xf32> to vector<1x256xf32>
      %284 = arith.mulf %283, %282 : vector<1x256xf32>
      %285 = arith.addf %229, %284 : vector<1x256xf32>
      %c14_i32 = arith.constant 14 : i32
      %286 = tpu.dynamic_rotate %14 by %c14_i32 dim 1 : vector<1x256xf32>, i32 -> vector<1x256xf32>
      %c14_i32_75 = arith.constant 14 : i32
      %287 = tpu.dynamic_rotate %15 by %c14_i32_75 dim 1 : vector<1x256xf32>, i32 -> vector<1x256xf32>
      %c19 = arith.constant 19 : index
      %288 = memref.load %arg2[%c19] : memref<98xf32, #tpu.memory_space<smem>>
      %c68 = arith.constant 68 : index
      %289 = memref.load %arg2[%c68] : memref<98xf32, #tpu.memory_space<smem>>
      %c19_76 = arith.constant 19 : index
      %c0_77 = arith.constant 0 : index
      %290 = vector.load %arg3[%c19_76, %c0_77] : memref<49x256xf32, #tpu.memory_space<vmem>>, vector<1x256xf32>
      %291 = vector.shape_cast %290 : vector<1x256xf32> to vector<256xf32>
      %292 = vector.broadcast %288 : f32 to vector<1x256xf32>
      %293 = arith.mulf %292, %286 : vector<1x256xf32>
      %294 = vector.broadcast %289 : f32 to vector<1x256xf32>
      %295 = arith.mulf %294, %287 : vector<1x256xf32>
      %296 = arith.addf %293, %295 : vector<1x256xf32>
      %297 = vector.shape_cast %291 : vector<256xf32> to vector<1x256xf32>
      %298 = arith.mulf %297, %296 : vector<1x256xf32>
      %299 = arith.addf %243, %298 : vector<1x256xf32>
      %c13_i32 = arith.constant 13 : i32
      %300 = tpu.dynamic_rotate %14 by %c13_i32 dim 1 : vector<1x256xf32>, i32 -> vector<1x256xf32>
      %c13_i32_78 = arith.constant 13 : i32
      %301 = tpu.dynamic_rotate %15 by %c13_i32_78 dim 1 : vector<1x256xf32>, i32 -> vector<1x256xf32>
      %c20 = arith.constant 20 : index
      %302 = memref.load %arg2[%c20] : memref<98xf32, #tpu.memory_space<smem>>
      %c69 = arith.constant 69 : index
      %303 = memref.load %arg2[%c69] : memref<98xf32, #tpu.memory_space<smem>>
      %c20_79 = arith.constant 20 : index
      %c0_80 = arith.constant 0 : index
      %304 = vector.load %arg3[%c20_79, %c0_80] : memref<49x256xf32, #tpu.memory_space<vmem>>, vector<1x256xf32>
      %305 = vector.shape_cast %304 : vector<1x256xf32> to vector<256xf32>
      %306 = vector.broadcast %302 : f32 to vector<1x256xf32>
      %307 = arith.mulf %306, %300 : vector<1x256xf32>
      %308 = vector.broadcast %303 : f32 to vector<1x256xf32>
      %309 = arith.mulf %308, %301 : vector<1x256xf32>
      %310 = arith.addf %307, %309 : vector<1x256xf32>
      %311 = vector.shape_cast %305 : vector<256xf32> to vector<1x256xf32>
      %312 = arith.mulf %311, %310 : vector<1x256xf32>
      %313 = arith.addf %257, %312 : vector<1x256xf32>
      %c3_i32 = arith.constant 3 : i32
      %314 = tpu.dynamic_rotate %14 by %c3_i32 dim 1 : vector<1x256xf32>, i32 -> vector<1x256xf32>
      %c3_i32_81 = arith.constant 3 : i32
      %315 = tpu.dynamic_rotate %15 by %c3_i32_81 dim 1 : vector<1x256xf32>, i32 -> vector<1x256xf32>
      %c21 = arith.constant 21 : index
      %316 = memref.load %arg2[%c21] : memref<98xf32, #tpu.memory_space<smem>>
      %c70 = arith.constant 70 : index
      %317 = memref.load %arg2[%c70] : memref<98xf32, #tpu.memory_space<smem>>
      %c21_82 = arith.constant 21 : index
      %c0_83 = arith.constant 0 : index
      %318 = vector.load %arg3[%c21_82, %c0_83] : memref<49x256xf32, #tpu.memory_space<vmem>>, vector<1x256xf32>
      %319 = vector.shape_cast %318 : vector<1x256xf32> to vector<256xf32>
      %320 = vector.broadcast %316 : f32 to vector<1x256xf32>
      %321 = arith.mulf %320, %314 : vector<1x256xf32>
      %322 = vector.broadcast %317 : f32 to vector<1x256xf32>
      %323 = arith.mulf %322, %315 : vector<1x256xf32>
      %324 = arith.addf %321, %323 : vector<1x256xf32>
      %325 = vector.shape_cast %319 : vector<256xf32> to vector<1x256xf32>
      %326 = arith.mulf %325, %324 : vector<1x256xf32>
      %327 = arith.addf %271, %326 : vector<1x256xf32>
      %c2_i32 = arith.constant 2 : i32
      %328 = tpu.dynamic_rotate %14 by %c2_i32 dim 1 : vector<1x256xf32>, i32 -> vector<1x256xf32>
      %c2_i32_84 = arith.constant 2 : i32
      %329 = tpu.dynamic_rotate %15 by %c2_i32_84 dim 1 : vector<1x256xf32>, i32 -> vector<1x256xf32>
      %c22 = arith.constant 22 : index
      %330 = memref.load %arg2[%c22] : memref<98xf32, #tpu.memory_space<smem>>
      %c71 = arith.constant 71 : index
      %331 = memref.load %arg2[%c71] : memref<98xf32, #tpu.memory_space<smem>>
      %c22_85 = arith.constant 22 : index
      %c0_86 = arith.constant 0 : index
      %332 = vector.load %arg3[%c22_85, %c0_86] : memref<49x256xf32, #tpu.memory_space<vmem>>, vector<1x256xf32>
      %333 = vector.shape_cast %332 : vector<1x256xf32> to vector<256xf32>
      %334 = vector.broadcast %330 : f32 to vector<1x256xf32>
      %335 = arith.mulf %334, %328 : vector<1x256xf32>
      %336 = vector.broadcast %331 : f32 to vector<1x256xf32>
      %337 = arith.mulf %336, %329 : vector<1x256xf32>
      %338 = arith.addf %335, %337 : vector<1x256xf32>
      %339 = vector.shape_cast %333 : vector<256xf32> to vector<1x256xf32>
      %340 = arith.mulf %339, %338 : vector<1x256xf32>
      %341 = arith.addf %285, %340 : vector<1x256xf32>
      %c1_i32 = arith.constant 1 : i32
      %342 = tpu.dynamic_rotate %14 by %c1_i32 dim 1 : vector<1x256xf32>, i32 -> vector<1x256xf32>
      %c1_i32_87 = arith.constant 1 : i32
      %343 = tpu.dynamic_rotate %15 by %c1_i32_87 dim 1 : vector<1x256xf32>, i32 -> vector<1x256xf32>
      %c23 = arith.constant 23 : index
      %344 = memref.load %arg2[%c23] : memref<98xf32, #tpu.memory_space<smem>>
      %c72 = arith.constant 72 : index
      %345 = memref.load %arg2[%c72] : memref<98xf32, #tpu.memory_space<smem>>
      %c23_88 = arith.constant 23 : index
      %c0_89 = arith.constant 0 : index
      %346 = vector.load %arg3[%c23_88, %c0_89] : memref<49x256xf32, #tpu.memory_space<vmem>>, vector<1x256xf32>
      %347 = vector.shape_cast %346 : vector<1x256xf32> to vector<256xf32>
      %348 = vector.broadcast %344 : f32 to vector<1x256xf32>
      %349 = arith.mulf %348, %342 : vector<1x256xf32>
      %350 = vector.broadcast %345 : f32 to vector<1x256xf32>
      %351 = arith.mulf %350, %343 : vector<1x256xf32>
      %352 = arith.addf %349, %351 : vector<1x256xf32>
      %353 = vector.shape_cast %347 : vector<256xf32> to vector<1x256xf32>
      %354 = arith.mulf %353, %352 : vector<1x256xf32>
      %355 = arith.addf %299, %354 : vector<1x256xf32>
      %c24 = arith.constant 24 : index
      %356 = memref.load %arg2[%c24] : memref<98xf32, #tpu.memory_space<smem>>
      %c73 = arith.constant 73 : index
      %357 = memref.load %arg2[%c73] : memref<98xf32, #tpu.memory_space<smem>>
      %c24_90 = arith.constant 24 : index
      %c0_91 = arith.constant 0 : index
      %358 = vector.load %arg3[%c24_90, %c0_91] : memref<49x256xf32, #tpu.memory_space<vmem>>, vector<1x256xf32>
      %359 = vector.shape_cast %358 : vector<1x256xf32> to vector<256xf32>
      %360 = vector.broadcast %356 : f32 to vector<1x256xf32>
      %361 = arith.mulf %360, %14 : vector<1x256xf32>
      %362 = vector.broadcast %357 : f32 to vector<1x256xf32>
      %363 = arith.mulf %362, %15 : vector<1x256xf32>
      %364 = arith.addf %361, %363 : vector<1x256xf32>
      %365 = vector.shape_cast %359 : vector<256xf32> to vector<1x256xf32>
      %366 = arith.mulf %365, %364 : vector<1x256xf32>
      %367 = arith.addf %313, %366 : vector<1x256xf32>
      %c255_i32 = arith.constant 255 : i32
      %368 = tpu.dynamic_rotate %14 by %c255_i32 dim 1 : vector<1x256xf32>, i32 -> vector<1x256xf32>
      %c255_i32_92 = arith.constant 255 : i32
      %369 = tpu.dynamic_rotate %15 by %c255_i32_92 dim 1 : vector<1x256xf32>, i32 -> vector<1x256xf32>
      %c25 = arith.constant 25 : index
      %370 = memref.load %arg2[%c25] : memref<98xf32, #tpu.memory_space<smem>>
      %c74 = arith.constant 74 : index
      %371 = memref.load %arg2[%c74] : memref<98xf32, #tpu.memory_space<smem>>
      %c25_93 = arith.constant 25 : index
      %c0_94 = arith.constant 0 : index
      %372 = vector.load %arg3[%c25_93, %c0_94] : memref<49x256xf32, #tpu.memory_space<vmem>>, vector<1x256xf32>
      %373 = vector.shape_cast %372 : vector<1x256xf32> to vector<256xf32>
      %374 = vector.broadcast %370 : f32 to vector<1x256xf32>
      %375 = arith.mulf %374, %368 : vector<1x256xf32>
      %376 = vector.broadcast %371 : f32 to vector<1x256xf32>
      %377 = arith.mulf %376, %369 : vector<1x256xf32>
      %378 = arith.addf %375, %377 : vector<1x256xf32>
      %379 = vector.shape_cast %373 : vector<256xf32> to vector<1x256xf32>
      %380 = arith.mulf %379, %378 : vector<1x256xf32>
      %381 = arith.addf %327, %380 : vector<1x256xf32>
      %c254_i32 = arith.constant 254 : i32
      %382 = tpu.dynamic_rotate %14 by %c254_i32 dim 1 : vector<1x256xf32>, i32 -> vector<1x256xf32>
      %c254_i32_95 = arith.constant 254 : i32
      %383 = tpu.dynamic_rotate %15 by %c254_i32_95 dim 1 : vector<1x256xf32>, i32 -> vector<1x256xf32>
      %c26 = arith.constant 26 : index
      %384 = memref.load %arg2[%c26] : memref<98xf32, #tpu.memory_space<smem>>
      %c75 = arith.constant 75 : index
      %385 = memref.load %arg2[%c75] : memref<98xf32, #tpu.memory_space<smem>>
      %c26_96 = arith.constant 26 : index
      %c0_97 = arith.constant 0 : index
      %386 = vector.load %arg3[%c26_96, %c0_97] : memref<49x256xf32, #tpu.memory_space<vmem>>, vector<1x256xf32>
      %387 = vector.shape_cast %386 : vector<1x256xf32> to vector<256xf32>
      %388 = vector.broadcast %384 : f32 to vector<1x256xf32>
      %389 = arith.mulf %388, %382 : vector<1x256xf32>
      %390 = vector.broadcast %385 : f32 to vector<1x256xf32>
      %391 = arith.mulf %390, %383 : vector<1x256xf32>
      %392 = arith.addf %389, %391 : vector<1x256xf32>
      %393 = vector.shape_cast %387 : vector<256xf32> to vector<1x256xf32>
      %394 = arith.mulf %393, %392 : vector<1x256xf32>
      %395 = arith.addf %341, %394 : vector<1x256xf32>
      %c253_i32 = arith.constant 253 : i32
      %396 = tpu.dynamic_rotate %14 by %c253_i32 dim 1 : vector<1x256xf32>, i32 -> vector<1x256xf32>
      %c253_i32_98 = arith.constant 253 : i32
      %397 = tpu.dynamic_rotate %15 by %c253_i32_98 dim 1 : vector<1x256xf32>, i32 -> vector<1x256xf32>
      %c27 = arith.constant 27 : index
      %398 = memref.load %arg2[%c27] : memref<98xf32, #tpu.memory_space<smem>>
      %c76 = arith.constant 76 : index
      %399 = memref.load %arg2[%c76] : memref<98xf32, #tpu.memory_space<smem>>
      %c27_99 = arith.constant 27 : index
      %c0_100 = arith.constant 0 : index
      %400 = vector.load %arg3[%c27_99, %c0_100] : memref<49x256xf32, #tpu.memory_space<vmem>>, vector<1x256xf32>
      %401 = vector.shape_cast %400 : vector<1x256xf32> to vector<256xf32>
      %402 = vector.broadcast %398 : f32 to vector<1x256xf32>
      %403 = arith.mulf %402, %396 : vector<1x256xf32>
      %404 = vector.broadcast %399 : f32 to vector<1x256xf32>
      %405 = arith.mulf %404, %397 : vector<1x256xf32>
      %406 = arith.addf %403, %405 : vector<1x256xf32>
      %407 = vector.shape_cast %401 : vector<256xf32> to vector<1x256xf32>
      %408 = arith.mulf %407, %406 : vector<1x256xf32>
      %409 = arith.addf %355, %408 : vector<1x256xf32>
      %c243_i32 = arith.constant 243 : i32
      %410 = tpu.dynamic_rotate %14 by %c243_i32 dim 1 : vector<1x256xf32>, i32 -> vector<1x256xf32>
      %c243_i32_101 = arith.constant 243 : i32
      %411 = tpu.dynamic_rotate %15 by %c243_i32_101 dim 1 : vector<1x256xf32>, i32 -> vector<1x256xf32>
      %c28 = arith.constant 28 : index
      %412 = memref.load %arg2[%c28] : memref<98xf32, #tpu.memory_space<smem>>
      %c77 = arith.constant 77 : index
      %413 = memref.load %arg2[%c77] : memref<98xf32, #tpu.memory_space<smem>>
      %c28_102 = arith.constant 28 : index
      %c0_103 = arith.constant 0 : index
      %414 = vector.load %arg3[%c28_102, %c0_103] : memref<49x256xf32, #tpu.memory_space<vmem>>, vector<1x256xf32>
      %415 = vector.shape_cast %414 : vector<1x256xf32> to vector<256xf32>
      %416 = vector.broadcast %412 : f32 to vector<1x256xf32>
      %417 = arith.mulf %416, %410 : vector<1x256xf32>
      %418 = vector.broadcast %413 : f32 to vector<1x256xf32>
      %419 = arith.mulf %418, %411 : vector<1x256xf32>
      %420 = arith.addf %417, %419 : vector<1x256xf32>
      %421 = vector.shape_cast %415 : vector<256xf32> to vector<1x256xf32>
      %422 = arith.mulf %421, %420 : vector<1x256xf32>
      %423 = arith.addf %367, %422 : vector<1x256xf32>
      %c242_i32 = arith.constant 242 : i32
      %424 = tpu.dynamic_rotate %14 by %c242_i32 dim 1 : vector<1x256xf32>, i32 -> vector<1x256xf32>
      %c242_i32_104 = arith.constant 242 : i32
      %425 = tpu.dynamic_rotate %15 by %c242_i32_104 dim 1 : vector<1x256xf32>, i32 -> vector<1x256xf32>
      %c29 = arith.constant 29 : index
      %426 = memref.load %arg2[%c29] : memref<98xf32, #tpu.memory_space<smem>>
      %c78 = arith.constant 78 : index
      %427 = memref.load %arg2[%c78] : memref<98xf32, #tpu.memory_space<smem>>
      %c29_105 = arith.constant 29 : index
      %c0_106 = arith.constant 0 : index
      %428 = vector.load %arg3[%c29_105, %c0_106] : memref<49x256xf32, #tpu.memory_space<vmem>>, vector<1x256xf32>
      %429 = vector.shape_cast %428 : vector<1x256xf32> to vector<256xf32>
      %430 = vector.broadcast %426 : f32 to vector<1x256xf32>
      %431 = arith.mulf %430, %424 : vector<1x256xf32>
      %432 = vector.broadcast %427 : f32 to vector<1x256xf32>
      %433 = arith.mulf %432, %425 : vector<1x256xf32>
      %434 = arith.addf %431, %433 : vector<1x256xf32>
      %435 = vector.shape_cast %429 : vector<256xf32> to vector<1x256xf32>
      %436 = arith.mulf %435, %434 : vector<1x256xf32>
      %437 = arith.addf %381, %436 : vector<1x256xf32>
      %c241_i32 = arith.constant 241 : i32
      %438 = tpu.dynamic_rotate %14 by %c241_i32 dim 1 : vector<1x256xf32>, i32 -> vector<1x256xf32>
      %c241_i32_107 = arith.constant 241 : i32
      %439 = tpu.dynamic_rotate %15 by %c241_i32_107 dim 1 : vector<1x256xf32>, i32 -> vector<1x256xf32>
      %c30 = arith.constant 30 : index
      %440 = memref.load %arg2[%c30] : memref<98xf32, #tpu.memory_space<smem>>
      %c79 = arith.constant 79 : index
      %441 = memref.load %arg2[%c79] : memref<98xf32, #tpu.memory_space<smem>>
      %c30_108 = arith.constant 30 : index
      %c0_109 = arith.constant 0 : index
      %442 = vector.load %arg3[%c30_108, %c0_109] : memref<49x256xf32, #tpu.memory_space<vmem>>, vector<1x256xf32>
      %443 = vector.shape_cast %442 : vector<1x256xf32> to vector<256xf32>
      %444 = vector.broadcast %440 : f32 to vector<1x256xf32>
      %445 = arith.mulf %444, %438 : vector<1x256xf32>
      %446 = vector.broadcast %441 : f32 to vector<1x256xf32>
      %447 = arith.mulf %446, %439 : vector<1x256xf32>
      %448 = arith.addf %445, %447 : vector<1x256xf32>
      %449 = vector.shape_cast %443 : vector<256xf32> to vector<1x256xf32>
      %450 = arith.mulf %449, %448 : vector<1x256xf32>
      %451 = arith.addf %395, %450 : vector<1x256xf32>
      %c240_i32 = arith.constant 240 : i32
      %452 = tpu.dynamic_rotate %14 by %c240_i32 dim 1 : vector<1x256xf32>, i32 -> vector<1x256xf32>
      %c240_i32_110 = arith.constant 240 : i32
      %453 = tpu.dynamic_rotate %15 by %c240_i32_110 dim 1 : vector<1x256xf32>, i32 -> vector<1x256xf32>
      %c31 = arith.constant 31 : index
      %454 = memref.load %arg2[%c31] : memref<98xf32, #tpu.memory_space<smem>>
      %c80 = arith.constant 80 : index
      %455 = memref.load %arg2[%c80] : memref<98xf32, #tpu.memory_space<smem>>
      %c31_111 = arith.constant 31 : index
      %c0_112 = arith.constant 0 : index
      %456 = vector.load %arg3[%c31_111, %c0_112] : memref<49x256xf32, #tpu.memory_space<vmem>>, vector<1x256xf32>
      %457 = vector.shape_cast %456 : vector<1x256xf32> to vector<256xf32>
      %458 = vector.broadcast %454 : f32 to vector<1x256xf32>
      %459 = arith.mulf %458, %452 : vector<1x256xf32>
      %460 = vector.broadcast %455 : f32 to vector<1x256xf32>
      %461 = arith.mulf %460, %453 : vector<1x256xf32>
      %462 = arith.addf %459, %461 : vector<1x256xf32>
      %463 = vector.shape_cast %457 : vector<256xf32> to vector<1x256xf32>
      %464 = arith.mulf %463, %462 : vector<1x256xf32>
      %465 = arith.addf %409, %464 : vector<1x256xf32>
      %c239_i32 = arith.constant 239 : i32
      %466 = tpu.dynamic_rotate %14 by %c239_i32 dim 1 : vector<1x256xf32>, i32 -> vector<1x256xf32>
      %c239_i32_113 = arith.constant 239 : i32
      %467 = tpu.dynamic_rotate %15 by %c239_i32_113 dim 1 : vector<1x256xf32>, i32 -> vector<1x256xf32>
      %c32 = arith.constant 32 : index
      %468 = memref.load %arg2[%c32] : memref<98xf32, #tpu.memory_space<smem>>
      %c81 = arith.constant 81 : index
      %469 = memref.load %arg2[%c81] : memref<98xf32, #tpu.memory_space<smem>>
      %c32_114 = arith.constant 32 : index
      %c0_115 = arith.constant 0 : index
      %470 = vector.load %arg3[%c32_114, %c0_115] : memref<49x256xf32, #tpu.memory_space<vmem>>, vector<1x256xf32>
      %471 = vector.shape_cast %470 : vector<1x256xf32> to vector<256xf32>
      %472 = vector.broadcast %468 : f32 to vector<1x256xf32>
      %473 = arith.mulf %472, %466 : vector<1x256xf32>
      %474 = vector.broadcast %469 : f32 to vector<1x256xf32>
      %475 = arith.mulf %474, %467 : vector<1x256xf32>
      %476 = arith.addf %473, %475 : vector<1x256xf32>
      %477 = vector.shape_cast %471 : vector<256xf32> to vector<1x256xf32>
      %478 = arith.mulf %477, %476 : vector<1x256xf32>
      %479 = arith.addf %423, %478 : vector<1x256xf32>
      %c238_i32 = arith.constant 238 : i32
      %480 = tpu.dynamic_rotate %14 by %c238_i32 dim 1 : vector<1x256xf32>, i32 -> vector<1x256xf32>
      %c238_i32_116 = arith.constant 238 : i32
      %481 = tpu.dynamic_rotate %15 by %c238_i32_116 dim 1 : vector<1x256xf32>, i32 -> vector<1x256xf32>
      %c33 = arith.constant 33 : index
      %482 = memref.load %arg2[%c33] : memref<98xf32, #tpu.memory_space<smem>>
      %c82 = arith.constant 82 : index
      %483 = memref.load %arg2[%c82] : memref<98xf32, #tpu.memory_space<smem>>
      %c33_117 = arith.constant 33 : index
      %c0_118 = arith.constant 0 : index
      %484 = vector.load %arg3[%c33_117, %c0_118] : memref<49x256xf32, #tpu.memory_space<vmem>>, vector<1x256xf32>
      %485 = vector.shape_cast %484 : vector<1x256xf32> to vector<256xf32>
      %486 = vector.broadcast %482 : f32 to vector<1x256xf32>
      %487 = arith.mulf %486, %480 : vector<1x256xf32>
      %488 = vector.broadcast %483 : f32 to vector<1x256xf32>
      %489 = arith.mulf %488, %481 : vector<1x256xf32>
      %490 = arith.addf %487, %489 : vector<1x256xf32>
      %491 = vector.shape_cast %485 : vector<256xf32> to vector<1x256xf32>
      %492 = arith.mulf %491, %490 : vector<1x256xf32>
      %493 = arith.addf %437, %492 : vector<1x256xf32>
      %c237_i32 = arith.constant 237 : i32
      %494 = tpu.dynamic_rotate %14 by %c237_i32 dim 1 : vector<1x256xf32>, i32 -> vector<1x256xf32>
      %c237_i32_119 = arith.constant 237 : i32
      %495 = tpu.dynamic_rotate %15 by %c237_i32_119 dim 1 : vector<1x256xf32>, i32 -> vector<1x256xf32>
      %c34 = arith.constant 34 : index
      %496 = memref.load %arg2[%c34] : memref<98xf32, #tpu.memory_space<smem>>
      %c83 = arith.constant 83 : index
      %497 = memref.load %arg2[%c83] : memref<98xf32, #tpu.memory_space<smem>>
      %c34_120 = arith.constant 34 : index
      %c0_121 = arith.constant 0 : index
      %498 = vector.load %arg3[%c34_120, %c0_121] : memref<49x256xf32, #tpu.memory_space<vmem>>, vector<1x256xf32>
      %499 = vector.shape_cast %498 : vector<1x256xf32> to vector<256xf32>
      %500 = vector.broadcast %496 : f32 to vector<1x256xf32>
      %501 = arith.mulf %500, %494 : vector<1x256xf32>
      %502 = vector.broadcast %497 : f32 to vector<1x256xf32>
      %503 = arith.mulf %502, %495 : vector<1x256xf32>
      %504 = arith.addf %501, %503 : vector<1x256xf32>
      %505 = vector.shape_cast %499 : vector<256xf32> to vector<1x256xf32>
      %506 = arith.mulf %505, %504 : vector<1x256xf32>
      %507 = arith.addf %451, %506 : vector<1x256xf32>
      %c227_i32 = arith.constant 227 : i32
      %508 = tpu.dynamic_rotate %14 by %c227_i32 dim 1 : vector<1x256xf32>, i32 -> vector<1x256xf32>
      %c227_i32_122 = arith.constant 227 : i32
      %509 = tpu.dynamic_rotate %15 by %c227_i32_122 dim 1 : vector<1x256xf32>, i32 -> vector<1x256xf32>
      %c35 = arith.constant 35 : index
      %510 = memref.load %arg2[%c35] : memref<98xf32, #tpu.memory_space<smem>>
      %c84 = arith.constant 84 : index
      %511 = memref.load %arg2[%c84] : memref<98xf32, #tpu.memory_space<smem>>
      %c35_123 = arith.constant 35 : index
      %c0_124 = arith.constant 0 : index
      %512 = vector.load %arg3[%c35_123, %c0_124] : memref<49x256xf32, #tpu.memory_space<vmem>>, vector<1x256xf32>
      %513 = vector.shape_cast %512 : vector<1x256xf32> to vector<256xf32>
      %514 = vector.broadcast %510 : f32 to vector<1x256xf32>
      %515 = arith.mulf %514, %508 : vector<1x256xf32>
      %516 = vector.broadcast %511 : f32 to vector<1x256xf32>
      %517 = arith.mulf %516, %509 : vector<1x256xf32>
      %518 = arith.addf %515, %517 : vector<1x256xf32>
      %519 = vector.shape_cast %513 : vector<256xf32> to vector<1x256xf32>
      %520 = arith.mulf %519, %518 : vector<1x256xf32>
      %521 = arith.addf %465, %520 : vector<1x256xf32>
      %c226_i32 = arith.constant 226 : i32
      %522 = tpu.dynamic_rotate %14 by %c226_i32 dim 1 : vector<1x256xf32>, i32 -> vector<1x256xf32>
      %c226_i32_125 = arith.constant 226 : i32
      %523 = tpu.dynamic_rotate %15 by %c226_i32_125 dim 1 : vector<1x256xf32>, i32 -> vector<1x256xf32>
      %c36 = arith.constant 36 : index
      %524 = memref.load %arg2[%c36] : memref<98xf32, #tpu.memory_space<smem>>
      %c85 = arith.constant 85 : index
      %525 = memref.load %arg2[%c85] : memref<98xf32, #tpu.memory_space<smem>>
      %c36_126 = arith.constant 36 : index
      %c0_127 = arith.constant 0 : index
      %526 = vector.load %arg3[%c36_126, %c0_127] : memref<49x256xf32, #tpu.memory_space<vmem>>, vector<1x256xf32>
      %527 = vector.shape_cast %526 : vector<1x256xf32> to vector<256xf32>
      %528 = vector.broadcast %524 : f32 to vector<1x256xf32>
      %529 = arith.mulf %528, %522 : vector<1x256xf32>
      %530 = vector.broadcast %525 : f32 to vector<1x256xf32>
      %531 = arith.mulf %530, %523 : vector<1x256xf32>
      %532 = arith.addf %529, %531 : vector<1x256xf32>
      %533 = vector.shape_cast %527 : vector<256xf32> to vector<1x256xf32>
      %534 = arith.mulf %533, %532 : vector<1x256xf32>
      %535 = arith.addf %479, %534 : vector<1x256xf32>
      %c225_i32 = arith.constant 225 : i32
      %536 = tpu.dynamic_rotate %14 by %c225_i32 dim 1 : vector<1x256xf32>, i32 -> vector<1x256xf32>
      %c225_i32_128 = arith.constant 225 : i32
      %537 = tpu.dynamic_rotate %15 by %c225_i32_128 dim 1 : vector<1x256xf32>, i32 -> vector<1x256xf32>
      %c37 = arith.constant 37 : index
      %538 = memref.load %arg2[%c37] : memref<98xf32, #tpu.memory_space<smem>>
      %c86 = arith.constant 86 : index
      %539 = memref.load %arg2[%c86] : memref<98xf32, #tpu.memory_space<smem>>
      %c37_129 = arith.constant 37 : index
      %c0_130 = arith.constant 0 : index
      %540 = vector.load %arg3[%c37_129, %c0_130] : memref<49x256xf32, #tpu.memory_space<vmem>>, vector<1x256xf32>
      %541 = vector.shape_cast %540 : vector<1x256xf32> to vector<256xf32>
      %542 = vector.broadcast %538 : f32 to vector<1x256xf32>
      %543 = arith.mulf %542, %536 : vector<1x256xf32>
      %544 = vector.broadcast %539 : f32 to vector<1x256xf32>
      %545 = arith.mulf %544, %537 : vector<1x256xf32>
      %546 = arith.addf %543, %545 : vector<1x256xf32>
      %547 = vector.shape_cast %541 : vector<256xf32> to vector<1x256xf32>
      %548 = arith.mulf %547, %546 : vector<1x256xf32>
      %549 = arith.addf %493, %548 : vector<1x256xf32>
      %c224_i32 = arith.constant 224 : i32
      %550 = tpu.dynamic_rotate %14 by %c224_i32 dim 1 : vector<1x256xf32>, i32 -> vector<1x256xf32>
      %c224_i32_131 = arith.constant 224 : i32
      %551 = tpu.dynamic_rotate %15 by %c224_i32_131 dim 1 : vector<1x256xf32>, i32 -> vector<1x256xf32>
      %c38 = arith.constant 38 : index
      %552 = memref.load %arg2[%c38] : memref<98xf32, #tpu.memory_space<smem>>
      %c87 = arith.constant 87 : index
      %553 = memref.load %arg2[%c87] : memref<98xf32, #tpu.memory_space<smem>>
      %c38_132 = arith.constant 38 : index
      %c0_133 = arith.constant 0 : index
      %554 = vector.load %arg3[%c38_132, %c0_133] : memref<49x256xf32, #tpu.memory_space<vmem>>, vector<1x256xf32>
      %555 = vector.shape_cast %554 : vector<1x256xf32> to vector<256xf32>
      %556 = vector.broadcast %552 : f32 to vector<1x256xf32>
      %557 = arith.mulf %556, %550 : vector<1x256xf32>
      %558 = vector.broadcast %553 : f32 to vector<1x256xf32>
      %559 = arith.mulf %558, %551 : vector<1x256xf32>
      %560 = arith.addf %557, %559 : vector<1x256xf32>
      %561 = vector.shape_cast %555 : vector<256xf32> to vector<1x256xf32>
      %562 = arith.mulf %561, %560 : vector<1x256xf32>
      %563 = arith.addf %507, %562 : vector<1x256xf32>
      %c223_i32 = arith.constant 223 : i32
      %564 = tpu.dynamic_rotate %14 by %c223_i32 dim 1 : vector<1x256xf32>, i32 -> vector<1x256xf32>
      %c223_i32_134 = arith.constant 223 : i32
      %565 = tpu.dynamic_rotate %15 by %c223_i32_134 dim 1 : vector<1x256xf32>, i32 -> vector<1x256xf32>
      %c39 = arith.constant 39 : index
      %566 = memref.load %arg2[%c39] : memref<98xf32, #tpu.memory_space<smem>>
      %c88 = arith.constant 88 : index
      %567 = memref.load %arg2[%c88] : memref<98xf32, #tpu.memory_space<smem>>
      %c39_135 = arith.constant 39 : index
      %c0_136 = arith.constant 0 : index
      %568 = vector.load %arg3[%c39_135, %c0_136] : memref<49x256xf32, #tpu.memory_space<vmem>>, vector<1x256xf32>
      %569 = vector.shape_cast %568 : vector<1x256xf32> to vector<256xf32>
      %570 = vector.broadcast %566 : f32 to vector<1x256xf32>
      %571 = arith.mulf %570, %564 : vector<1x256xf32>
      %572 = vector.broadcast %567 : f32 to vector<1x256xf32>
      %573 = arith.mulf %572, %565 : vector<1x256xf32>
      %574 = arith.addf %571, %573 : vector<1x256xf32>
      %575 = vector.shape_cast %569 : vector<256xf32> to vector<1x256xf32>
      %576 = arith.mulf %575, %574 : vector<1x256xf32>
      %577 = arith.addf %521, %576 : vector<1x256xf32>
      %c222_i32 = arith.constant 222 : i32
      %578 = tpu.dynamic_rotate %14 by %c222_i32 dim 1 : vector<1x256xf32>, i32 -> vector<1x256xf32>
      %c222_i32_137 = arith.constant 222 : i32
      %579 = tpu.dynamic_rotate %15 by %c222_i32_137 dim 1 : vector<1x256xf32>, i32 -> vector<1x256xf32>
      %c40 = arith.constant 40 : index
      %580 = memref.load %arg2[%c40] : memref<98xf32, #tpu.memory_space<smem>>
      %c89 = arith.constant 89 : index
      %581 = memref.load %arg2[%c89] : memref<98xf32, #tpu.memory_space<smem>>
      %c40_138 = arith.constant 40 : index
      %c0_139 = arith.constant 0 : index
      %582 = vector.load %arg3[%c40_138, %c0_139] : memref<49x256xf32, #tpu.memory_space<vmem>>, vector<1x256xf32>
      %583 = vector.shape_cast %582 : vector<1x256xf32> to vector<256xf32>
      %584 = vector.broadcast %580 : f32 to vector<1x256xf32>
      %585 = arith.mulf %584, %578 : vector<1x256xf32>
      %586 = vector.broadcast %581 : f32 to vector<1x256xf32>
      %587 = arith.mulf %586, %579 : vector<1x256xf32>
      %588 = arith.addf %585, %587 : vector<1x256xf32>
      %589 = vector.shape_cast %583 : vector<256xf32> to vector<1x256xf32>
      %590 = arith.mulf %589, %588 : vector<1x256xf32>
      %591 = arith.addf %535, %590 : vector<1x256xf32>
      %c221_i32 = arith.constant 221 : i32
      %592 = tpu.dynamic_rotate %14 by %c221_i32 dim 1 : vector<1x256xf32>, i32 -> vector<1x256xf32>
      %c221_i32_140 = arith.constant 221 : i32
      %593 = tpu.dynamic_rotate %15 by %c221_i32_140 dim 1 : vector<1x256xf32>, i32 -> vector<1x256xf32>
      %c41 = arith.constant 41 : index
      %594 = memref.load %arg2[%c41] : memref<98xf32, #tpu.memory_space<smem>>
      %c90 = arith.constant 90 : index
      %595 = memref.load %arg2[%c90] : memref<98xf32, #tpu.memory_space<smem>>
      %c41_141 = arith.constant 41 : index
      %c0_142 = arith.constant 0 : index
      %596 = vector.load %arg3[%c41_141, %c0_142] : memref<49x256xf32, #tpu.memory_space<vmem>>, vector<1x256xf32>
      %597 = vector.shape_cast %596 : vector<1x256xf32> to vector<256xf32>
      %598 = vector.broadcast %594 : f32 to vector<1x256xf32>
      %599 = arith.mulf %598, %592 : vector<1x256xf32>
      %600 = vector.broadcast %595 : f32 to vector<1x256xf32>
      %601 = arith.mulf %600, %593 : vector<1x256xf32>
      %602 = arith.addf %599, %601 : vector<1x256xf32>
      %603 = vector.shape_cast %597 : vector<256xf32> to vector<1x256xf32>
      %604 = arith.mulf %603, %602 : vector<1x256xf32>
      %605 = arith.addf %549, %604 : vector<1x256xf32>
      %c211_i32 = arith.constant 211 : i32
      %606 = tpu.dynamic_rotate %14 by %c211_i32 dim 1 : vector<1x256xf32>, i32 -> vector<1x256xf32>
      %c211_i32_143 = arith.constant 211 : i32
      %607 = tpu.dynamic_rotate %15 by %c211_i32_143 dim 1 : vector<1x256xf32>, i32 -> vector<1x256xf32>
      %c42 = arith.constant 42 : index
      %608 = memref.load %arg2[%c42] : memref<98xf32, #tpu.memory_space<smem>>
      %c91 = arith.constant 91 : index
      %609 = memref.load %arg2[%c91] : memref<98xf32, #tpu.memory_space<smem>>
      %c42_144 = arith.constant 42 : index
      %c0_145 = arith.constant 0 : index
      %610 = vector.load %arg3[%c42_144, %c0_145] : memref<49x256xf32, #tpu.memory_space<vmem>>, vector<1x256xf32>
      %611 = vector.shape_cast %610 : vector<1x256xf32> to vector<256xf32>
      %612 = vector.broadcast %608 : f32 to vector<1x256xf32>
      %613 = arith.mulf %612, %606 : vector<1x256xf32>
      %614 = vector.broadcast %609 : f32 to vector<1x256xf32>
      %615 = arith.mulf %614, %607 : vector<1x256xf32>
      %616 = arith.addf %613, %615 : vector<1x256xf32>
      %617 = vector.shape_cast %611 : vector<256xf32> to vector<1x256xf32>
      %618 = arith.mulf %617, %616 : vector<1x256xf32>
      %619 = arith.addf %563, %618 : vector<1x256xf32>
      %c210_i32 = arith.constant 210 : i32
      %620 = tpu.dynamic_rotate %14 by %c210_i32 dim 1 : vector<1x256xf32>, i32 -> vector<1x256xf32>
      %c210_i32_146 = arith.constant 210 : i32
      %621 = tpu.dynamic_rotate %15 by %c210_i32_146 dim 1 : vector<1x256xf32>, i32 -> vector<1x256xf32>
      %c43 = arith.constant 43 : index
      %622 = memref.load %arg2[%c43] : memref<98xf32, #tpu.memory_space<smem>>
      %c92 = arith.constant 92 : index
      %623 = memref.load %arg2[%c92] : memref<98xf32, #tpu.memory_space<smem>>
      %c43_147 = arith.constant 43 : index
      %c0_148 = arith.constant 0 : index
      %624 = vector.load %arg3[%c43_147, %c0_148] : memref<49x256xf32, #tpu.memory_space<vmem>>, vector<1x256xf32>
      %625 = vector.shape_cast %624 : vector<1x256xf32> to vector<256xf32>
      %626 = vector.broadcast %622 : f32 to vector<1x256xf32>
      %627 = arith.mulf %626, %620 : vector<1x256xf32>
      %628 = vector.broadcast %623 : f32 to vector<1x256xf32>
      %629 = arith.mulf %628, %621 : vector<1x256xf32>
      %630 = arith.addf %627, %629 : vector<1x256xf32>
      %631 = vector.shape_cast %625 : vector<256xf32> to vector<1x256xf32>
      %632 = arith.mulf %631, %630 : vector<1x256xf32>
      %633 = arith.addf %577, %632 : vector<1x256xf32>
      %c209_i32 = arith.constant 209 : i32
      %634 = tpu.dynamic_rotate %14 by %c209_i32 dim 1 : vector<1x256xf32>, i32 -> vector<1x256xf32>
      %c209_i32_149 = arith.constant 209 : i32
      %635 = tpu.dynamic_rotate %15 by %c209_i32_149 dim 1 : vector<1x256xf32>, i32 -> vector<1x256xf32>
      %c44 = arith.constant 44 : index
      %636 = memref.load %arg2[%c44] : memref<98xf32, #tpu.memory_space<smem>>
      %c93 = arith.constant 93 : index
      %637 = memref.load %arg2[%c93] : memref<98xf32, #tpu.memory_space<smem>>
      %c44_150 = arith.constant 44 : index
      %c0_151 = arith.constant 0 : index
      %638 = vector.load %arg3[%c44_150, %c0_151] : memref<49x256xf32, #tpu.memory_space<vmem>>, vector<1x256xf32>
      %639 = vector.shape_cast %638 : vector<1x256xf32> to vector<256xf32>
      %640 = vector.broadcast %636 : f32 to vector<1x256xf32>
      %641 = arith.mulf %640, %634 : vector<1x256xf32>
      %642 = vector.broadcast %637 : f32 to vector<1x256xf32>
      %643 = arith.mulf %642, %635 : vector<1x256xf32>
      %644 = arith.addf %641, %643 : vector<1x256xf32>
      %645 = vector.shape_cast %639 : vector<256xf32> to vector<1x256xf32>
      %646 = arith.mulf %645, %644 : vector<1x256xf32>
      %647 = arith.addf %591, %646 : vector<1x256xf32>
      %c208_i32 = arith.constant 208 : i32
      %648 = tpu.dynamic_rotate %14 by %c208_i32 dim 1 : vector<1x256xf32>, i32 -> vector<1x256xf32>
      %c208_i32_152 = arith.constant 208 : i32
      %649 = tpu.dynamic_rotate %15 by %c208_i32_152 dim 1 : vector<1x256xf32>, i32 -> vector<1x256xf32>
      %c45 = arith.constant 45 : index
      %650 = memref.load %arg2[%c45] : memref<98xf32, #tpu.memory_space<smem>>
      %c94 = arith.constant 94 : index
      %651 = memref.load %arg2[%c94] : memref<98xf32, #tpu.memory_space<smem>>
      %c45_153 = arith.constant 45 : index
      %c0_154 = arith.constant 0 : index
      %652 = vector.load %arg3[%c45_153, %c0_154] : memref<49x256xf32, #tpu.memory_space<vmem>>, vector<1x256xf32>
      %653 = vector.shape_cast %652 : vector<1x256xf32> to vector<256xf32>
      %654 = vector.broadcast %650 : f32 to vector<1x256xf32>
      %655 = arith.mulf %654, %648 : vector<1x256xf32>
      %656 = vector.broadcast %651 : f32 to vector<1x256xf32>
      %657 = arith.mulf %656, %649 : vector<1x256xf32>
      %658 = arith.addf %655, %657 : vector<1x256xf32>
      %659 = vector.shape_cast %653 : vector<256xf32> to vector<1x256xf32>
      %660 = arith.mulf %659, %658 : vector<1x256xf32>
      %661 = arith.addf %605, %660 : vector<1x256xf32>
      %c207_i32 = arith.constant 207 : i32
      %662 = tpu.dynamic_rotate %14 by %c207_i32 dim 1 : vector<1x256xf32>, i32 -> vector<1x256xf32>
      %c207_i32_155 = arith.constant 207 : i32
      %663 = tpu.dynamic_rotate %15 by %c207_i32_155 dim 1 : vector<1x256xf32>, i32 -> vector<1x256xf32>
      %c46 = arith.constant 46 : index
      %664 = memref.load %arg2[%c46] : memref<98xf32, #tpu.memory_space<smem>>
      %c95 = arith.constant 95 : index
      %665 = memref.load %arg2[%c95] : memref<98xf32, #tpu.memory_space<smem>>
      %c46_156 = arith.constant 46 : index
      %c0_157 = arith.constant 0 : index
      %666 = vector.load %arg3[%c46_156, %c0_157] : memref<49x256xf32, #tpu.memory_space<vmem>>, vector<1x256xf32>
      %667 = vector.shape_cast %666 : vector<1x256xf32> to vector<256xf32>
      %668 = vector.broadcast %664 : f32 to vector<1x256xf32>
      %669 = arith.mulf %668, %662 : vector<1x256xf32>
      %670 = vector.broadcast %665 : f32 to vector<1x256xf32>
      %671 = arith.mulf %670, %663 : vector<1x256xf32>
      %672 = arith.addf %669, %671 : vector<1x256xf32>
      %673 = vector.shape_cast %667 : vector<256xf32> to vector<1x256xf32>
      %674 = arith.mulf %673, %672 : vector<1x256xf32>
      %675 = arith.addf %619, %674 : vector<1x256xf32>
      %c206_i32 = arith.constant 206 : i32
      %676 = tpu.dynamic_rotate %14 by %c206_i32 dim 1 : vector<1x256xf32>, i32 -> vector<1x256xf32>
      %c206_i32_158 = arith.constant 206 : i32
      %677 = tpu.dynamic_rotate %15 by %c206_i32_158 dim 1 : vector<1x256xf32>, i32 -> vector<1x256xf32>
      %c47 = arith.constant 47 : index
      %678 = memref.load %arg2[%c47] : memref<98xf32, #tpu.memory_space<smem>>
      %c96 = arith.constant 96 : index
      %679 = memref.load %arg2[%c96] : memref<98xf32, #tpu.memory_space<smem>>
      %c47_159 = arith.constant 47 : index
      %c0_160 = arith.constant 0 : index
      %680 = vector.load %arg3[%c47_159, %c0_160] : memref<49x256xf32, #tpu.memory_space<vmem>>, vector<1x256xf32>
      %681 = vector.shape_cast %680 : vector<1x256xf32> to vector<256xf32>
      %682 = vector.broadcast %678 : f32 to vector<1x256xf32>
      %683 = arith.mulf %682, %676 : vector<1x256xf32>
      %684 = vector.broadcast %679 : f32 to vector<1x256xf32>
      %685 = arith.mulf %684, %677 : vector<1x256xf32>
      %686 = arith.addf %683, %685 : vector<1x256xf32>
      %687 = vector.shape_cast %681 : vector<256xf32> to vector<1x256xf32>
      %688 = arith.mulf %687, %686 : vector<1x256xf32>
      %689 = arith.addf %633, %688 : vector<1x256xf32>
      %c205_i32 = arith.constant 205 : i32
      %690 = tpu.dynamic_rotate %14 by %c205_i32 dim 1 : vector<1x256xf32>, i32 -> vector<1x256xf32>
      %c205_i32_161 = arith.constant 205 : i32
      %691 = tpu.dynamic_rotate %15 by %c205_i32_161 dim 1 : vector<1x256xf32>, i32 -> vector<1x256xf32>
      %c48 = arith.constant 48 : index
      %692 = memref.load %arg2[%c48] : memref<98xf32, #tpu.memory_space<smem>>
      %c97 = arith.constant 97 : index
      %693 = memref.load %arg2[%c97] : memref<98xf32, #tpu.memory_space<smem>>
      %c48_162 = arith.constant 48 : index
      %c0_163 = arith.constant 0 : index
      %694 = vector.load %arg3[%c48_162, %c0_163] : memref<49x256xf32, #tpu.memory_space<vmem>>, vector<1x256xf32>
      %695 = vector.shape_cast %694 : vector<1x256xf32> to vector<256xf32>
      %696 = vector.broadcast %692 : f32 to vector<1x256xf32>
      %697 = arith.mulf %696, %690 : vector<1x256xf32>
      %698 = vector.broadcast %693 : f32 to vector<1x256xf32>
      %699 = arith.mulf %698, %691 : vector<1x256xf32>
      %700 = arith.addf %697, %699 : vector<1x256xf32>
      %701 = vector.shape_cast %695 : vector<256xf32> to vector<1x256xf32>
      %702 = arith.mulf %701, %700 : vector<1x256xf32>
      %703 = arith.addf %647, %702 : vector<1x256xf32>
      %704 = arith.addf %703, %661 : vector<1x256xf32>
      %705 = arith.addf %675, %689 : vector<1x256xf32>
      %706 = arith.addf %704, %705 : vector<1x256xf32>
      %707 = arith.negf %706 : vector<1x256xf32>
      %708 = math.exp %707 : vector<1x256xf32>
      %cst_164 = arith.constant 1.000000e+00 : f32
      %709 = vector.broadcast %cst_164 : f32 to vector<1x256xf32>
      %710 = arith.addf %709, %708 : vector<1x256xf32>
      %711 = arith.divf %709, %710 : vector<1x256xf32>
      %c0_165 = arith.constant 0 : index
      %c0_166 = arith.constant 0 : index
      %c0_167 = arith.constant 0 : index
      %712 = vector.load %arg5[%c0_165, %c0_166, %c0_167] : memref<1x1x256xf32, #tpu.memory_space<vmem>>, vector<1x1x256xf32>
      %713 = vector.shape_cast %712 : vector<1x1x256xf32> to vector<1x256xf32>
      %714 = vector.shape_cast %711 : vector<1x256xf32> to vector<1x1x256xf32>
      tpu.vector_store %arg5[%c0_165, %c0_166, %c0_167], %714 {strides = array<i32>} : memref<1x1x256xf32, #tpu.memory_space<vmem>>, vector<1x1x256xf32>,
    } else {
    }
    return
  }
  func.func @transform_0(%arg0: i32, %arg1: i32) -> i32 {
    %c0_i32 = arith.constant 0 : i32
    %c0_i32_0 = arith.constant 0 : i32
    return %c0_i32 : i32
  }
  func.func @transform_1(%arg0: i32, %arg1: i32) -> (i32, i32) {
    %c0_i32 = arith.constant 0 : i32
    %c0_i32_0 = arith.constant 0 : i32
    %c0_i32_1 = arith.constant 0 : i32
    return %c0_i32, %c0_i32_0 : i32, i32
  }
  func.func @transform_2(%arg0: i32, %arg1: i32) -> (i32, i32, i32) {
    %c0_i32 = arith.constant 0 : i32
    %c0_i32_0 = arith.constant 0 : i32
    return %arg0, %arg1, %c0_i32 : i32, i32, i32
  }
  func.func @transform_3(%arg0: i32, %arg1: i32) -> (i32, i32, i32) {
    %c0_i32 = arith.constant 0 : i32
    %c0_i32_0 = arith.constant 0 : i32
    %c0_i32_1 = arith.constant 0 : i32
    return %arg0, %c0_i32, %c0_i32_0 : i32, i32, i32
  }
}

</mosaic_0001>

<bundles_post_ra>
// kernel: tpu_custom_call.1
= control target key start
LH: loop header
LB: loop body
LE: loop exit
PB: predicated region body
PF: predicated region fallthrough
CT: control target
= control target key end

     0   :  { %s5198_s0 = inlined_call_operand.hbm [shape: f32[98], index: 0, kind: input, shape index: {}]   ;;  %s5199_s1 = inlined_call_operand.hbm [shape: f32[49,256], index: 1, kind: input, shape index: {}]   ;;  %s5200_s2 = inlined_call_operand.hbm [shape: f32[2,4,256], index: 2, kind: input, shape index: {}]   ;;  %s5201_s3 = inlined_call_operand.hbm [shape: f32[2,1,256], index: 3, kind: output, shape index: {}]  }
   0x1   :  { %5248 = sst [smem:[#allocation50_spill]] %s5198_s0 }
   0x2   :  { %5249 = sst [smem:[#allocation51_spill]] %s5199_s1 }
   0x3   :  { %5250 = sst [smem:[#allocation52_spill]] %s5200_s2 }
   0x4   :  { %5251 = sst [smem:[#allocation53_spill]] %s5201_s3 }
   0x5   :  { %8 = vsyncpa [#allocation7], 0 }
   0x6   :  { %9 = vsyncpa [#allocation5], 0 }
   0x7   :  { %10 = vsyncpa [#allocation10], 0 }
   0x8   :  { %12 = vsyncpa [#allocation10 + $0x1], 0 }
   0x9   :  { %13 = vsyncpa [#allocation6], 0 }
   0xa   :  { %15 = vsyncpa [#allocation6 + $0x1], 0  ;;  %s3190_s12 = smov 0   ;;  %s3192_s13 = smov 0  }
   0xb   :  { %s3194_s14 = smov 0   ;;  %s3196_s15 = smov 0  }
   0xc   :  { %s3198_s16 = smov 0   ;;  %s3200_s17 = smov 0  }
   0xd LB: > { %5252 = sst [smem:[#allocation16_spill]] %s3093_s12  ;;  %s2693_s18 = sadd.s32 4294967295, %s3113_s17   ;;  %s3113_s17 = sphi %s3200_s17, %s21_s17   ;;  %s3109_s16 = sphi %s3198_s16, %s5423_s16   ;;  %s3105_s15 = sphi %s3196_s15, %s5422_s15   ;;  %s3101_s14 = sphi %s3194_s14, %s5421_s14   ;;  %s3097_s13 = sphi %s3192_s13, %s5420_s13   ;;  %s3093_s12 = sphi %s3190_s12, %s5419_s12  }
   0xe   : > { %5253 = sst [smem:[#allocation17_spill]] %s3097_s13  ;;  %s2694_s19 = sadd.s32 4294967294, %s3113_s17  }
   0xf   : > { %5254 = sst [smem:[#allocation18_spill]] %s3101_s14  ;;  %p97_p0 = scmp.ne.s32.totalorder %s3097_s13, %s3093_s12 }
  0x10   : > { %5255 = sst [smem:[#allocation19_spill]] %s3105_s15  ;;  %p3224_p1 = scmp.eq.s32.totalorder %s2693_s18, 0 }
  0x11   : > { %5256 = sst [smem:[#allocation20_spill]] %s3109_s16  ;;  %p3228_p2 = scmp.eq.s32.totalorder %s2693_s18, 1 }
  0x12   : > { %5257 = sst [smem:[#allocation21_spill]] %s3113_s17  ;;  %p127_p3 = scmp.eq.s32.totalorder %s2694_s19, 1 }
  0x13   : > { %s5258_s20 = scalar_select %p3224_p1, 1, 0 }
  0x14   : > { %p3234_p4 = por %p3224_p1, %p97_p0  ;;  %p2695_p5 = scmp.ge.s32.totalorder %s3113_s17, 1 }
  0x15   : > { %p3239_p6 = por %p127_p3, %p97_p0  ;;  %p134_p7 = scmp.lt.s32.totalorder %s3113_s17, 3 }
  0x16   : > { %s5260_s22 = scalar_select %p3234_p4, 1, 0 }
  0x17   : > { %s5261_s23 = scalar_select %p3239_p6, 1, 0 }
  0x18   : > { %p3244_p8 = pnand %p2695_p5, %p134_p7  ;;  %s3115_s25 = smov [#allocation8]  }
  0x19   : > { %5262 = sst [smem:[#allocation22_spill]] %s5261_s23  ;;  %s155_s26 = sshll.u32 %s3115_s25, 4  ;;  %s3251_s26 = int_to_ptr.vmem [resolvable:$true] %s155_s26 }
  0x1a   : > { %p2824_p10 = pneg %p3244_p8  ;;  %s5265_s0 = sld [smem:[#allocation50_spill]] }
  0x1c   : > { %p3255_p11 = pnand %p2824_p10, %p3224_p1 }
  0x1e   : > { %p2954_p13 = pneg %p3255_p11 }
  0x20   : > { %s2952_s30 = scalar_lea.hbm %s5265_s0, 16 }
  0x21   : > { %p2953_p12 = scmp.ne.s32.totalorder %s5265_s0, %s2952_s30  ;;  %p2959_p5 = scmp.lt.u32.totalorder %s2952_s30, %s5265_s0 }
  0x23   : > { %p2955_p0 = pnand %p2954_p13, %p2953_p12 }
  0x25   : > { %p2956_p3 = pneg %p2955_p0 }
  0x27   : > { %p2961_p7 = pnand %p2959_p5, %p2956_p3 }
  0x29   : > { %2964 = shalt.err (!%p2961_p7)
}
  0x2a   : > { %s3116_s8 = smov [#allocation4]   ;;  %s5266_s1 = sld [smem:[#allocation51_spill]] }
  0x2b   : > { %2827 = dma.hbm_to_smem (!%p3255_p11), %s5265_s0, 16, %s3116_s8, [#allocation7]  }
  0x30   : > { %s2965_s19 = scalar_lea.hbm %s5266_s1, 1792 }
  0x31   : > { %p2966_p10 = scmp.ne.s32.totalorder %s5266_s1, %s2965_s19  ;;  %p2972_p3 = scmp.lt.u32.totalorder %s2965_s19, %s5266_s1 }
  0x33   : > { %p2968_p12 = pnand %p2966_p10, %p2954_p13 }
  0x35   : > { %p2969_p0 = pneg %p2968_p12 }
  0x37   : > { %p2974_p5 = pnand %p2972_p3, %p2969_p0 }
  0x39   : > { %2977 = shalt.err (!%p2974_p5)
}
  0x3a   : > { %s2978_s4 = scalar_lea.vmem %s3251_s26, 1792  ;;  %p2986_p4 = scmp.lt.s32.totalorder %s3251_s26, %s3251_s26 }
  0x3b   : > { %p2979_p7 = scmp.ne.s32.totalorder %s3251_s26, %s2978_s4  ;;  %p2987_p10 = scmp.lt.s32.totalorder %s2978_s4, %s2978_s4 }
  0x3d   : > { %p2981_p9 = pnand %p2979_p7, %p2954_p13  ;;  %p2988_p12 = por %p2987_p10, %p2986_p4 }
  0x3f   : > { %p2982_p6 = pneg %p2981_p9 }
  0x41   : > { %p2989_p1 = pnand %p2988_p12, %p2982_p6 }
  0x43   : > { %2992 = shalt.err (!%p2989_p1)
}
  0x44   : > { %s3117_s5 = smov 256   ;;  %s3118_s6 = smov 16  }
  0x45   : > { %2830 = dma.hbm_to_vmem [thread:$0]  (!%p3255_p11), %s5266_s1, 1792, %s3251_s26, [#allocation5], %s3117_s5, %s3117_s5, %s3118_s6  }
  0x46   : > { %s33_s9 = sadd.s32 1, %s3109_s16  ;;  %s84_s10 = sadd.s32 1, %s3101_s14 }
  0x47   : > { %p35_p1 = scmp.ge.s32.totalorder %s33_s9, 2  ;;  %p91_p4 = scmp.ne.s32.totalorder %s3101_s14, %s3097_s13 }
  0x48   : > { %p92_p6 = scmp.eq.s32.totalorder %s3113_s17, 0  ;;  %p2841_p9 = scmp.lt.s32.totalorder %s3113_s17, 2 }
  0x49   : > { %s5425_s9 = smov (%p35_p1, %s33_s9), 0  ;;  %p3313_p0 = por %p3228_p2, %p91_p4 }
  0x4a   : > { %5267 = sst [smem:[#allocation23_spill]] %s5425_s9  ;;  %p93_p13 = por %p92_p6, %p91_p4 }
  0x4b   : > { %s5268_s11 = scalar_select %p3313_p0, 1, 0 }
  0x4c   : > { %s79_s27 = ssub.s32 %s3109_s16, %s5425_s9  ;;  %s169_s18 = sand.u32 1, %s3101_s14  }
  0x4d   : > { %5269 = sst [smem:[#allocation24_spill]] %s5268_s11  ;;  %p82_p3 = scmp.eq.s32.totalorder %s79_s27, 0 }
  0x4e   : > { %s2699_s26 = sshll.u32 %s169_s18, 3  ;;  %s2810_s19 = sshll.u32 %s3109_s16, 7 }
  0x4f   : > { %s3322_s25 = scalar_select %p82_p3, %s3101_s14, %s84_s10  }
  0x50   : > { %s5271_s2 = sld [smem:[#allocation52_spill]]  ;;  %s173_s21 = scalar_lea.vmem [#allocation9], %s2699_s26 }
  0x51   : > { %5270 = sst [smem:[#allocation25_spill]] %s3322_s25  ;;  %s183_s4 = sshll.u32 %s173_s21, 4  ;;  %s3335_s4 = int_to_ptr.vmem [resolvable:$true] %s183_s4 }
  0x52   : > { %p3331_p2 = pnand %p2841_p9, %p93_p13  ;;  %s170_s6 = scalar_lea.sflag [#allocation10], %s169_s18 }
  0x54   : > { %p2995_p5 = pneg %p3331_p2 }
  0x56   : > { %s3327_s30 = scalar_lea.hbm %s5271_s2, %s2810_s19  ;;  %s2998_s27 = scalar_lea.hbm %s5271_s2, 256 }
  0x57   : > { %s2993_s7 = scalar_lea.hbm %s3327_s30, 128  ;;  %p2999_p12 = scmp.lt.u32.totalorder %s3327_s30, %s5271_s2 }
  0x58   : > { %p2994_p11 = scmp.ne.s32.totalorder %s3327_s30, %s2993_s7  ;;  %p3000_p1 = scmp.lt.u32.totalorder %s2998_s27, %s2993_s7 }
  0x59   : > { %p3002_p6 = scmp.lt.u32.totalorder %s2993_s7, %s3327_s30 }
  0x5a   : > { %p2996_p7 = pnand %p2995_p5, %p2994_p11  ;;  %p3001_p4 = por %p3000_p1, %p2999_p12 }
  0x5c   : > { %p2997_p10 = pneg %p2996_p7  ;;  %p3003_p9 = por %p3002_p6, %p3001_p4 }
  0x5e   : > { %p3004_p13 = pnand %p3003_p9, %p2997_p10 }
  0x60   : > { %3007 = shalt.err (!%p3004_p13)
}
  0x61   : > { %s3008_s18 = scalar_lea.vmem %s3335_s4, 128  ;;  %s3119_s28 = smov [#allocation9]  }
  0x62   : > { %p3009_p3 = scmp.ne.s32.totalorder %s3335_s4, %s3008_s18  ;;  %s3013_s29 = sshll.u32 %s3119_s28, 4  ;;  %s3014_s29 = int_to_ptr.vmem [resolvable:$false] %s3013_s29 }
  0x63   : > { %s3015_s21 = scalar_lea.vmem %s3014_s29, 256  ;;  %p3016_p0 = scmp.lt.s32.totalorder %s3335_s4, %s3014_s29 }
  0x64   : > { %p3011_p11 = pnand %p3009_p3, %p2995_p5  ;;  %p3017_p12 = scmp.lt.s32.totalorder %s3015_s21, %s3008_s18 }
  0x66   : > { %p3012_p7 = pneg %p3011_p11  ;;  %p3018_p1 = por %p3017_p12, %p3016_p0 }
  0x68   : > { %p3019_p4 = pnand %p3018_p1, %p3012_p7 }
  0x6a   : > { %3022 = shalt.err (!%p3019_p4)
}
  0x6b   : > { %2834 = dma.hbm_to_vmem [thread:$0]  (!%p3331_p2), %s3327_s30, 128, %s3335_s4, %s170_s6  }
  0x6c   : > { %192 = sbr.rel (%p3244_p8) target bundleno = 721 (0x2d1), region = 32 }
  0x73   : > { %p5273_p5 = scmp.ne.s32.totalorder %s5258_s20, 0 }
  0x75   : > { %3076 = dma.done.wait (%p5273_p5), [#allocation7], 16  }
  0x76   : > { %3078 = vsyncadd (%p5273_p5), [#allocation7], 4294967280 }
  0x77   : > { %3080 = dma.done.wait (%p5273_p5), [#allocation5], 1792  }
  0x78   : > { %3082 = vsyncadd (%p5273_p5), [#allocation5], 4294965504  ;;  %s3373_s5 = sand.u32 1, %s3097_s13   ;;  %p5275_p8 = scmp.ne.s32.totalorder %s5260_s22, 0 }
  0x79   : > { %5274 = sst [smem:[#allocation26_spill]] %s3373_s5  ;;  %s2705_s24 = sshll.u32 %s3373_s5, 3 }
  0x7a   : > { %s203_s30 = scalar_lea.sflag [#allocation10], %s3373_s5  ;;  %s206_s4 = scalar_lea.vmem [#allocation9], %s2705_s24 }
  0x7b   : > { %3084 = dma.done.wait (%p5275_p8), %s203_s30, 128  }
  0x7c   : > { %3086 = vsyncadd (%p5275_p8), %s203_s30, 4294967168 }
  0x7d   : > { %211 = sfence }
  0x7e   : > { %v230_v0 = vld [vmem:[%s206_s4] sm:$0xff]  ;;  %vm234_vm0 = vcmask 1043456   ;;  %v273_v11 = vlaneseq  ;;  %v3120_v16 = vmov 1966171168   ;;  %v5276_v39 = vmov 0  ;;  %s3121_s20 = smov 50  }
  0x7f   : > { %v232_v1 = vcombine.high %v230_v0, %v230_v0  ;;  %v235_v2 = vsel %vm234_vm0, %v230_v0, 0.0  ;;  %v249_v3 = vsel %vm234_vm0, %v230_v0, -inf  ;;  %v271_v17 = vunpack.c.l.s4 %v3120_v16  ;;  %s3122_s22 = smov 51   ;;  %s3123_s6 = smov 49  }
  0x80   : > { %v236_v4 = vrot.slane %v235_v2, 4  ;;  %v250_v5 = vrot.slane %v249_v3, 4  ;;  %v274_v22 = vshrl.u32 %v273_v11, 7  ;;  %vm3386_vm1 = vcmp.lt.s32.totalorder %v273_v11, 256  ;;  %s3124_s7 = smov 48   ;;  %s3125_s8 = smov 47  }
  0x81   : > { %v256_v6 = vsel %vm234_vm0, %v232_v1, -inf  ;;  %v242_v7 = vsel %vm234_vm0, %v232_v1, 0.0  ;;  %v272_v27 = vunpack.c.0.s8 %v271_v17  ;;  %v5277_v39 = vsel %vm3386_vm1, 4294967295, %v5276_v39  ;;  %s3126_s10 = smov 46   ;;  %s3127_s27 = smov 45  }
  0x82   : > { %v237_v8 = vadd.f32 %v236_v4, %v235_v2  ;;  %v251_v9 = vmax.f32 %v249_v3, %v250_v5  ;;  %v257_v10 = vrot.slane %v256_v6, 4  ;;  %v243_v12 = vrot.slane %v242_v7, 4  ;;  %5278 = vst [vmem:[#allocation27_spill] sm:$0xff] %v5277_v39  ;;  %s3128_s26 = smov 35   ;;  %s3129_s19 = smov 34  }
  0x83   : > { %v3382_v34 = vsub.s32 %v272_v27, %v274_v22  ;;  %v368_v43 = vsub.s32 0, %v274_v22  ;;  %v372_v44 = vsub.s32 1, %v274_v22  ;;  %s3130_s18 = smov 33   ;;  %s3131_s28 = smov 32  }
  0x84   : > { %v238_v13 = vrot.slane %v237_v8, 2  ;;  %v252_v14 = vrot.slane %v251_v9, 2  ;;  %v258_v15 = vmax.f32 %v256_v6, %v257_v10  ;;  %v244_v18 = vadd.f32 %v243_v12, %v242_v7  ;;  %s3132_s29 = smov 31   ;;  %s3133_s21 = smov 30  }
  0x85   : > { %s3134_s24 = smov 29   ;;  %s3135_s30 = smov 19  }
  0x86   : > { %v239_v19 = vadd.f32 %v238_v13, %v237_v8  ;;  %v253_v20 = vmax.f32 %v251_v9, %v252_v14  ;;  %v259_v21 = vrot.slane %v258_v15, 2  ;;  %v245_v23 = vrot.slane %v244_v18, 2  ;;  %s3136_s4 = smov 18   ;;  %s3148_s0 = smov 115  }
  0x87   : > { %s3657_s1 = sld [smem:[#allocation4 + $0x8]]  ;;  %s3659_s2 = sld [smem:[#allocation4 + $0x39]] }
  0x88   : > { %v240_v24 = vrot.slane %v239_v19, 1  ;;  %v254_v25 = vrot.slane %v253_v20, 1  ;;  %v260_v26 = vmax.f32 %v258_v15, %v259_v21  ;;  %v246_v28 = vadd.f32 %v245_v23, %v244_v18  ;;  %s3662_s9 = sld [smem:[#allocation4 + $0x9]]  ;;  %s3664_s16 = sld [smem:[#allocation4 + $0x3a]] }
  0x89   : > { %s3857_s25 = sld [smem:[#allocation4 + $0xe]]  ;;  %s3883_s14 = sld [smem:[#allocation4 + $0x40]] }
  0x8a   : > { %v255_v29 = vmax.f32 %v253_v20, %v254_v25  ;;  %v261_v30 = vrot.slane %v260_v26, 1  ;;  %v241_v31 = vadd.f32 %v240_v24, %v239_v19  ;;  %v247_v32 = vrot.slane %v246_v28, 1  ;;  %s5231_s13 = smov 112   ;;  %s3897_s17 = sld [smem:[#allocation4 + $0x41]] }
  0x8b   : > { %s3924_s23 = sld [smem:[#allocation4 + $0x12]]  ;;  %s3926_s12 = sld [smem:[#allocation4 + $0x43]] }
  0x8c   : > { %v262_v33 = vmax.f32 %v260_v26, %v261_v30  ;;  %v248_v35 = vadd.f32 %v247_v32, %v246_v28  ;;  %s3934_s3 = sld [smem:[#allocation4 + $0x13]]  ;;  %s3936_s11 = sld [smem:[#allocation4 + $0x44]] }
  0x8d   : > { %s3956_s15 = sld [smem:[#allocation4 + $0x14]]  ;;  %s3979_s5 = sld [smem:[#allocation4 + $0x15]] }
  0x8e   : > { %v292_v36 = vcombine.low %v255_v29, %v262_v33  ;;  %v269_v37 = vcombine.low %v241_v31, %v248_v35 }
  0x90   : > { %v299_v38 = vrot.slane %v292_v36, %v3382_v34  ;;  %v276_v40 = vrot.slane %v269_v37, %v3382_v34  ;;  %5308 = sst [smem:[#allocation47_spill]] %s3897_s17  ;;  %s5317_s17 = smov 111  }
  0x92   : > { %v306_v41 = vrot.slane %v299_v38, %v3382_v34  ;;  %v283_v42 = vrot.slane %v276_v40, %v3382_v34 }
  0x94   : > { %308 = vst.msk [vmem:[#allocation3] sm:$0x3] %vm3386_vm1, %v306_v41  ;;  %289 = vst.msk [vmem:[#allocation2] sm:$0x3] %vm3386_vm1, %v283_v42 }
  0x9b   : > { %v364_v45 = vld [vmem:[#allocation3] sm:$0x3]  ;;  %v362_v48 = vld [vmem:[#allocation2] sm:$0x3] }
  0x9c   : > { %v3397_v46 = vrot.slane %v364_v45, %v368_v43  ;;  %v3401_v47 = vrot.slane %v364_v45, %v372_v44  ;;  %v3405_v49 = vmul.f32 0.25, %v362_v48 }
  0x9e   : > { %440 = vrot.lane.b32.xlu0 %v3397_v46, %s3121_s20  ;;  %396 = vrot.lane.b32.xlu1 %v3397_v46, %s3122_s22  ;;  %5279 = vst [vmem:[#allocation28_spill] sm:$0xff] %v3405_v49  ;;  %v3410_v50 = vrot.slane %v3405_v49, %v368_v43  ;;  %v3415_v51 = vrot.slane %v3405_v49, %v372_v44  ;;  %v3650_v43 = vand.u32 127, %v273_v11 }
  0xa0   : > { %vm382_vm2 = vcmp.lt.s32.totalorder %v3650_v43, 51  ;;  %vm437_vm3 = vcmp.lt.s32.totalorder %v3650_v43, 50  ;;  %vm482_vm4 = vcmp.lt.s32.totalorder %v3650_v43, 49  ;;  %vm527_vm5 = vcmp.lt.s32.totalorder %v3650_v43, 48 }
  0xa1   : > { %vm572_vm6 = vcmp.lt.s32.totalorder %v3650_v43, 47  ;;  %vm617_vm7 = vcmp.lt.s32.totalorder %v3650_v43, 46  ;;  %vm662_vm8 = vcmp.lt.s32.totalorder %v3650_v43, 45  ;;  %vm707_vm9 = vcmp.lt.s32.totalorder %v3650_v43, 35 }
  0xa2   : > { %485 = vrot.lane.b32.xlu0 %v3397_v46, %s3123_s6  ;;  %398 = vrot.lane.b32.xlu1 %v3401_v47, %s3122_s22  ;;  %vm797_vm10 = vcmp.lt.s32.totalorder %v3650_v43, 33  ;;  %vm842_vm11 = vcmp.lt.s32.totalorder %v3650_v43, 32  ;;  %vm752_vm12 = vcmp.lt.s32.totalorder %v3650_v43, 34  ;;  %vm887_vm13 = vcmp.lt.s32.totalorder %v3650_v43, 31 }
  0xa3   : > { %vm977_vm14 = vcmp.lt.s32.totalorder %v3650_v43, 29  ;;  %vm1022_vm15 = vcmp.lt.s32.totalorder %v3650_v43, 19  ;;  %vm1067_vm0 = vcmp.lt.s32.totalorder %v3650_v43, 18 }
  0xa6   : > { %530 = vrot.lane.b32.xlu0 %v3397_v46, %s3124_s7  ;;  %442 = vrot.lane.b32.xlu1 %v3401_v47, %s3121_s20 }
  0xaa   : > { %487 = vrot.lane.b32.xlu1 %v3401_v47, %s3123_s6  ;;  %376 = vrot.lane.b32.xlu0 %v3410_v50, %s3122_s22 }
  0xae   : > { %532 = vrot.lane.b32.xlu1 %v3401_v47, %s3124_s7  ;;  %378 = vrot.lane.b32.xlu0 %v3415_v51, %s3122_s22  ;;  %s3138_s22 = smov 16  }
  0xb2   : > { %435 = vrot.lane.b32.xlu1 %v3415_v51, %s3121_s20  ;;  %433 = vrot.lane.b32.xlu0 %v3410_v50, %s3121_s20  ;;  %s3137_s20 = smov 17  }
  0xb6   : > { %480 = vrot.lane.b32.xlu1 %v3415_v51, %s3123_s6  ;;  %478 = vrot.lane.b32.xlu0 %v3410_v50, %s3123_s6  ;;  %s3139_s6 = smov 15  }
  0xba   : > { %525 = vrot.lane.b32.xlu1 %v3415_v51, %s3124_s7  ;;  %523 = vrot.lane.b32.xlu0 %v3410_v50, %s3124_s7  ;;  %s3140_s7 = smov 14  }
  0xbe   : > { %570 = vrot.lane.b32.xlu1 %v3415_v51, %s3125_s8  ;;  %568 = vrot.lane.b32.xlu0 %v3410_v50, %s3125_s8 }
  0xc2   : > { %577 = vrot.lane.b32.xlu1 %v3401_v47, %s3125_s8  ;;  %575 = vrot.lane.b32.xlu0 %v3397_v46, %s3125_s8  ;;  %s3141_s8 = smov 13  }
  0xc6   : > { %615 = vrot.lane.b32.xlu1 %v3415_v51, %s3126_s10  ;;  %613 = vrot.lane.b32.xlu0 %v3410_v50, %s3126_s10 }
  0xca   : > { %622 = vrot.lane.b32.xlu1 %v3401_v47, %s3126_s10  ;;  %620 = vrot.lane.b32.xlu0 %v3397_v46, %s3126_s10  ;;  %s3142_s10 = smov 3  }
  0xce   : > { %660 = vrot.lane.b32.xlu1 %v3415_v51, %s3127_s27  ;;  %658 = vrot.lane.b32.xlu0 %v3410_v50, %s3127_s27 }
  0xd2   : > { %667 = vrot.lane.b32.xlu1 %v3401_v47, %s3127_s27  ;;  %665 = vrot.lane.b32.xlu0 %v3397_v46, %s3127_s27  ;;  %s3143_s27 = smov 2  }
  0xd6   : > { %705 = vrot.lane.b32.xlu1 %v3415_v51, %s3128_s26  ;;  %703 = vrot.lane.b32.xlu0 %v3410_v50, %s3128_s26 }
  0xda   : > { %712 = vrot.lane.b32.xlu1 %v3401_v47, %s3128_s26  ;;  %710 = vrot.lane.b32.xlu0 %v3397_v46, %s3128_s26  ;;  %s3144_s26 = smov 1  }
  0xde   : > { %750 = vrot.lane.b32.xlu1 %v3415_v51, %s3129_s19  ;;  %748 = vrot.lane.b32.xlu0 %v3410_v50, %s3129_s19 }
  0xe2   : > { %757 = vrot.lane.b32.xlu1 %v3401_v47, %s3129_s19  ;;  %755 = vrot.lane.b32.xlu0 %v3397_v46, %s3129_s19  ;;  %s3145_s19 = smov 127  }
  0xe6   : > { %795 = vrot.lane.b32.xlu1 %v3415_v51, %s3130_s18  ;;  %793 = vrot.lane.b32.xlu0 %v3410_v50, %s3130_s18 }
  0xea   : > { %802 = vrot.lane.b32.xlu1 %v3401_v47, %s3130_s18  ;;  %800 = vrot.lane.b32.xlu0 %v3397_v46, %s3130_s18  ;;  %s3146_s18 = smov 126  }
  0xee   : > { %840 = vrot.lane.b32.xlu1 %v3415_v51, %s3131_s28  ;;  %838 = vrot.lane.b32.xlu0 %v3410_v50, %s3131_s28 }
  0xf2   : > { %847 = vrot.lane.b32.xlu1 %v3401_v47, %s3131_s28  ;;  %845 = vrot.lane.b32.xlu0 %v3397_v46, %s3131_s28  ;;  %s3609_s28 = sld [smem:[#allocation4 + $0x31]] }
  0xf6   : > { %885 = vrot.lane.b32.xlu1 %v3415_v51, %s3132_s29  ;;  %883 = vrot.lane.b32.xlu0 %v3410_v50, %s3132_s29 }
  0xf8   : > { %v408_v45 = vstv %s3609_s28  ;;  %s3739_s28 = sld [smem:[#allocation4 + $0xa]] }
  0xfa   : > { %892 = vrot.lane.b32.xlu1 %v3401_v47, %s3132_s29  ;;  %890 = vrot.lane.b32.xlu0 %v3397_v46, %s3132_s29  ;;  %s3147_s29 = smov 125  }
  0xfe   : > { %930 = vrot.lane.b32.xlu1 %v3415_v51, %s3133_s21  ;;  %928 = vrot.lane.b32.xlu0 %v3410_v50, %s3133_s21 }
 0x102   : > { %937 = vrot.lane.b32.xlu1 %v3401_v47, %s3133_s21  ;;  %935 = vrot.lane.b32.xlu0 %v3397_v46, %s3133_s21  ;;  %s3612_s21 = sld [smem:[#allocation4 + $0x32]] }
 0x106   : > { %975 = vrot.lane.b32.xlu1 %v3415_v51, %s3134_s24  ;;  %973 = vrot.lane.b32.xlu0 %v3410_v50, %s3134_s24 }
 0x108   : > { %v453_v48 = vstv %s3612_s21  ;;  %s3741_s21 = sld [smem:[#allocation4 + $0x3b]] }
 0x10a   : > { %982 = vrot.lane.b32.xlu1 %v3401_v47, %s3134_s24  ;;  %980 = vrot.lane.b32.xlu0 %v3397_v46, %s3134_s24  ;;  %s3614_s24 = sld [smem:[#allocation4 + $0x33]] }
 0x10e   : > { %1020 = vrot.lane.b32.xlu1 %v3415_v51, %s3135_s30  ;;  %1018 = vrot.lane.b32.xlu0 %v3410_v50, %s3135_s30 }
 0x110   : > { %v3467_v52 = vpop.permute.xlu0 %440  ;;  %v3469_v53 = vpop.permute.xlu1 %396 }
 0x112   : > { %1027 = vrot.lane.b32.xlu1 %v3401_v47, %s3135_s30  ;;  %1025 = vrot.lane.b32.xlu0 %v3397_v46, %s3135_s30  ;;  %s3617_s30 = sld [smem:[#allocation4 + $0x34]] }
 0x114   : > { %v3473_v54 = vpop.permute.xlu0 %485  ;;  %v3475_v55 = vpop.permute.xlu1 %398 }
 0x115   : > { %v400_v49 = vsel %vm382_vm2, %v3469_v53, %v3475_v55 }
 0x116   : > { %1065 = vrot.lane.b32.xlu1 %v3415_v51, %s3136_s4  ;;  %1063 = vrot.lane.b32.xlu0 %v3410_v50, %s3136_s4 }
 0x118   : > { %v3479_v56 = vpop.permute.xlu0 %530  ;;  %v3481_v57 = vpop.permute.xlu1 %442 }
 0x11a   : > { %1072 = vrot.lane.b32.xlu1 %v3401_v47, %s3136_s4  ;;  %1070 = vrot.lane.b32.xlu0 %v3397_v46, %s3136_s4  ;;  %s3619_s4 = sld [smem:[#allocation4]] }
 0x11c   : > { %v3485_v58 = vpop.permute.xlu1 %487  ;;  %v3487_v59 = vpop.permute.xlu0 %376 }
 0x11e   : > { %1110 = vrot.lane.b32.xlu1 %v3415_v51, %s3137_s20  ;;  %1108 = vrot.lane.b32.xlu0 %v3410_v50, %s3137_s20 }
 0x120   : > { %v3491_v60 = vpop.permute.xlu1 %532  ;;  %v3493_v61 = vpop.permute.xlu0 %378 }
 0x121   : > { %v383_v39 = vsel %vm382_vm2, %v3487_v59, %v3493_v61 }
 0x122   : > { %1117 = vrot.lane.b32.xlu1 %v3401_v47, %s3137_s20  ;;  %1115 = vrot.lane.b32.xlu0 %v3397_v46, %s3137_s20  ;;  %s3625_s20 = sld [smem:[#allocation4 + $0x1]] }
 0x124   : > { %v3497_v62 = vpop.permute.xlu1 %435  ;;  %v3499_v63 = vpop.permute.xlu0 %433 }
 0x126   : > { %1155 = vrot.lane.b32.xlu1 %v3415_v51, %s3138_s22  ;;  %1153 = vrot.lane.b32.xlu0 %v3410_v50, %s3138_s22 }
 0x128   : > { %v3503_v0 = vpop.permute.xlu1 %480  ;;  %v3505_v1 = vpop.permute.xlu0 %478 }
 0x12a   : > { %1162 = vrot.lane.b32.xlu1 %v3401_v47, %s3138_s22  ;;  %1160 = vrot.lane.b32.xlu0 %v3397_v46, %s3138_s22  ;;  %s3627_s22 = sld [smem:[#allocation4 + $0x2]] }
 0x12c   : > { %v3509_v2 = vpop.permute.xlu1 %525  ;;  %v3511_v3 = vpop.permute.xlu0 %523 }
 0x12e   : > { %1200 = vrot.lane.b32.xlu1 %v3415_v51, %s3139_s6  ;;  %1198 = vrot.lane.b32.xlu0 %v3410_v50, %s3139_s6 }
 0x130   : > { %v3515_v4 = vpop.permute.xlu1 %570  ;;  %v3517_v5 = vpop.permute.xlu0 %568 }
 0x132   : > { %1207 = vrot.lane.b32.xlu1 %v3401_v47, %s3139_s6  ;;  %1205 = vrot.lane.b32.xlu0 %v3397_v46, %s3139_s6  ;;  %s3629_s6 = sld [smem:[#allocation4 + $0x3]] }
 0x134   : > { %v3521_v6 = vpop.permute.xlu1 %577  ;;  %v3523_v7 = vpop.permute.xlu0 %575 }
 0x136   : > { %1245 = vrot.lane.b32.xlu1 %v3415_v51, %s3140_s7  ;;  %1243 = vrot.lane.b32.xlu0 %v3410_v50, %s3140_s7 }
 0x138   : > { %v3527_v8 = vpop.permute.xlu1 %615  ;;  %v3529_v9 = vpop.permute.xlu0 %613 }
 0x13a   : > { %1252 = vrot.lane.b32.xlu1 %v3401_v47, %s3140_s7  ;;  %1250 = vrot.lane.b32.xlu0 %v3397_v46, %s3140_s7  ;;  %s3631_s7 = sld [smem:[#allocation4 + $0x4]] }
 0x13c   : > { %v3533_v10 = vpop.permute.xlu1 %622  ;;  %v3535_v12 = vpop.permute.xlu0 %620 }
 0x13e   : > { %1290 = vrot.lane.b32.xlu1 %v3415_v51, %s3141_s8  ;;  %1288 = vrot.lane.b32.xlu0 %v3410_v50, %s3141_s8 }
 0x140   : > { %v3539_v13 = vpop.permute.xlu1 %660  ;;  %v3541_v14 = vpop.permute.xlu0 %658 }
 0x142   : > { %1297 = vrot.lane.b32.xlu1 %v3401_v47, %s3141_s8  ;;  %1295 = vrot.lane.b32.xlu0 %v3397_v46, %s3141_s8  ;;  %s3634_s8 = sld [smem:[#allocation4 + $0x35]] }
 0x144   : > { %v3545_v15 = vpop.permute.xlu1 %667  ;;  %v3547_v16 = vpop.permute.xlu0 %665 }
 0x146   : > { %1335 = vrot.lane.b32.xlu1 %v3415_v51, %s3142_s10  ;;  %1333 = vrot.lane.b32.xlu0 %v3410_v50, %s3142_s10 }
 0x148   : > { %v3551_v17 = vpop.permute.xlu1 %705  ;;  %v3553_v18 = vpop.permute.xlu0 %703 }
 0x14a   : > { %1342 = vrot.lane.b32.xlu1 %v3401_v47, %s3142_s10  ;;  %1340 = vrot.lane.b32.xlu0 %v3397_v46, %s3142_s10  ;;  %s3637_s10 = sld [smem:[#allocation4 + $0x5]] }
 0x14c   : > { %v3557_v19 = vpop.permute.xlu1 %712  ;;  %v3559_v20 = vpop.permute.xlu0 %710 }
 0x14e   : > { %1380 = vrot.lane.b32.xlu1 %v3415_v51, %s3143_s27  ;;  %1378 = vrot.lane.b32.xlu0 %v3410_v50, %s3143_s27 }
 0x150   : > { %v3563_v21 = vpop.permute.xlu1 %750  ;;  %v3565_v22 = vpop.permute.xlu0 %748 }
 0x151   : > { %5280 = vst [vmem:[#allocation29_spill] sm:$0xff] %v3563_v21  ;;  %5281 = vst [vmem:[#allocation30_spill] sm:$0xff] %v3565_v22 }
 0x152   : > { %1387 = vrot.lane.b32.xlu1 %v3401_v47, %s3143_s27  ;;  %1385 = vrot.lane.b32.xlu0 %v3397_v46, %s3143_s27  ;;  %s3639_s27 = sld [smem:[#allocation4 + $0x36]] }
 0x154   : > { %v3569_v23 = vpop.permute.xlu1 %757  ;;  %v3571_v24 = vpop.permute.xlu0 %755 }
 0x155   : > { %5282 = vst [vmem:[#allocation31_spill] sm:$0xff] %v3569_v23  ;;  %5283 = vst [vmem:[#allocation32_spill] sm:$0xff] %v3571_v24  ;;  %v444_v23 = vsel %vm437_vm3, %v3467_v52, %v3481_v57 }
 0x156   : > { %1425 = vrot.lane.b32.xlu1 %v3415_v51, %s3144_s26  ;;  %1423 = vrot.lane.b32.xlu0 %v3410_v50, %s3144_s26 }
 0x158   : > { %v3575_v25 = vpop.permute.xlu1 %795  ;;  %v3577_v26 = vpop.permute.xlu0 %793 }
 0x15a   : > { %1432 = vrot.lane.b32.xlu1 %v3401_v47, %s3144_s26  ;;  %1430 = vrot.lane.b32.xlu0 %v3397_v46, %s3144_s26  ;;  %s3645_s26 = sld [smem:[#allocation4 + $0x6]] }
 0x15c   : > { %v3581_v27 = vpop.permute.xlu1 %802  ;;  %v3583_v28 = vpop.permute.xlu0 %800 }
 0x15e   : > { %1481 = vrot.lane.b32.xlu1 %v3415_v51, %s3145_s19  ;;  %1479 = vrot.lane.b32.xlu0 %v3410_v50, %s3145_s19 }
 0x160   : > { %v3587_v29 = vpop.permute.xlu1 %840  ;;  %v3589_v30 = vpop.permute.xlu0 %838 }
 0x162   : > { %1488 = vrot.lane.b32.xlu1 %v3401_v47, %s3145_s19  ;;  %1486 = vrot.lane.b32.xlu0 %v3397_v46, %s3145_s19  ;;  %s3647_s19 = sld [smem:[#allocation4 + $0x37]] }
 0x164   : > { %v3593_v31 = vpop.permute.xlu1 %847  ;;  %v3595_v32 = vpop.permute.xlu0 %845 }
 0x166   : > { %1526 = vrot.lane.b32.xlu1 %v3415_v51, %s3146_s18  ;;  %1524 = vrot.lane.b32.xlu0 %v3410_v50, %s3146_s18 }
 0x168   : > { %v3599_v33 = vpop.permute.xlu1 %885  ;;  %v3601_v35 = vpop.permute.xlu0 %883 }
 0x169   : > { %5284 = vst [vmem:[#allocation33_spill] sm:$0xff] %v3599_v33  ;;  %5285 = vst [vmem:[#allocation34_spill] sm:$0xff] %v3601_v35  ;;  %v384_v33 = vsel %vm382_vm2, %v3493_v61, %v3487_v59  ;;  %v439_v59 = vsel %vm437_vm3, %v3497_v62, %v3499_v63  ;;  %v483_v61 = vsel %vm482_vm4, %v3505_v1, %v3503_v0  ;;  %v5297_v35 = vstv %s3614_s24  ;;  %s3825_s24 = sld [smem:[#allocation4 + $0xd]] }
 0x16a   : > { %1533 = vrot.lane.b32.xlu1 %v3401_v47, %s3146_s18  ;;  %1531 = vrot.lane.b32.xlu0 %v3397_v46, %s3146_s18  ;;  %s3652_s18 = sld [smem:[#allocation4 + $0x7]] }
 0x16c   : > { %v3605_v36 = vpop.permute.xlu1 %892  ;;  %v3607_v37 = vpop.permute.xlu0 %890 }
 0x16d   : > { %5286 = vst [vmem:[#allocation35_spill] sm:$0xff] %v3605_v36  ;;  %5287 = vst [vmem:[#allocation36_spill] sm:$0xff] %v3607_v37 }
 0x16e   : > { %1571 = vrot.lane.b32.xlu1 %v3415_v51, %s3147_s29  ;;  %1569 = vrot.lane.b32.xlu0 %v3410_v50, %s3147_s29 }
 0x170   : > { %v3621_v38 = vpop.permute.xlu1 %930  ;;  %v3623_v40 = vpop.permute.xlu0 %928 }
 0x171   : > { %5288 = vst [vmem:[#allocation37_spill] sm:$0xff] %v3621_v38  ;;  %5289 = vst [vmem:[#allocation38_spill] sm:$0xff] %v3623_v40  ;;  %v405_v40 = vstv %s3619_s4  ;;  %v450_v38 = vstv %s3625_s20  ;;  %s3782_s4 = sld [smem:[#allocation4 + $0xb]]  ;;  %s3784_s20 = sld [smem:[#allocation4 + $0x3c]] }
 0x172   : > { %1578 = vrot.lane.b32.xlu1 %v3401_v47, %s3147_s29  ;;  %1576 = vrot.lane.b32.xlu0 %v3397_v46, %s3147_s29  ;;  %s3654_s29 = sld [smem:[#allocation4 + $0x38]] }
 0x174   : > { %v3641_v41 = vpop.permute.xlu1 %937  ;;  %v3643_v42 = vpop.permute.xlu0 %935 }
 0x175   : > { %5290 = vst [vmem:[#allocation39_spill] sm:$0xff] %v3641_v41  ;;  %5291 = vst [vmem:[#allocation40_spill] sm:$0xff] %v3643_v42  ;;  %v495_v41 = vstv %s3627_s22  ;;  %s3150_s22 = smov 113  }
 0x176   : > { %1616 = vrot.lane.b32.xlu1 %v3415_v51, %s3148_s0  ;;  %1614 = vrot.lane.b32.xlu0 %v3410_v50, %s3148_s0  ;;  %v497_v22 = vmul.f32 %v495_v41, %v483_v61 }
 0x178   : > { %v3666_v11 = vpop.permute.xlu1 %975  ;;  %v3668_v44 = vpop.permute.xlu0 %973 }
 0x179   : > { %5292 = vst [vmem:[#allocation41_spill] sm:$0xff] %v3666_v11  ;;  %5293 = vst [vmem:[#allocation42_spill] sm:$0xff] %v3668_v44  ;;  %v540_v11 = vstv %s3629_s6  ;;  %s3792_s6 = sld [smem:[#allocation4 + $0xc]] }
 0x17a   : > { %1623 = vrot.lane.b32.xlu1 %v3401_v47, %s3148_s0  ;;  %1621 = vrot.lane.b32.xlu0 %v3397_v46, %s3148_s0  ;;  %s3149_s0 = smov 114  }
 0x17c   : > { %v3682_v42 = vpop.permute.xlu1 %982  ;;  %v3684_v44 = vpop.permute.xlu0 %980 }
 0x17d   : > { %5294 = vst [vmem:[#allocation43_spill] sm:$0xff] %v3682_v42  ;;  %5295 = vst [vmem:[#allocation44_spill] sm:$0xff] %v3684_v44  ;;  %v401_v42 = vsel %vm382_vm2, %v3475_v55, %v3469_v53  ;;  %v410_v44 = vmul.f32 %v408_v45, %v400_v49  ;;  %v445_v49 = vsel %vm437_vm3, %v3481_v57, %v3467_v52  ;;  %vm932_vm2 = vcmp.lt.s32.totalorder %v3650_v43, 30 }
 0x17e   : > { %1661 = vrot.lane.b32.xlu1 %v3415_v51, %s3149_s0  ;;  %1659 = vrot.lane.b32.xlu0 %v3410_v50, %s3149_s0  ;;  %v409_v55 = vmul.f32 %v408_v45, %v401_v42  ;;  %v438_v42 = vsel %vm437_vm3, %v3499_v63, %v3497_v62  ;;  %v489_v52 = vsel %vm482_vm4, %v3473_v54, %v3485_v58  ;;  %vm1157_vm3 = vcmp.lt.s32.totalorder %v3650_v43, 16 }
 0x17f   : > { %v490_v57 = vsel %vm482_vm4, %v3485_v58, %v3473_v54  ;;  %v484_v62 = vsel %vm482_vm4, %v3503_v0, %v3505_v1  ;;  %v406_v63 = vmul.f32 %v405_v40, %v384_v33  ;;  %v407_v45 = vmul.f32 %v405_v40, %v383_v39 }
 0x180   : > { %v3711_v21 = vpop.permute.xlu1 %1020  ;;  %v3713_v53 = vpop.permute.xlu0 %1018  ;;  %v528_v54 = vsel %vm527_vm5, %v3511_v3, %v3509_v2  ;;  %v529_v58 = vsel %vm527_vm5, %v3509_v2, %v3511_v3  ;;  %v534_v39 = vsel %vm527_vm5, %v3479_v56, %v3491_v60  ;;  %v535_v1 = vsel %vm527_vm5, %v3491_v60, %v3479_v56 }
 0x181   : > { %5296 = vst [vmem:[#allocation45_spill] sm:$0xff] %v3713_v53  ;;  %v451_v33 = vmul.f32 %v450_v38, %v439_v59  ;;  %v452_v40 = vmul.f32 %v450_v38, %v438_v42  ;;  %v454_v2 = vmul.f32 %v453_v48, %v445_v49  ;;  %v455_v3 = vmul.f32 %v453_v48, %v444_v23 }
 0x182   : > { %1668 = vrot.lane.b32.xlu1 %v3401_v47, %s3149_s0  ;;  %1666 = vrot.lane.b32.xlu0 %v3397_v46, %s3149_s0  ;;  %v496_v36 = vmul.f32 %v495_v41, %v484_v62  ;;  %v499_v24 = vmul.f32 %v5297_v35, %v490_v57  ;;  %v5298_v53 = vmov %v5297_v35  ;;  %v541_v60 = vmul.f32 %v540_v11, %v529_v58  ;;  %s3794_s0 = sld [smem:[#allocation4 + $0x3d]] }
 0x183   : > { %v500_v56 = vmul.f32 %v5298_v53, %v489_v52  ;;  %v542_v38 = vmul.f32 %v540_v11, %v528_v54  ;;  %v5299_v23 = vstv %s3617_s30  ;;  %v3802_v42 = vadd.f32 %v409_v55, %v406_v63  ;;  %s3827_s30 = sld [smem:[#allocation4 + $0x3e]] }
 0x184   : > { %v3770_v37 = vpop.permute.xlu1 %1027  ;;  %v3772_v0 = vpop.permute.xlu0 %1025  ;;  %v544_v41 = vmul.f32 %v5299_v23, %v535_v1  ;;  %v5300_v48 = vmov %v5299_v23  ;;  %v3804_v35 = vadd.f32 %v410_v44, %v407_v45  ;;  %v456_v59 = vadd.f32 %v454_v2, %v451_v33 }
 0x185   : > { %v545_v49 = vmul.f32 %v5300_v48, %v534_v39  ;;  %v457_v52 = vadd.f32 %v455_v3, %v452_v40  ;;  %v579_v57 = vsel %vm572_vm6, %v3523_v7, %v3521_v6  ;;  %v580_v44 = vsel %vm572_vm6, %v3521_v6, %v3523_v7 }
 0x186   : > { %1706 = vrot.lane.b32.xlu1 %v3415_v51, %s3150_s22  ;;  %1704 = vrot.lane.b32.xlu0 %v3410_v50, %s3150_s22  ;;  %v3819_v55 = vadd.f32 %v499_v24, %v496_v36  ;;  %v3821_v61 = vadd.f32 %v500_v56, %v497_v22  ;;  %v855_v62 = vstv %s3739_s28  ;;  %v858_v63 = vstv %s3741_s21  ;;  %s4215_s28 = sld [smem:[#allocation4 + $0x4a]] }
 0x187   : > { %v3831_v45 = vadd.f32 %v544_v41, %v541_v60  ;;  %v3833_v54 = vadd.f32 %v545_v49, %v542_v38  ;;  %v573_v6 = vsel %vm572_vm6, %v3517_v5, %v3515_v4  ;;  %v574_v7 = vsel %vm572_vm6, %v3515_v4, %v3517_v5 }
 0x188   : > { %v3807_v11 = vpop.permute.xlu1 %1065  ;;  %v3809_v53 = vpop.permute.xlu0 %1063  ;;  %v5301_v22 = vstv %s3634_s8  ;;  %v624_v39 = vsel %vm617_vm7, %v3535_v12, %v3533_v10  ;;  %v625_v1 = vsel %vm617_vm7, %v3533_v10, %v3535_v12  ;;  %v415_v33 = vcombine.low %v3802_v42, %v3804_v35  ;;  %s3867_s8 = sld [smem:[#allocation4 + $0x3f]] }
 0x189   : > { %v589_v24 = vmul.f32 %v5301_v22, %v580_v44  ;;  %v5302_v36 = vmov %v5301_v22  ;;  %v460_v40 = vcombine.low %v456_v59, %v457_v52  ;;  %v900_v2 = vstv %s3782_s4  ;;  %s3157_s4 = smov 97  }
 0x18a   : > { %1713 = vrot.lane.b32.xlu1 %v3401_v47, %s3150_s22  ;;  %1711 = vrot.lane.b32.xlu0 %v3397_v46, %s3150_s22  ;;  %v590_v58 = vmul.f32 %v5302_v36, %v579_v57  ;;  %v903_v3 = vstv %s3784_s20  ;;  %s3869_s22 = sld [smem:[#allocation4 + $0xf]]  ;;  %v5303_v10 = vstv %s3631_s7  ;;  %v618_v38 = vsel %vm617_vm7, %v3529_v9, %v3527_v8  ;;  %s3895_s7 = sld [smem:[#allocation4 + $0x10]] }
 0x18b   : > { %v586_v12 = vmul.f32 %v5303_v10, %v574_v7  ;;  %v5304_v56 = vmov %v5303_v10  ;;  %v619_v23 = vsel %vm617_vm7, %v3527_v8, %v3529_v9  ;;  %v5305_v41 = vstv %s3639_s27  ;;  %s3907_s27 = sld [smem:[#allocation4 + $0x11]]  ;;  %s4631_s20 = sld [smem:[#allocation4 + $0x4c]] }
 0x18c   : > { %v3859_v4 = vpop.permute.xlu1 %1072  ;;  %v3861_v5 = vpop.permute.xlu0 %1070  ;;  %v587_v60 = vmul.f32 %v5304_v56, %v573_v6  ;;  %v634_v48 = vmul.f32 %v5305_v41, %v625_v1  ;;  %v5306_v49 = vmov %v5305_v41  ;;  %v505_v8 = vcombine.low %v3819_v55, %v3821_v61 }
 0x18d   : > { %v635_v42 = vmul.f32 %v5306_v49, %v624_v39  ;;  %v550_v9 = vcombine.low %v3831_v45, %v3833_v54  ;;  %v591_v52 = vadd.f32 %v589_v24, %v586_v12  ;;  %v5310_v7 = vstv %s3637_s10  ;;  %s5312_s10 = smov 112   ;;  %v5338_v24 = vld [vmem:[#allocation42_spill] sm:$0xff] }
 0x18e   : > { %1751 = vrot.lane.b32.xlu1 %v3415_v51, %s5231_s13  ;;  %1749 = vrot.lane.b32.xlu0 %v3410_v50, %s5231_s13  ;;  %v592_v57 = vadd.f32 %v590_v58, %v587_v60  ;;  %s3909_s13 = sld [smem:[#allocation4 + $0x42]]  ;;  %v631_v22 = vmul.f32 %v5310_v7, %v619_v23  ;;  %v5311_v36 = vmov %v5310_v7  ;;  %v669_v55 = vsel %vm662_vm8, %v3547_v16, %v3545_v15 }
 0x18f   : > { %v632_v39 = vmul.f32 %v5311_v36, %v618_v38  ;;  %v670_v61 = vsel %vm662_vm8, %v3545_v15, %v3547_v16  ;;  %v422_v45 = vrot.slane %v415_v33, %v3382_v34  ;;  %v467_v54 = vrot.slane %v460_v40, %v3382_v34 }
 0x190   : > { %5307 = sst [smem:[#allocation46_spill]] %s3895_s7  ;;  %v3903_v44 = vpop.permute.xlu1 %1110  ;;  %v3905_v6 = vpop.permute.xlu0 %1108  ;;  %v636_v15 = vadd.f32 %v634_v48, %v631_v22  ;;  %v663_v1 = vsel %vm662_vm8, %v3541_v14, %v3539_v13  ;;  %v664_v33 = vsel %vm662_vm8, %v3539_v13, %v3541_v14  ;;  %v512_v40 = vrot.slane %v505_v8, %v3382_v34  ;;  %s4004_s7 = sld [smem:[#allocation4 + $0x16]]  ;;  %v5337_v14 = vld [vmem:[#allocation41_spill] sm:$0xff] }
 0x191   : > { %5309 = sst [smem:[#allocation48_spill]] %s3907_s27  ;;  %v637_v16 = vadd.f32 %v635_v42, %v632_v39  ;;  %v5313_v10 = vstv %s3647_s19  ;;  %v557_v41 = vrot.slane %v550_v9, %v3382_v34  ;;  %v595_v13 = vcombine.low %v591_v52, %v592_v57  ;;  %v404_v42 = vld [vmem:[#allocation8] ss:$8 sm:$0x3]  ;;  %s5240_s19 = smov 111  }
 0x192   : > { %1758 = vrot.lane.b32.xlu1 %v3401_v47, %s5312_s10  ;;  %1756 = vrot.lane.b32.xlu0 %v3397_v46, %s5312_s10  ;;  %v679_v12 = vmul.f32 %v5313_v10, %v670_v61  ;;  %v5314_v56 = vmov %v5313_v10  ;;  %s3964_s10 = sld [smem:[#allocation4 + $0x45]]  ;;  %v429_v8 = vrot.slane %v422_v45, %v3382_v34  ;;  %v5315_v7 = vstv %s3645_s26  ;;  %s3981_s26 = sld [smem:[#allocation4 + $0x46]]  ;;  %v449_v45 = vld [vmem:[#allocation8 + $0x1] ss:$8 sm:$0x3] }
 0x193   : > { %v680_v60 = vmul.f32 %v5314_v56, %v669_v55  ;;  %v676_v22 = vmul.f32 %v5315_v7, %v664_v33  ;;  %v5316_v36 = vmov %v5315_v7  ;;  %v474_v9 = vrot.slane %v467_v54, %v3382_v34  ;;  %v539_v56 = vld [vmem:[#allocation8 + $0x3] ss:$8 sm:$0x3]  ;;  %s4006_s27 = sld [smem:[#allocation4 + $0x47]]  ;;  %s5362_s21 = sld [smem:[#allocation48_spill]] }
 0x194   : > { %v3954_v23 = vpop.permute.xlu1 %1117  ;;  %v3962_v49 = vpop.permute.xlu0 %1115  ;;  %v677_v39 = vmul.f32 %v5316_v36, %v663_v1  ;;  %v640_v52 = vcombine.low %v636_v15, %v637_v16  ;;  %v494_v1 = vld [vmem:[#allocation8 + $0x2] ss:$8 sm:$0x3]  ;;  %v519_v33 = vrot.slane %v512_v40, %v3382_v34  ;;  %v564_v7 = vrot.slane %v557_v41, %v3382_v34 }
 0x195   : > { %v681_v10 = vadd.f32 %v679_v12, %v676_v22  ;;  %v602_v36 = vrot.slane %v595_v13, %v3382_v34  ;;  %v3996_v40 = vmul.f32 %v429_v8, %v404_v42  ;;  %v4008_v13 = vmul.f32 %v474_v9, %v449_v45 }
 0x196   : > { %1796 = vrot.lane.b32.xlu1 %v3415_v51, %s5240_s19  ;;  %1794 = vrot.lane.b32.xlu0 %v3410_v50, %s5240_s19  ;;  %v682_v54 = vadd.f32 %v680_v60, %v677_v39  ;;  %s3994_s19 = sld [smem:[#allocation4 + $0x18]]  ;;  %v647_v22 = vrot.slane %v640_v52, %v3382_v34  ;;  %v714_v42 = vsel %vm707_vm9, %v3559_v20, %v3557_v19  ;;  %v5325_v38 = vstv %s3662_s9  ;;  %s4166_s9 = sld [smem:[#allocation4 + $0x17]] }
 0x197   : > { %v715_v8 = vsel %vm707_vm9, %v3557_v19, %v3559_v20  ;;  %v4021_v39 = vmul.f32 %v519_v33, %v494_v1  ;;  %v709_v52 = vsel %vm707_vm9, %v3551_v17, %v3553_v18  ;;  %v4030_v12 = vmul.f32 %v564_v7, %v539_v56  ;;  %v584_v33 = vld [vmem:[#allocation8 + $0x4] ss:$8 sm:$0x3] }
 0x198   : > { %v3984_v15 = vpop.permute.xlu1 %1155  ;;  %v3990_v61 = vpop.permute.xlu0 %1153  ;;  %v685_v9 = vcombine.low %v681_v10, %v682_v54  ;;  %v609_v60 = vrot.slane %v602_v36, %v3382_v34  ;;  %v708_v19 = vsel %vm707_vm9, %v3553_v18, %v3551_v17  ;;  %v5318_v10 = vstv %s3654_s29  ;;  %s4199_s29 = sld [smem:[#allocation4 + $0x19]] }
 0x199   : > { %v724_v54 = vmul.f32 %v5318_v10, %v715_v8  ;;  %v5319_v56 = vmov %v5318_v10  ;;  %v804_v36 = vsel %vm797_vm10, %v3583_v28, %v3581_v27  ;;  %v805_v17 = vsel %vm797_vm10, %v3581_v27, %v3583_v28 }
 0x19a   : > { %1803 = vrot.lane.b32.xlu1 %v3401_v47, %s5317_s17  ;;  %1801 = vrot.lane.b32.xlu0 %v3397_v46, %s5317_s17  ;;  %v725_v7 = vmul.f32 %v5319_v56, %v714_v42  ;;  %s3153_s17 = smov 110   ;;  %v654_v18 = vrot.slane %v647_v22, %v3382_v34  ;;  %v5320_v8 = vstv %s3652_s18  ;;  %v4062_v27 = vrot.slane %v685_v9, %v3382_v34  ;;  %v629_v9 = vld [vmem:[#allocation8 + $0x5] ss:$8 sm:$0x3]  ;;  %s4187_s18 = sld [smem:[#allocation4 + $0x48]] }
 0x19b   : > { %v721_v42 = vmul.f32 %v5320_v8, %v709_v52  ;;  %v5321_v28 = vmov %v5320_v8  ;;  %v798_v22 = vsel %vm797_vm10, %v3577_v26, %v3575_v25  ;;  %v799_v52 = vsel %vm797_vm10, %v3575_v25, %v3577_v26 }
 0x19c   : > { %v4027_v45 = vpop.permute.xlu1 %1162  ;;  %v4038_v20 = vpop.permute.xlu0 %1160  ;;  %v722_v35 = vmul.f32 %v5321_v28, %v708_v19  ;;  %v4076_v1 = vmul.f32 %v609_v60, %v584_v33  ;;  %v5323_v10 = vstv %s3664_s16  ;;  %v811_v25 = vmul.f32 %v5325_v38, %v799_v52  ;;  %v5330_v52 = vld [vmem:[#allocation36_spill] sm:$0xff]  ;;  %s3154_s16 = smov 109  }
 0x19d   : > { %v814_v56 = vmul.f32 %v5323_v10, %v805_v17  ;;  %v5324_v41 = vmov %v5323_v10  ;;  %v726_v57 = vadd.f32 %v724_v54, %v721_v42  ;;  %v5326_v26 = vmov %v5325_v38 }
 0x19e   : > { %1841 = vrot.lane.b32.xlu1 %v3415_v51, %s3153_s17  ;;  %1839 = vrot.lane.b32.xlu0 %v3410_v50, %s3153_s17  ;;  %5322 = vst [vmem:[#allocation49_spill] sm:$0xff] %v4076_v1  ;;  %v815_v19 = vmul.f32 %v5324_v41, %v804_v36  ;;  %v727_v59 = vadd.f32 %v725_v7, %v722_v35  ;;  %vm1247_vm4 = vcmp.lt.s32.totalorder %v3650_v43, 14  ;;  %vm1112_vm5 = vcmp.lt.s32.totalorder %v3650_v43, 17 }
 0x19f   : > { %v812_v60 = vmul.f32 %v5326_v26, %v798_v22  ;;  %v849_v41 = vsel %vm842_vm11, %v3595_v32, %v3593_v31  ;;  %v850_v35 = vsel %vm842_vm11, %v3593_v31, %v3595_v32  ;;  %v4101_v33 = vmul.f32 %v654_v18, %v629_v9  ;;  %v5327_v31 = vld [vmem:[#allocation29_spill] sm:$0xff]  ;;  %v5328_v32 = vld [vmem:[#allocation30_spill] sm:$0xff]  ;;  %v5329_v22 = vld [vmem:[#allocation35_spill] sm:$0xff] }
 0x1a0   : > { %v4074_v8 = vpop.permute.xlu1 %1200  ;;  %v4082_v28 = vpop.permute.xlu0 %1198  ;;  %v699_v38 = vrot.slane %v4062_v27, %v3382_v34  ;;  %v843_v54 = vsel %vm842_vm11, %v3589_v30, %v3587_v29  ;;  %v844_v7 = vsel %vm842_vm11, %v3587_v29, %v3589_v30  ;;  %v753_v17 = vsel %vm752_vm12, %v5328_v32, %v5327_v31 }
 0x1a1   : > { %v754_v18 = vsel %vm752_vm12, %v5327_v31, %v5328_v32  ;;  %v816_v42 = vadd.f32 %v814_v56, %v811_v25  ;;  %v817_v10 = vadd.f32 %v815_v19, %v812_v60  ;;  %v859_v29 = vmul.f32 %v858_v63, %v850_v35  ;;  %v5331_v19 = vld [vmem:[#allocation31_spill] sm:$0xff]  ;;  %v5333_v35 = vld [vmem:[#allocation33_spill] sm:$0xff]  ;;  %v5334_v31 = vld [vmem:[#allocation34_spill] sm:$0xff] }
 0x1a2   : > { %1848 = vrot.lane.b32.xlu1 %v3401_v47, %s3153_s17  ;;  %1846 = vrot.lane.b32.xlu0 %v3397_v46, %s3153_s17  ;;  %v860_v30 = vmul.f32 %v858_v63, %v849_v41  ;;  %v894_v9 = vsel %vm887_vm13, %v5330_v52, %v5329_v22  ;;  %v895_v26 = vsel %vm887_vm13, %v5329_v22, %v5330_v52  ;;  %v5332_v63 = vld [vmem:[#allocation32_spill] sm:$0xff]  ;;  %vm1337_vm6 = vcmp.lt.s32.totalorder %v3650_v43, 3  ;;  %s4762_s17 = sld [smem:[#allocation4 + $0x50]] }
 0x1a3   : > { %v730_v56 = vcombine.low %v726_v57, %v727_v59  ;;  %v759_v25 = vsel %vm752_vm12, %v5332_v63, %v5331_v19  ;;  %v856_v60 = vmul.f32 %v855_v62, %v844_v7  ;;  %v857_v41 = vmul.f32 %v855_v62, %v843_v54  ;;  %v5335_v57 = vld [vmem:[#allocation43_spill] sm:$0xff]  ;;  %v5336_v22 = vld [vmem:[#allocation44_spill] sm:$0xff] }
 0x1a4   : > { %v4113_v36 = vpop.permute.xlu1 %1207  ;;  %v4123_v27 = vpop.permute.xlu0 %1205  ;;  %v888_v32 = vsel %vm887_vm13, %v5334_v31, %v5333_v35  ;;  %v889_v59 = vsel %vm887_vm13, %v5333_v35, %v5334_v31  ;;  %v984_v52 = vsel %vm977_vm14, %v5336_v22, %v5335_v57  ;;  %v985_v62 = vsel %vm977_vm14, %v5335_v57, %v5336_v22  ;;  %v674_v7 = vld [vmem:[#allocation8 + $0x6] ss:$8 sm:$0x3] }
 0x1a5   : > { %v760_v35 = vsel %vm752_vm12, %v5331_v19, %v5332_v63  ;;  %v820_v31 = vcombine.low %v816_v42, %v817_v10  ;;  %v904_v16 = vmul.f32 %v903_v3, %v895_v26  ;;  %v905_v48 = vmul.f32 %v903_v3, %v894_v9 }
 0x1a6   : > { %1886 = vrot.lane.b32.xlu1 %v3415_v51, %s3154_s16  ;;  %1884 = vrot.lane.b32.xlu0 %v3410_v50, %s3154_s16  ;;  %v861_v57 = vadd.f32 %v859_v29, %v856_v60  ;;  %v862_v22 = vadd.f32 %v860_v30, %v857_v41  ;;  %v978_v58 = vsel %vm977_vm14, %v5338_v24, %v5337_v14  ;;  %v5339_v29 = vstv %s3827_s30  ;;  %s3162_s30 = smov 83  }
 0x1a7   : > { %v979_v42 = vsel %vm977_vm14, %v5337_v14, %v5338_v24  ;;  %v901_v3 = vmul.f32 %v900_v2, %v889_v59  ;;  %v902_v10 = vmul.f32 %v900_v2, %v888_v32  ;;  %v994_v30 = vmul.f32 %v5339_v29, %v985_v62 }
 0x1a8   : > { %v4164_v54 = vpop.permute.xlu1 %1245  ;;  %v4176_v55 = vpop.permute.xlu0 %1243  ;;  %v5340_v9 = vmov %v5339_v29  ;;  %v701_v24 = vmul.f32 %v699_v38, %v674_v7  ;;  %v737_v14 = vrot.slane %v730_v56, %v3382_v34  ;;  %v5341_v19 = vstv %s3659_s2  ;;  %s3155_s2 = smov 99  }
 0x1a9   : > { %v995_v26 = vmul.f32 %v5340_v9, %v984_v52  ;;  %v769_v63 = vmul.f32 %v5341_v19, %v760_v35  ;;  %v5342_v60 = vmov %v5341_v19  ;;  %v906_v32 = vadd.f32 %v904_v16, %v901_v3 }
 0x1aa   : > { %1893 = vrot.lane.b32.xlu1 %v3401_v47, %s3154_s16  ;;  %1891 = vrot.lane.b32.xlu0 %v3397_v46, %s3154_s16  ;;  %v770_v41 = vmul.f32 %v5342_v60, %v759_v25  ;;  %v907_v59 = vadd.f32 %v905_v48, %v902_v10  ;;  %v5343_v52 = vstv %s3825_s24  ;;  %v5345_v38 = vstv %s3657_s1  ;;  %s3156_s1 = smov 98   ;;  %s4681_s24 = sld [smem:[#allocation4 + $0x4d]] }
 0x1ab   : > { %v991_v62 = vmul.f32 %v5343_v52, %v979_v42  ;;  %v5344_v29 = vmov %v5343_v52  ;;  %v766_v56 = vmul.f32 %v5345_v38, %v754_v18  ;;  %v5346_v7 = vmov %v5345_v38  ;;  %s3165_s16 = smov 80  }
 0x1ac   : > { %v4206_v2 = vpop.permute.xlu1 %1252  ;;  %v992_v9 = vmul.f32 %v5344_v29, %v978_v58  ;;  %v4213_v1 = vpop.permute.xlu0 %1250  ;;  %v767_v35 = vmul.f32 %v5346_v7, %v753_v17  ;;  %v827_v25 = vrot.slane %v820_v31, %v3382_v34  ;;  %v865_v19 = vcombine.low %v861_v57, %v862_v22 }
 0x1ad   : > { %v996_v48 = vadd.f32 %v994_v30, %v991_v62  ;;  %v1029_v58 = vsel %vm1022_vm15, %v3772_v0, %v3770_v37  ;;  %v1030_v18 = vsel %vm1022_vm15, %v3770_v37, %v3772_v0  ;;  %v4234_v17 = vadd.f32 %v4101_v33, %v4008_v13  ;;  %v5347_v37 = vld [vmem:[#allocation45_spill] sm:$0xff] }
 0x1ae   : > { %1931 = vrot.lane.b32.xlu1 %v3415_v51, %s3155_s2  ;;  %v997_v16 = vadd.f32 %v995_v26, %v992_v9  ;;  %1929 = vrot.lane.b32.xlu0 %v3410_v50, %s3155_s2  ;;  %v744_v31 = vrot.slane %v737_v14, %v3382_v34  ;;  %v4237_v57 = vadd.f32 %v769_v63, %v766_v56  ;;  %v719_v26 = vld [vmem:[#allocation8 + $0x7] ss:$8 sm:$0x3]  ;;  %v5348_v14 = vstv %s3867_s8  ;;  %s4708_s8 = sld [smem:[#allocation4 + $0x1d]] }
 0x1af   : > { %v4242_v3 = vadd.f32 %v770_v41, %v767_v35  ;;  %v910_v10 = vcombine.low %v906_v32, %v907_v59  ;;  %v1023_v0 = vsel %vm1022_vm15, %v5347_v37, %v3711_v21  ;;  %v1024_v13 = vsel %vm1022_vm15, %v3711_v21, %v5347_v37 }
 0x1b0   : > { %v4239_v22 = vpop.permute.xlu1 %1290  ;;  %v4253_v33 = vpop.permute.xlu0 %1288  ;;  %v4256_v30 = vadd.f32 %v701_v24, %v4021_v39  ;;  %v1039_v63 = vmul.f32 %v5348_v14, %v1030_v18  ;;  %v5349_v60 = vmov %v5348_v14  ;;  %v834_v59 = vrot.slane %v827_v25, %v3382_v34 }
 0x1b1   : > { %v1040_v41 = vmul.f32 %v5349_v60, %v1029_v58  ;;  %v4266_v21 = vrot.slane %v865_v19, %v3382_v34  ;;  %v1000_v52 = vcombine.low %v996_v48, %v997_v16  ;;  %v5350_v24 = vstv %s3857_s25  ;;  %v809_v19 = vld [vmem:[#allocation8 + $0x11] ss:$8 sm:$0x3]  ;;  %s4353_s25 = sld [smem:[#allocation4 + $0x4b]] }
 0x1b2   : > { %1938 = vrot.lane.b32.xlu1 %v3401_v47, %s3155_s2  ;;  %1936 = vrot.lane.b32.xlu0 %v3397_v46, %s3155_s2  ;;  %v1036_v62 = vmul.f32 %v5350_v24, %v1024_v13  ;;  %v5351_v29 = vmov %v5350_v24  ;;  %v1074_v38 = vsel %vm1067_vm0, %v3861_v5, %v3859_v4  ;;  %v1075_v56 = vsel %vm1067_vm0, %v3859_v4, %v3861_v5  ;;  %v5357_v24 = vld [vmem:[#allocation38_spill] sm:$0xff]  ;;  %s4810_s2 = sld [smem:[#allocation4 + $0x52]] }
 0x1b3   : > { %v1037_v9 = vmul.f32 %v5351_v29, %v1023_v0  ;;  %v4285_v35 = vmul.f32 %v744_v31, %v719_v26  ;;  %v917_v48 = vrot.slane %v910_v10, %v3382_v34  ;;  %v1068_v4 = vsel %vm1067_vm0, %v3809_v53, %v3807_v11  ;;  %v5352_v31 = vld [vmem:[#allocation40_spill] sm:$0xff]  ;;  %v5353_v10 = vld [vmem:[#allocation39_spill] sm:$0xff] }
 0x1b4   : > { %v4283_v7 = vpop.permute.xlu1 %1297  ;;  %v4290_v16 = vpop.permute.xlu0 %1295  ;;  %v1041_v18 = vadd.f32 %v1039_v63, %v1036_v62  ;;  %v1069_v5 = vsel %vm1067_vm0, %v3807_v11, %v3809_v53  ;;  %v940_v0 = vsel %vm932_vm2, %v5353_v10, %v5352_v31  ;;  %v1007_v13 = vrot.slane %v1000_v52, %v3382_v34  ;;  %v5356_v53 = vld [vmem:[#allocation37_spill] sm:$0xff] }
 0x1b5   : > { %v1042_v37 = vadd.f32 %v1040_v41, %v1037_v9  ;;  %v5354_v26 = vstv %s3883_s14  ;;  %v836_v41 = vmul.f32 %v834_v59, %v809_v19  ;;  %v933_v62 = vsel %vm932_vm2, %v5357_v24, %v5356_v53  ;;  %s4346_s14 = sld [smem:[#allocation4 + $0x1a]]  ;;  %v854_v11 = vld [vmem:[#allocation8 + $0x12] ss:$8 sm:$0x3] }
 0x1b6   : > { %1976 = vrot.lane.b32.xlu1 %v3415_v51, %s3156_s1  ;;  %v1084_v14 = vmul.f32 %v5354_v26, %v1075_v56  ;;  %v5355_v63 = vmov %v5354_v26  ;;  %1974 = vrot.lane.b32.xlu0 %v3410_v50, %s3156_s1  ;;  %v939_v52 = vsel %vm932_vm2, %v5352_v31, %v5353_v10  ;;  %v924_v9 = vrot.slane %v917_v48, %v3382_v34 }
 0x1b7   : > { %v1085_v60 = vmul.f32 %v5355_v63, %v1074_v38  ;;  %v934_v59 = vsel %vm932_vm2, %v5356_v53, %v5357_v24  ;;  %v5358_v38 = vstv %s3869_s22  ;;  %v5360_v58 = vstv %s3794_s0  ;;  %s4673_s0 = sld [smem:[#allocation4 + $0x1c]]  ;;  %s4714_s22 = sld [smem:[#allocation4 + $0x4e]] }
 0x1b8   : > { %v4322_v29 = vpop.permute.xlu1 %1335  ;;  %v1081_v56 = vmul.f32 %v5358_v38, %v1069_v5  ;;  %v5359_v19 = vmov %v5358_v38  ;;  %v4333_v63 = vpop.permute.xlu0 %1333  ;;  %v949_v39 = vmul.f32 %v5360_v58, %v940_v0  ;;  %v1045_v32 = vcombine.low %v1041_v18, %v1042_v37 }
 0x1b9   : > { %v1082_v26 = vmul.f32 %v5359_v19, %v1068_v4  ;;  %v1164_v31 = vsel %vm1157_vm3, %v4038_v20, %v4027_v45  ;;  %v1165_v48 = vsel %vm1157_vm3, %v4027_v45, %v4038_v20  ;;  %v899_v4 = vld [vmem:[#allocation8 + $0x13] ss:$8 sm:$0x3]  ;;  %v5361_v5 = vmov %v5360_v58 }
 0x1ba   : > { %1983 = vrot.lane.b32.xlu1 %v3401_v47, %s3156_s1  ;;  %v950_v58 = vmul.f32 %v5361_v5, %v939_v52  ;;  %v1014_v18 = vrot.slane %v1007_v13, %v3382_v34  ;;  %v1086_v37 = vadd.f32 %v1084_v14, %v1081_v56  ;;  %1981 = vrot.lane.b32.xlu0 %v3397_v46, %s3156_s1  ;;  %v5365_v52 = vstv %s3909_s13  ;;  %s5375_s13 = sld [smem:[#allocation46_spill]]  ;;  %s3167_s1 = smov 78  }
 0x1bb   : > { %v1087_v10 = vadd.f32 %v1085_v60, %v1082_v26  ;;  %v1158_v45 = vsel %vm1157_vm3, %v3990_v61, %v3984_v15  ;;  %v1159_v20 = vsel %vm1157_vm3, %v3984_v15, %v3990_v61  ;;  %v1254_v0 = vsel %vm1247_vm4, %v4213_v1, %v4206_v2  ;;  %v989_v15 = vld [vmem:[#allocation8 + $0x15] ss:$8 sm:$0x3] }
 0x1bc   : > { %v1255_v13 = vsel %vm1247_vm4, %v4206_v2, %v4213_v1  ;;  %v1343_v14 = vpop.permute.xlu1 %1342  ;;  %v5363_v60 = vstv %s3792_s6  ;;  %v1174_v38 = vmul.f32 %v5365_v52, %v1165_v48  ;;  %v5366_v56 = vmov %v5365_v52  ;;  %v1341_v26 = vpop.permute.xlu0 %1340  ;;  %s3161_s6 = smov 93  }
 0x1bd   : > { %v946_v53 = vmul.f32 %v5363_v60, %v934_v59  ;;  %v5364_v24 = vmov %v5363_v60  ;;  %v1175_v19 = vmul.f32 %v5366_v56, %v1164_v31  ;;  %vm1202_vm7 = vcmp.lt.s32.totalorder %v3650_v43, 15 }
 0x1be   : > { %v947_v61 = vmul.f32 %v5364_v24, %v933_v62  ;;  %v926_v1 = vmul.f32 %v924_v9, %v899_v4  ;;  %v1052_v2 = vrot.slane %v1045_v32, %v3382_v34  ;;  %v1248_v5 = vsel %vm1247_vm4, %v4176_v55, %v4164_v54  ;;  %2021 = vrot.lane.b32.xlu1 %v3415_v51, %s3157_s4 }
 0x1bf   : > { %v1249_v62 = vsel %vm1247_vm4, %v4164_v54, %v4176_v55  ;;  %v5367_v59 = vstv %s5362_s21  ;;  %v5369_v32 = vstv %s3936_s11  ;;  %2019 = vrot.lane.b32.xlu0 %v3410_v50, %s3157_s4  ;;  %v4400_v52 = vadd.f32 %v949_v39, %v946_v53  ;;  %s3160_s11 = smov 94   ;;  %s3168_s21 = smov 77  }
 0x1c0   : > { %v1171_v31 = vmul.f32 %v5367_v59, %v1159_v20  ;;  %v5368_v9 = vmov %v5367_v59  ;;  %v1264_v4 = vmul.f32 %v5369_v32, %v1255_v13  ;;  %v5370_v60 = vmov %v5369_v32  ;;  %v4404_v42 = vpop.permute.xlu1 %1380 }
 0x1c1   : > { %v1172_v48 = vmul.f32 %v5368_v9, %v1158_v45  ;;  %v1265_v24 = vmul.f32 %v5370_v60, %v1254_v0  ;;  %v4402_v56 = vadd.f32 %v950_v58, %v947_v61  ;;  %v1016_v55 = vmul.f32 %v1014_v18, %v989_v15  ;;  %v4410_v0 = vpop.permute.xlu0 %1378  ;;  %v1034_v61 = vld [vmem:[#allocation8 + $0x16] ss:$8 sm:$0x3] }
 0x1c2   : > { %v1090_v54 = vcombine.low %v1086_v37, %v1087_v10  ;;  %v1176_v25 = vadd.f32 %v1174_v38, %v1171_v31  ;;  %v5371_v45 = vstv %s3934_s3  ;;  %vm1427_vm8 = vcmp.lt.s32.totalorder %v3650_v43, 1  ;;  %2028 = vrot.lane.b32.xlu1 %v3401_v47, %s3157_s4  ;;  %s3158_s3 = smov 96  }
 0x1c3   : > { %v1177_v20 = vadd.f32 %v1175_v19, %v1172_v48  ;;  %v1261_v59 = vmul.f32 %v5371_v45, %v1249_v62  ;;  %v5372_v13 = vmov %v5371_v45  ;;  %v747_v39 = vadd.f32 %v4285_v35, %v4030_v12  ;;  %2026 = vrot.lane.b32.xlu0 %v3397_v46, %s3157_s4  ;;  %s4855_s4 = sld [smem:[#allocation4 + $0x23]] }
 0x1c4   : > { %v1262_v9 = vmul.f32 %v5372_v13, %v1248_v5  ;;  %v837_v58 = vadd.f32 %v836_v41, %v4234_v17  ;;  %v1059_v18 = vrot.slane %v1052_v2, %v3382_v34  ;;  %v1541_v37 = vstv %s4346_s14  ;;  %s4831_s14 = sld [smem:[#allocation4 + $0x22]] }
 0x1c5   : > { %v5373_v10 = vcombine.low %v4237_v57, %v4242_v3  ;;  %v1266_v15 = vadd.f32 %v1264_v4, %v1261_v59  ;;  %v1544_v19 = vstv %s4353_s25  ;;  %v5374_v12 = vrot.slane %v4266_v21, %v3382_v34  ;;  %v1388_v57 = vpop.permute.xlu1 %1387  ;;  %v1386_v21 = vpop.permute.xlu0 %1385  ;;  %s4834_s25 = sld [smem:[#allocation4 + $0x53]] }
 0x1c6   : > { %v1267_v38 = vadd.f32 %v1265_v24, %v1262_v9  ;;  %v4432_v35 = vadd.f32 %v926_v1, %v747_v39  ;;  %v955_v41 = vcombine.low %v4400_v52, %v4402_v56  ;;  %v4436_v2 = vadd.f32 %v1016_v55, %v837_v58  ;;  %2066 = vrot.lane.b32.xlu1 %v3415_v51, %s3158_s3  ;;  %v1079_v9 = vld [vmem:[#allocation8 + $0x17] ss:$8 sm:$0x3]  ;;  %v1540_v52 = vld [vmem:[#allocation8 + $0x32] ss:$8 sm:$0x3] }
 0x1c7   : > { %v4423_v53 = vrot.slane %v5373_v10, %v3382_v34  ;;  %v4430_v17 = vmul.f32 %v5374_v12, %v854_v11  ;;  %v1097_v3 = vrot.slane %v1090_v54, %v3382_v34  ;;  %v1180_v5 = vcombine.low %v1176_v25, %v1177_v20  ;;  %2064 = vrot.lane.b32.xlu0 %v3410_v50, %s3158_s3 }
 0x1c8   : > { %v1344_v62 = vsel %vm1337_vm6, %v1341_v26, %v1343_v14  ;;  %v1345_v31 = vsel %vm1337_vm6, %v1343_v14, %v1341_v26  ;;  %vm1382_vm9 = vcmp.lt.s32.totalorder %v3650_v43, 2  ;;  %v4444_v11 = vmul.f32 %v1059_v18, %v1034_v61 }
 0x1c9   : > { %v4450_v1 = vsel %vm1112_vm5, %v3905_v6, %v3903_v44  ;;  %v1209_v25 = vsel %vm1202_vm7, %v4123_v27, %v4113_v36  ;;  %v1210_v14 = vsel %vm1202_vm7, %v4113_v36, %v4123_v27  ;;  %v1114_v26 = vsel %vm1112_vm5, %v3903_v44, %v3905_v6  ;;  %v1426_v60 = vpop.permute.xlu1 %1425  ;;  %v1424_v13 = vpop.permute.xlu0 %1423 }
 0x1ca   : > { %v1270_v48 = vcombine.low %v1266_v15, %v1267_v38  ;;  %v1338_v32 = vsel %vm1337_vm6, %v4333_v63, %v4322_v29  ;;  %v1339_v36 = vsel %vm1337_vm6, %v4322_v29, %v4333_v63  ;;  %vm1483_vm10 = vcmp.lt.s32.totalorder %v3650_v43, 127  ;;  %2073 = vrot.lane.b32.xlu1 %v3401_v47, %s3158_s3 }
 0x1cb   : > { %v1203_v44 = vsel %vm1202_vm7, %v4082_v28, %v4074_v8  ;;  %v1204_v6 = vsel %vm1202_vm7, %v4074_v8, %v4082_v28  ;;  %v5376_v27 = vstv %s3981_s26  ;;  %v1104_v24 = vrot.slane %v1097_v3, %v3382_v34  ;;  %2071 = vrot.lane.b32.xlu0 %v3397_v46, %s3158_s3  ;;  %s4759_s26 = sld [smem:[#allocation4 + $0x1f]]  ;;  %s4858_s3 = sld [smem:[#allocation4 + $0x54]] }
 0x1cc   : > { %v1354_v4 = vmul.f32 %v5376_v27, %v1345_v31  ;;  %v5377_v29 = vmov %v5376_v27  ;;  %v4489_v55 = vrot.slane %v1180_v5, %v3382_v34  ;;  %v5378_v54 = vstv %s3926_s12  ;;  %s3159_s12 = smov 95  }
 0x1cd   : > { %v1355_v63 = vmul.f32 %v5377_v29, %v1344_v62  ;;  %v1219_v20 = vmul.f32 %v5378_v54, %v1210_v14  ;;  %v5379_v45 = vmov %v5378_v54  ;;  %v5380_v39 = vstv %s5375_s13 }
 0x1ce   : > { %v1220_v59 = vmul.f32 %v5379_v45, %v1209_v25  ;;  %v4497_v8 = vmul.f32 %v5380_v39, %v1114_v26  ;;  %v1119_v28 = vsel %vm1112_vm5, %v3962_v49, %v3954_v23  ;;  %v5381_v58 = vstv %s3979_s5  ;;  %2111 = vrot.lane.b32.xlu1 %v3415_v51, %s3159_s12  ;;  %s4624_s5 = sld [smem:[#allocation4 + $0x1b]] }
 0x1cf   : > { %v1351_v18 = vmul.f32 %v5381_v58, %v1339_v36  ;;  %v5382_v10 = vmov %v5381_v58  ;;  %v1120_v15 = vsel %vm1112_vm5, %v3954_v23, %v3962_v49  ;;  %v5383_v38 = vstv %s3924_s23  ;;  %v1433_v23 = vpop.permute.xlu1 %1432  ;;  %2109 = vrot.lane.b32.xlu0 %v3410_v50, %s3159_s12  ;;  %s5389_s23 = sld [smem:[#allocation47_spill]]  ;;  %v1259_v58 = vld [vmem:[#allocation8 + $0x23] ss:$8 sm:$0x3] }
 0x1d0   : > { %v1352_v61 = vmul.f32 %v5382_v10, %v1338_v32  ;;  %v1216_v12 = vmul.f32 %v5383_v38, %v1204_v6  ;;  %v5384_v3 = vmov %v5383_v38  ;;  %v1277_v62 = vrot.slane %v1270_v48, %v3382_v34 }
 0x1d1   : > { %v1217_v5 = vmul.f32 %v5384_v3, %v1203_v44  ;;  %v1356_v31 = vadd.f32 %v1354_v4, %v1351_v18  ;;  %v1428_v14 = vsel %vm1427_vm8, %v1424_v13, %v1426_v60  ;;  %v1429_v26 = vsel %vm1427_vm8, %v1426_v60, %v1424_v13  ;;  %v1431_v44 = vpop.permute.xlu0 %1430 }
 0x1d2   : > { %v1357_v25 = vadd.f32 %v1355_v63, %v1352_v61  ;;  %v1106_v49 = vmul.f32 %v1104_v24, %v1079_v9  ;;  %v1194_v32 = vrot.slane %v4489_v55, %v3382_v34  ;;  %v1221_v48 = vadd.f32 %v1219_v20, %v1216_v12  ;;  %2118 = vrot.lane.b32.xlu1 %v3401_v47, %s3159_s12 }
 0x1d3   : > { %v1222_v36 = vadd.f32 %v1220_v59, %v1217_v5  ;;  %v1389_v6 = vsel %vm1382_vm9, %v1386_v21, %v1388_v57  ;;  %v1390_v27 = vsel %vm1382_vm9, %v1388_v57, %v1386_v21  ;;  %v1434_v4 = vsel %vm1427_vm8, %v1431_v44, %v1433_v23  ;;  %v1482_v39 = vpop.permute.xlu1 %1481  ;;  %2116 = vrot.lane.b32.xlu0 %v3397_v46, %s3159_s12  ;;  %s4878_s12 = sld [smem:[#allocation4 + $0x55]] }
 0x1d4   : > { %v1435_v29 = vsel %vm1427_vm8, %v1433_v23, %v1431_v44  ;;  %vm1292_vm11 = vcmp.lt.s32.totalorder %v3650_v43, 13  ;;  %v5385_v63 = vstv %s4166_s9  ;;  %v5387_v54 = vstv %s4187_s18  ;;  %s4783_s9 = sld [smem:[#allocation4 + $0x20]]  ;;  %s4786_s18 = sld [smem:[#allocation4 + $0x51]] }
 0x1d5   : > { %v1441_v60 = vmul.f32 %v5385_v63, %v1429_v26  ;;  %v5386_v24 = vmov %v5385_v63  ;;  %v1444_v57 = vmul.f32 %v5387_v54, %v1435_v29  ;;  %v5388_v21 = vmov %v5387_v54  ;;  %v1480_v5 = vpop.permute.xlu0 %1479 }
 0x1d6   : > { %v1442_v55 = vmul.f32 %v5386_v24, %v1428_v14  ;;  %v1445_v20 = vmul.f32 %v5388_v21, %v1434_v4  ;;  %vm1528_vm12 = vcmp.lt.s32.totalorder %v3650_v43, 126  ;;  %v1284_v45 = vrot.slane %v1277_v62, %v3382_v34  ;;  %2156 = vrot.lane.b32.xlu1 %v3415_v51, %s3160_s11 }
 0x1d7   : > { %v1360_v59 = vcombine.low %v1356_v31, %v1357_v25  ;;  %v1383_v13 = vsel %vm1382_vm9, %v4410_v0, %v4404_v42  ;;  %v1384_v9 = vsel %vm1382_vm9, %v4404_v42, %v4410_v0  ;;  %v5390_v18 = vstv %s4006_s27  ;;  %v1169_v25 = vld [vmem:[#allocation8 + $0x21] ss:$8 sm:$0x3]  ;;  %v1489_v24 = vpop.permute.xlu1 %1488  ;;  %2154 = vrot.lane.b32.xlu0 %v3410_v50, %s3160_s11  ;;  %s4736_s27 = sld [smem:[#allocation4 + $0x1e]] }
 0x1d8   : > { %v1399_v10 = vmul.f32 %v5390_v18, %v1390_v27  ;;  %v5391_v61 = vmov %v5390_v18  ;;  %v1446_v12 = vadd.f32 %v1444_v57, %v1441_v60  ;;  %v1447_v3 = vadd.f32 %v1445_v20, %v1442_v55 }
 0x1d9   : > { %v1400_v38 = vmul.f32 %v5391_v61, %v1389_v6  ;;  %v5392_v62 = vstv %s5375_s13  ;;  %v1225_v14 = vcombine.low %v1221_v48, %v1222_v36  ;;  %v1484_v26 = vsel %vm1483_vm10, %v1480_v5, %v1482_v39  ;;  %v1487_v21 = vpop.permute.xlu0 %1486  ;;  %s4875_s13 = sld [smem:[#allocation4 + $0x24]] }
 0x1da   : > { %v1127_v31 = vmul.f32 %v5392_v62, %v4450_v1  ;;  %v1485_v42 = vsel %vm1483_vm10, %v1482_v39, %v1480_v5  ;;  %v5393_v0 = vstv %s5389_s23  ;;  %v5394_v44 = vstv %s4004_s7  ;;  %v1349_v62 = vld [vmem:[#allocation8 + $0x25] ss:$8 sm:$0x3]  ;;  %2163 = vrot.lane.b32.xlu1 %v3401_v47, %s3160_s11  ;;  %s3163_s7 = smov 82   ;;  %s4895_s23 = sld [smem:[#allocation4 + $0x25]] }
 0x1db   : > { %v1129_v23 = vmul.f32 %v5393_v0, %v1120_v15  ;;  %v1396_v6 = vmul.f32 %v5394_v44, %v1384_v9  ;;  %v5395_v27 = vmov %v5394_v44  ;;  %v1450_v29 = vcombine.low %v1446_v12, %v1447_v3  ;;  %v1527_v5 = vpop.permute.xlu1 %1526  ;;  %2161 = vrot.lane.b32.xlu0 %v3397_v46, %s3160_s11  ;;  %s4898_s11 = sld [smem:[#allocation4 + $0x56]] }
 0x1dc   : > { %v1397_v4 = vmul.f32 %v5395_v27, %v1383_v13  ;;  %v1107_v1 = vadd.f32 %v1106_v49, %v4432_v35  ;;  %v5396_v48 = vmov %v5393_v0  ;;  %v1286_v63 = vmul.f32 %v1284_v45, %v1259_v58  ;;  %v1439_v13 = vld [vmem:[#allocation8 + $0x27] ss:$8 sm:$0x3] }
 0x1dd   : > { %v1130_v36 = vmul.f32 %v5396_v48, %v1119_v28  ;;  %v1367_v60 = vrot.slane %v1360_v59, %v3382_v34  ;;  %v1196_v15 = vmul.f32 %v1194_v32, %v1169_v25  ;;  %v1401_v55 = vadd.f32 %v1399_v10, %v1396_v6  ;;  %v1525_v0 = vpop.permute.xlu0 %1524 }
 0x1de   : > { %v1402_v54 = vadd.f32 %v1400_v38, %v1397_v4  ;;  %v1457_v57 = vrot.slane %v1450_v29, %v3382_v34  ;;  %v4578_v20 = vrot.slane %v1225_v14, %v3382_v34  ;;  %v5397_v35 = vstv %s4199_s29  ;;  %2201 = vrot.lane.b32.xlu1 %v3415_v51, %s3161_s6  ;;  %s3166_s29 = smov 79  }
 0x1df   : > { %v1497_v49 = vmul.f32 %v5397_v35, %v1484_v26  ;;  %v1490_v28 = vsel %vm1483_vm10, %v1487_v21, %v1489_v24  ;;  %v1491_v45 = vsel %vm1483_vm10, %v1489_v24, %v1487_v21  ;;  %v5398_v59 = vmov %v5397_v35  ;;  %v1495_v21 = vld [vmem:[#allocation8 + $0x31] ss:$8 sm:$0x3]  ;;  %2199 = vrot.lane.b32.xlu0 %v3410_v50, %s3161_s6 }
 0x1e0   : > { %v1464_v32 = vrot.slane %v1457_v57, %v3382_v34  ;;  %v1498_v9 = vmul.f32 %v5398_v59, %v1485_v42  ;;  %v5399_v39 = vstv %s4215_s28  ;;  %vm1573_vm13 = vcmp.lt.s32.totalorder %v3650_v43, 125  ;;  %s4807_s28 = sld [smem:[#allocation4 + $0x21]] }
 0x1e1   : > { %v1500_v58 = vmul.f32 %v5399_v39, %v1490_v28  ;;  %v5400_v18 = vmov %v5399_v39  ;;  %v1287_v61 = vadd.f32 %v1286_v63, %v1107_v1  ;;  %v1299_v38 = vsel %vm1292_vm11, %v4290_v16, %v4283_v7 }
 0x1e2   : > { %v1501_v10 = vmul.f32 %v5400_v18, %v1491_v45  ;;  %v1300_v12 = vsel %vm1292_vm11, %v4283_v7, %v4290_v16  ;;  %v1374_v3 = vrot.slane %v1367_v60, %v3382_v34  ;;  %v1405_v25 = vcombine.low %v1401_v55, %v1402_v54  ;;  %v1534_v60 = vpop.permute.xlu1 %1533  ;;  %2208 = vrot.lane.b32.xlu1 %v3401_v47, %s3161_s6 }
 0x1e3   : > { %v1466_v14 = vmul.f32 %v1464_v32, %v1439_v13  ;;  %v1502_v26 = vadd.f32 %v1500_v58, %v1497_v49  ;;  %v4606_v44 = vadd.f32 %v1129_v23, %v4497_v8  ;;  %v1294_v6 = vsel %vm1292_vm11, %v4239_v22, %v4253_v33  ;;  %2206 = vrot.lane.b32.xlu0 %v3397_v46, %s3161_s6  ;;  %s4935_s6 = sld [smem:[#allocation4 + $0x27]] }
 0x1e4   : > { %v1503_v42 = vadd.f32 %v1501_v10, %v1498_v9  ;;  %v1529_v7 = vsel %vm1528_vm12, %v1525_v0, %v1527_v5  ;;  %v1530_v16 = vsel %vm1528_vm12, %v1527_v5, %v1525_v0  ;;  %v1132_v27 = vadd.f32 %v1130_v36, %v1127_v31 }
 0x1e5   : > { %v1293_v8 = vsel %vm1292_vm11, %v4253_v33, %v4239_v22  ;;  %v4621_v23 = vadd.f32 %v1466_v14, %v1287_v61  ;;  %v1197_v29 = vadd.f32 %v1196_v15, %v4436_v2  ;;  %v5401_v1 = vstv %s3964_s10  ;;  %v1532_v15 = vpop.permute.xlu0 %1531  ;;  %s4739_s10 = sld [smem:[#allocation4 + $0x4f]] }
 0x1e6   : > { %v1506_v4 = vcombine.low %v1502_v26, %v1503_v42  ;;  %v1309_v48 = vmul.f32 %v5401_v1, %v1300_v12  ;;  %v5402_v63 = vmov %v5401_v1  ;;  %v1376_v36 = vmul.f32 %v1374_v3, %v1349_v62  ;;  %v1572_v10 = vpop.permute.xlu1 %1571  ;;  %v1394_v62 = vld [vmem:[#allocation8 + $0x26] ss:$8 sm:$0x3]  ;;  %2246 = vrot.lane.b32.xlu1 %v3415_v51, %s3162_s30 }
 0x1e7   : > { %v1310_v31 = vmul.f32 %v5402_v63, %v1299_v38  ;;  %v1239_v22 = vrot.slane %v4578_v20, %v3382_v34  ;;  %v5403_v33 = vstv %s3956_s15  ;;  %v1412_v55 = vrot.slane %v1405_v25, %v3382_v34  ;;  %v1214_v20 = vld [vmem:[#allocation8 + $0x22] ss:$8 sm:$0x3]  ;;  %s4657_s15 = sld [smem:[#allocation4 + $0x49]]  ;;  %2244 = vrot.lane.b32.xlu0 %v3410_v50, %s3162_s30 }
 0x1e8   : > { %v1306_v24 = vmul.f32 %v5403_v33, %v1294_v6  ;;  %v1513_v2 = vrot.slane %v1506_v4, %v3382_v34  ;;  %v5404_v54 = vmov %v5403_v33  ;;  %v1542_v13 = vmul.f32 %v1541_v37, %v1529_v7 }
 0x1e9   : > { %v1307_v57 = vmul.f32 %v5404_v54, %v1293_v8  ;;  %v1535_v35 = vsel %vm1528_vm12, %v1532_v15, %v1534_v60  ;;  %v1536_v49 = vsel %vm1528_vm12, %v1534_v60, %v1532_v15  ;;  %v1543_v45 = vmul.f32 %v1541_v37, %v1530_v16  ;;  %v1570_v3 = vpop.permute.xlu0 %1569 }
 0x1ea   : > { %v1520_v28 = vrot.slane %v1513_v2, %v3382_v34  ;;  %v1545_v32 = vmul.f32 %v1544_v19, %v1535_v35  ;;  %v1546_v59 = vmul.f32 %v1544_v19, %v1536_v49  ;;  %v1135_v9 = vcombine.low %v4606_v44, %v1132_v27  ;;  %v1579_v7 = vpop.permute.xlu1 %1578  ;;  %v944_v2 = vld [vmem:[#allocation8 + $0x14] ss:$8 sm:$0x3]  ;;  %2253 = vrot.lane.b32.xlu1 %v3401_v47, %s3162_s30 }
 0x1eb   : > { %v1311_v39 = vadd.f32 %v1309_v48, %v1306_v24  ;;  %v1312_v58 = vadd.f32 %v1310_v31, %v1307_v57  ;;  %v1377_v18 = vadd.f32 %v1376_v36, %v1197_v29  ;;  %v1419_v61 = vrot.slane %v1412_v55, %v3382_v34  ;;  %2251 = vrot.lane.b32.xlu0 %v3397_v46, %s3162_s30  ;;  %s4975_s30 = sld [smem:[#allocation4 + $0x29]] }
 0x1ec   : > { %v1522_v38 = vmul.f32 %v1520_v28, %v1495_v21  ;;  %v1547_v12 = vadd.f32 %v1545_v32, %v1542_v13  ;;  %v1548_v37 = vadd.f32 %v1546_v59, %v1543_v45  ;;  %v882_v19 = vadd.f32 %v4430_v17, %v4256_v30  ;;  %v5405_v28 = vld [vmem:[#allocation49_spill] sm:$0xff] }
 0x1ed   : > { %v1241_v5 = vmul.f32 %v1239_v22, %v1214_v20  ;;  %v1574_v25 = vsel %vm1573_vm13, %v1570_v3, %v1572_v10  ;;  %v1575_v14 = vsel %vm1573_vm13, %v1572_v10, %v1570_v3  ;;  %v789_v26 = vrot.slane %v4423_v53, %v3382_v34  ;;  %v764_v53 = vld [vmem:[#allocation8 + $0x10] ss:$8 sm:$0x3]  ;;  %v1577_v29 = vpop.permute.xlu0 %1576  ;;  %v1124_v32 = vld [vmem:[#allocation8 + $0x20] ss:$8 sm:$0x3] }
 0x1ee   : > { %v4669_v42 = vadd.f32 %v1522_v38, %v1377_v18  ;;  %v1551_v0 = vcombine.low %v1547_v12, %v1548_v37  ;;  %v1586_v44 = vstv %s4624_s5  ;;  %v962_v30 = vrot.slane %v955_v41, %v3382_v34  ;;  %v1617_v24 = vpop.permute.xlu1 %1616  ;;  %v5406_v10 = vld [vmem:[#allocation28_spill] sm:$0xff]  ;;  %v2951_v12 = vld [vmem:[#allocation3] sm:$0x3]  ;;  %2291 = vrot.lane.b32.xlu1 %v3415_v51, %s3163_s7  ;;  %s4915_s5 = sld [smem:[#allocation4 + $0x26]] }
 0x1ef   : > { %v1062_v17 = vadd.f32 %v4444_v11, %v882_v19  ;;  %v1315_v6 = vcombine.low %v1311_v39, %v1312_v58  ;;  %v1589_v16 = vstv %s4631_s20  ;;  %v1142_v27 = vrot.slane %v1135_v9, %v3382_v34  ;;  %2289 = vrot.lane.b32.xlu0 %v3410_v50, %s3163_s7  ;;  %s4918_s20 = sld [smem:[#allocation4 + $0x57]] }
 0x1f0   : > { %v1421_v8 = vmul.f32 %v1419_v61, %v1394_v62  ;;  %v1558_v4 = vrot.slane %v1551_v0, %v3382_v34  ;;  %vm1618_vm14 = vcmp.lt.s32.totalorder %v3650_v43, 115  ;;  %v1587_v56 = vmul.f32 %v1586_v44, %v1574_v25 }
 0x1f1   : > { %v1242_v1 = vadd.f32 %v1241_v5, %v1062_v17  ;;  %v1580_v41 = vsel %vm1573_vm13, %v1577_v29, %v1579_v7  ;;  %v1581_v11 = vsel %vm1573_vm13, %v1579_v7, %v1577_v29  ;;  %v1588_v63 = vmul.f32 %v1586_v44, %v1575_v14  ;;  %v1615_v13 = vpop.permute.xlu0 %1614  ;;  %v1304_v14 = vld [vmem:[#allocation8 + $0x24] ss:$8 sm:$0x3] }
 0x1f2   : > { %v1565_v48 = vrot.slane %v1558_v4, %v3382_v34  ;;  %v1590_v31 = vmul.f32 %v1589_v16, %v1580_v41  ;;  %v1591_v36 = vmul.f32 %v1589_v16, %v1581_v11  ;;  %v791_v60 = vmul.f32 %v789_v26, %v764_v53  ;;  %v1624_v18 = vpop.permute.xlu1 %1623  ;;  %v1585_v26 = vld [vmem:[#allocation8 + $0x33] ss:$8 sm:$0x3]  ;;  %v1471_v41 = vld [vmem:[#allocation8 + $0x30] ss:$8 sm:$0x3]  ;;  %2298 = vrot.lane.b32.xlu1 %v3401_v47, %s3163_s7 }
 0x1f3   : > { %v969_v22 = vrot.slane %v962_v30, %v3382_v34  ;;  %v1322_v33 = vrot.slane %v1315_v6, %v3382_v34  ;;  %v1474_v55 = vstv %s4657_s15  ;;  %v1422_v15 = vadd.f32 %v1421_v8, %v1242_v1  ;;  %2296 = vrot.lane.b32.xlu0 %v3397_v46, %s3163_s7  ;;  %s4938_s15 = sld [smem:[#allocation4 + $0x58]]  ;;  %s4998_s7 = sld [smem:[#allocation4 + $0x5b]] }
 0x1f4   : > { %v1567_v54 = vmul.f32 %v1565_v48, %v1540_v52  ;;  %v1592_v57 = vadd.f32 %v1590_v31, %v1587_v56  ;;  %v1593_v21 = vadd.f32 %v1591_v36, %v1588_v63  ;;  %v1149_v35 = vrot.slane %v1142_v27, %v3382_v34 }
 0x1f5   : > { %v1619_v49 = vsel %vm1618_vm14, %v1615_v13, %v1617_v24  ;;  %v1620_v20 = vsel %vm1618_vm14, %v1617_v24, %v1615_v13  ;;  %v612_v45 = vadd.f32 %v5405_v28, %v3996_v40  ;;  %v1631_v39 = vstv %s4673_s0  ;;  %v1622_v62 = vpop.permute.xlu0 %1621  ;;  %s4955_s0 = sld [smem:[#allocation4 + $0x28]] }
 0x1f6   : > { %v4704_v59 = vadd.f32 %v1567_v54, %v1422_v15  ;;  %v1596_v9 = vcombine.low %v1592_v57, %v1593_v21  ;;  %v971_v58 = vmul.f32 %v969_v22, %v944_v2  ;;  %v5407_v61 = vstv %s3994_s19  ;;  %v1662_v8 = vpop.permute.xlu1 %1661  ;;  %v1630_v54 = vld [vmem:[#allocation8 + $0x34] ss:$8 sm:$0x3]  ;;  %s3164_s19 = smov 81  }
 0x1f7   : > { %v1473_v38 = vmul.f32 %v5407_v61, %v5406_v10  ;;  %v1475_v37 = vmul.f32 %v2951_v12, %v1474_v55  ;;  %v1634_v3 = vstv %s4681_s24  ;;  %v792_v40 = vadd.f32 %v791_v60, %v612_v45  ;;  %2336 = vrot.lane.b32.xlu1 %v3415_v51, %s3164_s19  ;;  %2334 = vrot.lane.b32.xlu0 %v3410_v50, %s3164_s19  ;;  %s4958_s24 = sld [smem:[#allocation4 + $0x59]] }
 0x1f8   : > { %v1329_v19 = vrot.slane %v1322_v33, %v3382_v34  ;;  %v1603_v5 = vrot.slane %v1596_v9, %v3382_v34  ;;  %vm1663_vm15 = vcmp.lt.s32.totalorder %v3650_v43, 114  ;;  %v1151_v25 = vmul.f32 %v1149_v35, %v1124_v32 }
 0x1f9   : > { %v1632_v0 = vmul.f32 %v1631_v39, %v1619_v49  ;;  %v1625_v44 = vsel %vm1618_vm14, %v1622_v62, %v1624_v18  ;;  %v1626_v30 = vsel %vm1618_vm14, %v1624_v18, %v1622_v62  ;;  %v1633_v6 = vmul.f32 %v1631_v39, %v1620_v20  ;;  %v1660_v56 = vpop.permute.xlu0 %1659 }
 0x1fa   : > { %v1610_v17 = vrot.slane %v1603_v5, %v3382_v34  ;;  %v1635_v7 = vmul.f32 %v1634_v3, %v1625_v44  ;;  %v1636_v16 = vmul.f32 %v1634_v3, %v1626_v30  ;;  %v972_v53 = vadd.f32 %v971_v58, %v792_v40  ;;  %v1669_v22 = vpop.permute.xlu1 %1668  ;;  %v1675_v5 = vld [vmem:[#allocation8 + $0x35] ss:$8 sm:$0x3] }
 0x1fb   : > { %v1476_v27 = vadd.f32 %v1475_v37, %v1473_v38  ;;  %v1331_v4 = vmul.f32 %v1329_v19, %v1304_v14  ;;  %v1664_v11 = vsel %vm1663_vm15, %v1660_v56, %v1662_v8  ;;  %v1665_v48 = vsel %vm1663_vm15, %v1662_v8, %v1660_v56  ;;  %2343 = vrot.lane.b32.xlu1 %v3401_v47, %s3164_s19 }
 0x1fc   : > { %v1612_v29 = vmul.f32 %v1610_v17, %v1585_v26  ;;  %v1637_v1 = vadd.f32 %v1635_v7, %v1632_v0  ;;  %v1638_v52 = vadd.f32 %v1636_v16, %v1633_v6  ;;  %v1152_v63 = vadd.f32 %v1151_v25, %v972_v53  ;;  %2341 = vrot.lane.b32.xlu0 %v3397_v46, %s3164_s19  ;;  %s5033_s19 = sld [smem:[#allocation4 + $0x2c]] }
 0x1fd   : > { %v1676_v60 = vstv %s4708_s8  ;;  %v1679_v33 = vstv %s4714_s22  ;;  %v1477_v55 = vmul.f32 %v1476_v27, %v1471_v41  ;;  %v1667_v15 = vpop.permute.xlu0 %1666  ;;  %vm1708_vm0 = vcmp.lt.s32.totalorder %v3650_v43, 113  ;;  %s4978_s8 = sld [smem:[#allocation4 + $0x5a]] }
 0x1fe   : > { %v4732_v31 = vadd.f32 %v1612_v29, %v4621_v23  ;;  %v1641_v36 = vcombine.low %v1637_v1, %v1638_v52  ;;  %v1332_v24 = vadd.f32 %v1331_v4, %v1152_v63  ;;  %v1677_v57 = vmul.f32 %v1676_v60, %v1664_v11  ;;  %v1707_v28 = vpop.permute.xlu1 %1706  ;;  %s4993_s22 = sld [smem:[#allocation4 + $0x2a]] }
 0x1ff   : > { %v1670_v23 = vsel %vm1663_vm15, %v1667_v15, %v1669_v22  ;;  %v1671_v21 = vsel %vm1663_vm15, %v1669_v22, %v1667_v15  ;;  %v1678_v35 = vmul.f32 %v1676_v60, %v1665_v48  ;;  %v1721_v12 = vstv %s4736_s27  ;;  %2381 = vrot.lane.b32.xlu1 %v3415_v51, %s3165_s16  ;;  %v1720_v48 = vld [vmem:[#allocation8 + $0x36] ss:$8 sm:$0x3]  ;;  %s5013_s27 = sld [smem:[#allocation4 + $0x2b]] }
 0x200   : > { %v1648_v2 = vrot.slane %v1641_v36, %v3382_v34  ;;  %v1680_v49 = vmul.f32 %v1679_v33, %v1670_v23  ;;  %v1681_v20 = vmul.f32 %v1679_v33, %v1671_v21  ;;  %v1478_v45 = vadd.f32 %v1477_v55, %v1332_v24  ;;  %2379 = vrot.lane.b32.xlu0 %v3410_v50, %s3165_s16 }
 0x201   : > { %v1705_v58 = vpop.permute.xlu0 %1704  ;;  %v1724_v3 = vstv %s4739_s10  ;;  %vm1753_vm2 = vcmp.lt.s32.totalorder %v3650_v43, 112  ;;  %v1766_v1 = vstv %s4759_s26  ;;  %v1769_v56 = vstv %s4762_s17  ;;  %s5018_s10 = sld [smem:[#allocation4 + $0x5c]]  ;;  %s5038_s26 = sld [smem:[#allocation4 + $0x5d]] }
 0x202   : > { %v1655_v13 = vrot.slane %v1648_v2, %v3382_v34  ;;  %v1682_v9 = vadd.f32 %v1680_v49, %v1677_v57  ;;  %v1683_v39 = vadd.f32 %v1681_v20, %v1678_v35  ;;  %v1709_v18 = vsel %vm1708_vm0, %v1705_v58, %v1707_v28  ;;  %v1714_v37 = vpop.permute.xlu1 %1713  ;;  %s5053_s17 = sld [smem:[#allocation4 + $0x2d]] }
 0x203   : > { %v1710_v10 = vsel %vm1708_vm0, %v1707_v28, %v1705_v58  ;;  %v1722_v62 = vmul.f32 %v1721_v12, %v1709_v18  ;;  %2388 = vrot.lane.b32.xlu1 %v3401_v47, %s3165_s16  ;;  %vm1798_vm3 = vcmp.lt.s32.totalorder %v3650_v43, 111  ;;  %v1811_v49 = vstv %s4783_s9  ;;  %s5073_s9 = sld [smem:[#allocation4 + $0x2e]] }
 0x204   : > { %v1657_v32 = vmul.f32 %v1655_v13, %v1630_v54  ;;  %v1686_v38 = vcombine.low %v1682_v9, %v1683_v39  ;;  %v1723_v0 = vmul.f32 %v1721_v12, %v1710_v10  ;;  %2386 = vrot.lane.b32.xlu0 %v3397_v46, %s3165_s16  ;;  %v1814_v28 = vstv %s4786_s18  ;;  %v1765_v9 = vld [vmem:[#allocation8 + $0x37] ss:$8 sm:$0x3]  ;;  %s5058_s16 = sld [smem:[#allocation4 + $0x5e]]  ;;  %s5078_s18 = sld [smem:[#allocation4 + $0x5f]] }
 0x205   : > { %v1712_v19 = vpop.permute.xlu0 %1711  ;;  %vm1843_vm4 = vcmp.lt.s32.totalorder %v3650_v43, 110  ;;  %vm1888_vm5 = vcmp.lt.s32.totalorder %v3650_v43, 109  ;;  %vm1933_vm6 = vcmp.lt.s32.totalorder %v3650_v43, 99  ;;  %vm1978_vm7 = vcmp.lt.s32.totalorder %v3650_v43, 98 }
 0x206   : > { %v4755_v61 = vadd.f32 %v1657_v32, %v1478_v45  ;;  %v1693_v40 = vrot.slane %v1686_v38, %v3382_v34  ;;  %v1715_v25 = vsel %vm1708_vm0, %v1712_v19, %v1714_v37  ;;  %v1716_v14 = vsel %vm1708_vm0, %v1714_v37, %v1712_v19  ;;  %v1752_v17 = vpop.permute.xlu1 %1751 }
 0x207   : > { %v1725_v44 = vmul.f32 %v1724_v3, %v1715_v25  ;;  %v1726_v30 = vmul.f32 %v1724_v3, %v1716_v14  ;;  %2426 = vrot.lane.b32.xlu1 %v3415_v51, %s3166_s29  ;;  %vm2023_vm8 = vcmp.lt.s32.totalorder %v3650_v43, 97  ;;  %vm2068_vm9 = vcmp.lt.s32.totalorder %v3650_v43, 96 }
 0x208   : > { %v1700_v26 = vrot.slane %v1693_v40, %v3382_v34  ;;  %2424 = vrot.lane.b32.xlu0 %v3410_v50, %s3166_s29  ;;  %vm2113_vm10 = vcmp.lt.s32.totalorder %v3650_v43, 95  ;;  %vm2158_vm11 = vcmp.lt.s32.totalorder %v3650_v43, 94  ;;  %vm2203_vm12 = vcmp.lt.s32.totalorder %v3650_v43, 93 }
 0x209   : > { %v1727_v7 = vadd.f32 %v1725_v44, %v1722_v62  ;;  %v1728_v16 = vadd.f32 %v1726_v30, %v1723_v0  ;;  %v1750_v53 = vpop.permute.xlu0 %1749  ;;  %v1856_v0 = vstv %s4807_s28  ;;  %v1859_v30 = vstv %s4810_s2  ;;  %s5098_s28 = sld [smem:[#allocation4 + $0x60]] }
 0x20a   : > { %v1702_v6 = vmul.f32 %v1700_v26, %v1675_v5  ;;  %v1754_v27 = vsel %vm1753_vm2, %v1750_v53, %v1752_v17  ;;  %v1755_v8 = vsel %vm1753_vm2, %v1752_v17, %v1750_v53  ;;  %v1759_v52 = vpop.permute.xlu1 %1758  ;;  %vm2248_vm13 = vcmp.lt.s32.totalorder %v3650_v43, 83  ;;  %s5111_s2 = sld [smem:[#allocation4 + $0x30]] }
 0x20b   : > { %v1731_v29 = vcombine.low %v1727_v7, %v1728_v16  ;;  %v1767_v63 = vmul.f32 %v1766_v1, %v1754_v27  ;;  %v1768_v22 = vmul.f32 %v1766_v1, %v1755_v8  ;;  %2433 = vrot.lane.b32.xlu1 %v3401_v47, %s3166_s29  ;;  %v1810_v7 = vld [vmem:[#allocation8 + $0x40] ss:$8 sm:$0x3]  ;;  %vm2293_vm14 = vcmp.lt.s32.totalorder %v3650_v43, 82 }
 0x20c   : > { %v4779_v4 = vadd.f32 %v1702_v6, %v4669_v42  ;;  %2431 = vrot.lane.b32.xlu0 %v3397_v46, %s3166_s29  ;;  %vm2338_vm15 = vcmp.lt.s32.totalorder %v3650_v43, 81  ;;  %vm2383_vm0 = vcmp.lt.s32.totalorder %v3650_v43, 80  ;;  %s5093_s29 = sld [smem:[#allocation4 + $0x2f]] }
 0x20d   : > { %v1738_v41 = vrot.slane %v1731_v29, %v3382_v34  ;;  %v1757_v11 = vpop.permute.xlu0 %1756 }
 0x20e   : > { %v1760_v36 = vsel %vm1753_vm2, %v1757_v11, %v1759_v52  ;;  %v1761_v42 = vsel %vm1753_vm2, %v1759_v52, %v1757_v11  ;;  %v1797_v55 = vpop.permute.xlu1 %1796  ;;  %vm2428_vm2 = vcmp.lt.s32.totalorder %v3650_v43, 79 }
 0x20f   : > { %v1745_v60 = vrot.slane %v1738_v41, %v3382_v34  ;;  %v1770_v33 = vmul.f32 %v1769_v56, %v1760_v36  ;;  %v1771_v24 = vmul.f32 %v1769_v56, %v1761_v42  ;;  %2471 = vrot.lane.b32.xlu1 %v3415_v51, %s3167_s1 }
 0x210   : > { %2469 = vrot.lane.b32.xlu0 %v3410_v50, %s3167_s1 }
 0x211   : > { %v1747_v2 = vmul.f32 %v1745_v60, %v1720_v48  ;;  %v1772_v15 = vadd.f32 %v1770_v33, %v1767_v63  ;;  %v1773_v54 = vadd.f32 %v1771_v24, %v1768_v22  ;;  %v1795_v57 = vpop.permute.xlu0 %1794  ;;  %v1901_v60 = vstv %s4831_s14  ;;  %s5408_s14 = sld [smem:[#allocation26_spill]] }
 0x212   : > { %v1799_v23 = vsel %vm1798_vm3, %v1795_v57, %v1797_v55  ;;  %v1800_v21 = vsel %vm1798_vm3, %v1797_v55, %v1795_v57  ;;  %v1804_v20 = vpop.permute.xlu1 %1803  ;;  %v1904_v22 = vstv %s4834_s25  ;;  %v1855_v55 = vld [vmem:[#allocation8 + $0x41] ss:$8 sm:$0x3]  ;;  %s5409_s25 = sld [smem:[#allocation19_spill]] }
 0x213   : > { %v4803_v13 = vadd.f32 %v1747_v2, %v4704_v59  ;;  %v1776_v35 = vcombine.low %v1772_v15, %v1773_v54  ;;  %v1812_v39 = vmul.f32 %v1811_v49, %v1799_v23  ;;  %v1813_v10 = vmul.f32 %v1811_v49, %v1800_v21  ;;  %2478 = vrot.lane.b32.xlu1 %v3401_v47, %s3167_s1 }
 0x214   : > { %2476 = vrot.lane.b32.xlu0 %v3397_v46, %s3167_s1  ;;  %s5116_s1 = sld [smem:[#allocation4 + $0x61]] }
 0x215   : > { %v1783_v45 = vrot.slane %v1776_v35, %v3382_v34  ;;  %v1802_v32 = vpop.permute.xlu0 %1801 }
 0x216   : > { %v1805_v58 = vsel %vm1798_vm3, %v1802_v32, %v1804_v20  ;;  %v1806_v59 = vsel %vm1798_vm3, %v1804_v20, %v1802_v32  ;;  %v1842_v37 = vpop.permute.xlu1 %1841  ;;  %vm2473_vm3 = vcmp.lt.s32.totalorder %v3650_v43, 78 }
 0x217   : > { %v1790_v18 = vrot.slane %v1783_v45, %v3382_v34  ;;  %v1815_v38 = vmul.f32 %v1814_v28, %v1805_v58  ;;  %v1816_v12 = vmul.f32 %v1814_v28, %v1806_v59  ;;  %2516 = vrot.lane.b32.xlu1 %v3415_v51, %s3168_s21  ;;  %v1949_v59 = vstv %s4858_s3 }
 0x218   : > { %2514 = vrot.lane.b32.xlu0 %v3410_v50, %s3168_s21  ;;  %s2811_s3 = sshll.u32 %s5409_s25, 5 }
 0x219   : > { %v1792_v3 = vmul.f32 %v1790_v18, %v1765_v9  ;;  %v1817_v40 = vadd.f32 %v1815_v38, %v1812_v39  ;;  %v1818_v19 = vadd.f32 %v1816_v12, %v1813_v10  ;;  %v1840_v5 = vpop.permute.xlu0 %1839  ;;  %v1946_v39 = vstv %s4855_s4  ;;  %v1900_v38 = vld [vmem:[#allocation8 + $0x42] ss:$8 sm:$0x3]  ;;  %s2706_s4 = sshll.u32 %s5408_s14, 1 }
 0x21a   : > { %v1844_v62 = vsel %vm1843_vm4, %v1840_v5, %v1842_v37  ;;  %v1845_v25 = vsel %vm1843_vm4, %v1842_v37, %v1840_v5  ;;  %v1849_v44 = vpop.permute.xlu1 %1848 }
 0x21b   : > { %v4827_v14 = vadd.f32 %v1792_v3, %v4732_v31  ;;  %v1821_v26 = vcombine.low %v1817_v40, %v1818_v19  ;;  %v1857_v16 = vmul.f32 %v1856_v0, %v1844_v62  ;;  %v1858_v8 = vmul.f32 %v1856_v0, %v1845_v25  ;;  %2523 = vrot.lane.b32.xlu1 %v3401_v47, %s3168_s21 }
 0x21c   : > { %2521 = vrot.lane.b32.xlu0 %v3397_v46, %s3168_s21  ;;  %s5410_s21 = sld [smem:[#allocation24_spill]] }
 0x21d   : > { %v1828_v17 = vrot.slane %v1821_v26, %v3382_v34  ;;  %v1847_v6 = vpop.permute.xlu0 %1846 }
 0x21e   : > { %v1850_v53 = vsel %vm1843_vm4, %v1847_v6, %v1849_v44  ;;  %v1851_v31 = vsel %vm1843_vm4, %v1849_v44, %v1847_v6  ;;  %v1887_v52 = vpop.permute.xlu1 %1886  ;;  %vm2518_vm4 = vcmp.lt.s32.totalorder %v3650_v43, 77 }
 0x21f   : > { %v1835_v27 = vrot.slane %v1828_v17, %v3382_v34  ;;  %v1860_v29 = vmul.f32 %v1859_v30, %v1850_v53  ;;  %v1861_v1 = vmul.f32 %v1859_v30, %v1851_v31  ;;  %v1994_v31 = vstv %s4878_s12 }
 0x221   : > { %v1837_v56 = vmul.f32 %v1835_v27, %v1810_v7  ;;  %v1862_v41 = vadd.f32 %v1860_v29, %v1857_v16  ;;  %v1863_v11 = vadd.f32 %v1861_v1, %v1858_v8  ;;  %v1885_v48 = vpop.permute.xlu0 %1884  ;;  %v1991_v16 = vstv %s4875_s13  ;;  %v1945_v29 = vld [vmem:[#allocation8 + $0x43] ss:$8 sm:$0x3]  ;;  %s229_s13 = scalar_lea.vmem [#allocation11], %s2706_s4 }
 0x222   : > { %v1889_v63 = vsel %vm1888_vm5, %v1885_v48, %v1887_v52  ;;  %v1890_v51 = vsel %vm1888_vm5, %v1887_v52, %v1885_v48  ;;  %v1894_v50 = vpop.permute.xlu1 %1893  ;;  %s2588_s12 = sshll.u32 %s229_s13, 4  ;;  %p5413_p2 = scmp.ne.s32.totalorder %s5410_s21, 0  ;;  %s5149_s12 = int_to_ptr.vmem [resolvable:$true] %s2588_s12 }
 0x223   : > { %v4851_v36 = vadd.f32 %v1837_v56, %v4755_v61  ;;  %v1866_v42 = vcombine.low %v1862_v41, %v1863_v11  ;;  %v1902_v2 = vmul.f32 %v1901_v60, %v1889_v63  ;;  %v1903_v15 = vmul.f32 %v1901_v60, %v1890_v51 }
 0x225   : > { %v1873_v33 = vrot.slane %v1866_v42, %v3382_v34  ;;  %v1892_v24 = vpop.permute.xlu0 %1891 }
 0x226   : > { %v1895_v47 = vsel %vm1888_vm5, %v1892_v24, %v1894_v50  ;;  %v1896_v61 = vsel %vm1888_vm5, %v1894_v50, %v1892_v24  ;;  %v1932_v23 = vpop.permute.xlu1 %1931 }
 0x227   : > { %v1880_v46 = vrot.slane %v1873_v33, %v3382_v34  ;;  %v1905_v54 = vmul.f32 %v1904_v22, %v1895_v47  ;;  %v1906_v57 = vmul.f32 %v1904_v22, %v1896_v61  ;;  %v2039_v61 = vstv %s4898_s11 }
 0x229   : > { %v1882_v21 = vmul.f32 %v1880_v46, %v1855_v55  ;;  %v1907_v35 = vadd.f32 %v1905_v54, %v1902_v2  ;;  %v1908_v49 = vadd.f32 %v1906_v57, %v1903_v15  ;;  %v1930_v20 = vpop.permute.xlu0 %1929  ;;  %v2036_v2 = vstv %s4895_s23  ;;  %v1990_v54 = vld [vmem:[#allocation8 + $0x44] ss:$8 sm:$0x3] }
 0x22a   : > { %v1934_v28 = vsel %vm1933_vm6, %v1930_v20, %v1932_v23  ;;  %v1935_v45 = vsel %vm1933_vm6, %v1932_v23, %v1930_v20  ;;  %v1939_v58 = vpop.permute.xlu1 %1938 }
 0x22b   : > { %v4872_v32 = vadd.f32 %v1882_v21, %v4779_v4  ;;  %v1911_v9 = vcombine.low %v1907_v35, %v1908_v49  ;;  %v1947_v12 = vmul.f32 %v1946_v39, %v1934_v28  ;;  %v1948_v40 = vmul.f32 %v1946_v39, %v1935_v45 }
 0x22d   : > { %v1918_v18 = vrot.slane %v1911_v9, %v3382_v34  ;;  %v1937_v10 = vpop.permute.xlu0 %1936 }
 0x22e   : > { %v1940_v37 = vsel %vm1933_vm6, %v1937_v10, %v1939_v58  ;;  %v1941_v4 = vsel %vm1933_vm6, %v1939_v58, %v1937_v10  ;;  %v1977_v62 = vpop.permute.xlu1 %1976 }
 0x22f   : > { %v1925_v3 = vrot.slane %v1918_v18, %v3382_v34  ;;  %v1950_v19 = vmul.f32 %v1949_v59, %v1940_v37  ;;  %v1951_v5 = vmul.f32 %v1949_v59, %v1941_v4  ;;  %v2084_v4 = vstv %s4918_s20 }
 0x231   : > { %v1927_v25 = vmul.f32 %v1925_v3, %v1900_v38  ;;  %v1952_v26 = vadd.f32 %v1950_v19, %v1947_v12  ;;  %v1953_v0 = vadd.f32 %v1951_v5, %v1948_v40  ;;  %v1975_v44 = vpop.permute.xlu0 %1974  ;;  %v2081_v12 = vstv %s4915_s5  ;;  %v2035_v19 = vld [vmem:[#allocation8 + $0x45] ss:$8 sm:$0x3]  ;;  %s5411_s5 = sld [smem:[#allocation53_spill]] }
 0x232   : > { %v1979_v30 = vsel %vm1978_vm7, %v1975_v44, %v1977_v62  ;;  %v1980_v17 = vsel %vm1978_vm7, %v1977_v62, %v1975_v44  ;;  %v1984_v53 = vpop.permute.xlu1 %1983 }
 0x233   : > { %v4892_v6 = vadd.f32 %v1927_v25, %v4803_v13  ;;  %v1956_v7 = vcombine.low %v1952_v26, %v1953_v0  ;;  %v1992_v1 = vmul.f32 %v1991_v16, %v1979_v30  ;;  %v1993_v41 = vmul.f32 %v1991_v16, %v1980_v17 }
 0x235   : > { %v1963_v27 = vrot.slane %v1956_v7, %v3382_v34  ;;  %v1982_v8 = vpop.permute.xlu0 %1981 }
 0x236   : > { %v1985_v52 = vsel %vm1978_vm7, %v1982_v8, %v1984_v53  ;;  %v1986_v13 = vsel %vm1978_vm7, %v1984_v53, %v1982_v8  ;;  %v2022_v63 = vpop.permute.xlu1 %2021 }
 0x237   : > { %v1970_v56 = vrot.slane %v1963_v27, %v3382_v34  ;;  %v1995_v11 = vmul.f32 %v1994_v31, %v1985_v52  ;;  %v1996_v48 = vmul.f32 %v1994_v31, %v1986_v13  ;;  %v2129_v13 = vstv %s4938_s15  ;;  %s5147_s20 = scalar_lea.hbm %s5411_s5, %s2811_s3  ;;  %s3023_s15 = scalar_lea.vmem %s5149_s12, 32 }
 0x238   : > { %p3024_p0 = scmp.ne.s32.totalorder %s5149_s12, %s3023_s15 }
 0x239   : > { %v1972_v51 = vmul.f32 %v1970_v56, %v1945_v29  ;;  %v1997_v42 = vadd.f32 %v1995_v11, %v1992_v1  ;;  %v1998_v60 = vadd.f32 %v1996_v48, %v1993_v41  ;;  %v2020_v50 = vpop.permute.xlu0 %2019  ;;  %v2126_v1 = vstv %s4935_s6  ;;  %v2080_v11 = vld [vmem:[#allocation8 + $0x46] ss:$8 sm:$0x3]  ;;  %s2574_s6 = scalar_lea.sflag [#allocation6], %s5408_s14 }
 0x23a   : > { %v2024_v22 = vsel %vm2023_vm8, %v2020_v50, %v2022_v63  ;;  %v2025_v33 = vsel %vm2023_vm8, %v2022_v63, %v2020_v50  ;;  %v2029_v47 = vpop.permute.xlu1 %2028  ;;  %p3025_p10 = pnand %p3024_p0, %p5413_p2 }
 0x23b   : > { %v4912_v24 = vadd.f32 %v1972_v51, %v4827_v14  ;;  %v2001_v55 = vcombine.low %v1997_v42, %v1998_v60  ;;  %v2037_v57 = vmul.f32 %v2036_v2, %v2024_v22  ;;  %v2038_v35 = vmul.f32 %v2036_v2, %v2025_v33 }
 0x23c   : > { %p3026_p6 = pneg %p3025_p10 }
 0x23d   : > { %v2008_v46 = vrot.slane %v2001_v55, %v3382_v34  ;;  %v2027_v15 = vpop.permute.xlu0 %2026 }
 0x23e   : > { %v2030_v23 = vsel %vm2023_vm8, %v2027_v15, %v2029_v47  ;;  %v2031_v14 = vsel %vm2023_vm8, %v2029_v47, %v2027_v15  ;;  %v2067_v28 = vpop.permute.xlu1 %2066 }
 0x23f   : > { %v2015_v21 = vrot.slane %v2008_v46, %v3382_v34  ;;  %v2040_v49 = vmul.f32 %v2039_v61, %v2030_v23  ;;  %v2041_v20 = vmul.f32 %v2039_v61, %v2031_v14  ;;  %v2174_v14 = vstv %s4958_s24 }
 0x241   : > { %v2017_v45 = vmul.f32 %v2015_v21, %v1990_v54  ;;  %v2042_v9 = vadd.f32 %v2040_v49, %v2037_v57  ;;  %v2043_v39 = vadd.f32 %v2041_v20, %v2038_v35  ;;  %v2065_v58 = vpop.permute.xlu0 %2064  ;;  %v2171_v57 = vstv %s4955_s0  ;;  %v2125_v49 = vld [vmem:[#allocation8 + $0x47] ss:$8 sm:$0x3]  ;;  %s3169_s0 = smov [#allocation11]  }
 0x242   : > { %v2069_v59 = vsel %vm2068_vm9, %v2065_v58, %v2067_v28  ;;  %v2070_v18 = vsel %vm2068_vm9, %v2067_v28, %v2065_v58  ;;  %v2074_v37 = vpop.permute.xlu1 %2073  ;;  %s3027_s24 = sshll.u32 %s3169_s0, 4  ;;  %s3028_s24 = int_to_ptr.vmem [resolvable:$false] %s3027_s24 }
 0x243   : > { %v4932_v10 = vadd.f32 %v2017_v45, %v4851_v36  ;;  %v2046_v38 = vcombine.low %v2042_v9, %v2043_v39  ;;  %v2082_v5 = vmul.f32 %v2081_v12, %v2069_v59  ;;  %v2083_v26 = vmul.f32 %v2081_v12, %v2070_v18  ;;  %p3030_p9 = scmp.lt.s32.totalorder %s5149_s12, %s3028_s24 }
 0x245   : > { %v2053_v3 = vrot.slane %v2046_v38, %v3382_v34  ;;  %v2072_v40 = vpop.permute.xlu0 %2071 }
 0x246   : > { %v2075_v62 = vsel %vm2068_vm9, %v2072_v40, %v2074_v37  ;;  %v2076_v36 = vsel %vm2068_vm9, %v2074_v37, %v2072_v40  ;;  %v2112_v30 = vpop.permute.xlu1 %2111  ;;  %v2216_v40 = vstv %s4975_s30  ;;  %s3029_s30 = scalar_lea.vmem %s3028_s24, 64 }
 0x247   : > { %v2060_v25 = vrot.slane %v2053_v3, %v3382_v34  ;;  %v2085_v0 = vmul.f32 %v2084_v4, %v2075_v62  ;;  %v2086_v44 = vmul.f32 %v2084_v4, %v2076_v36  ;;  %v2219_v36 = vstv %s4978_s8  ;;  %p3031_p13 = scmp.lt.s32.totalorder %s3029_s30, %s3023_s15 }
 0x249   : > { %v2062_v17 = vmul.f32 %v2060_v25, %v2035_v19  ;;  %v2087_v7 = vadd.f32 %v2085_v0, %v2082_v5  ;;  %v2088_v16 = vadd.f32 %v2086_v44, %v2083_v26  ;;  %v2110_v53 = vpop.permute.xlu0 %2109  ;;  %v2170_v0 = vld [vmem:[#allocation8 + $0x50] ss:$8 sm:$0x3]  ;;  %p3032_p3 = por %p3031_p13, %p3030_p9 }
 0x24a   : > { %v2114_v31 = vsel %vm2113_vm10, %v2110_v53, %v2112_v30  ;;  %v2115_v27 = vsel %vm2113_vm10, %v2112_v30, %v2110_v53  ;;  %v2119_v52 = vpop.permute.xlu1 %2118 }
 0x24b   : > { %v4952_v8 = vadd.f32 %v2062_v17, %v4872_v32  ;;  %v2091_v29 = vcombine.low %v2087_v7, %v2088_v16  ;;  %v2127_v48 = vmul.f32 %v2126_v1, %v2114_v31  ;;  %v2128_v42 = vmul.f32 %v2126_v1, %v2115_v27  ;;  %p3033_p11 = pnand %p3032_p3, %p3026_p6 }
 0x24d   : > { %v2098_v56 = vrot.slane %v2091_v29, %v3382_v34  ;;  %v2117_v41 = vpop.permute.xlu0 %2116 }
 0x24e   : > { %v2120_v63 = vsel %vm2113_vm10, %v2117_v41, %v2119_v52  ;;  %v2121_v32 = vsel %vm2113_vm10, %v2119_v52, %v2117_v41  ;;  %v2157_v22 = vpop.permute.xlu1 %2156  ;;  %v2261_v41 = vstv %s4993_s22 }
 0x24f   : > { %v2105_v51 = vrot.slane %v2098_v56, %v3382_v34  ;;  %v2130_v60 = vmul.f32 %v2129_v13, %v2120_v63  ;;  %v2131_v50 = vmul.f32 %v2129_v13, %v2121_v32  ;;  %v2264_v32 = vstv %s4998_s7 }
 0x251   : > { %v2107_v33 = vmul.f32 %v2105_v51, %v2080_v11  ;;  %v2132_v55 = vadd.f32 %v2130_v60, %v2127_v48  ;;  %v2133_v2 = vadd.f32 %v2131_v50, %v2128_v42  ;;  %v2155_v47 = vpop.permute.xlu0 %2154  ;;  %v2215_v60 = vld [vmem:[#allocation8 + $0x51] ss:$8 sm:$0x3] }
 0x252   : > { %v2159_v61 = vsel %vm2158_vm11, %v2155_v47, %v2157_v22  ;;  %v2160_v46 = vsel %vm2158_vm11, %v2157_v22, %v2155_v47  ;;  %v2164_v23 = vpop.permute.xlu1 %2163 }
 0x253   : > { %v4972_v15 = vadd.f32 %v2107_v33, %v4892_v6  ;;  %v2136_v54 = vcombine.low %v2132_v55, %v2133_v2  ;;  %v2172_v20 = vmul.f32 %v2171_v57, %v2159_v61  ;;  %v2173_v9 = vmul.f32 %v2171_v57, %v2160_v46 }
 0x255   : > { %v2143_v21 = vrot.slane %v2136_v54, %v3382_v34  ;;  %v2162_v35 = vpop.permute.xlu0 %2161 }
 0x256   : > { %v2165_v28 = vsel %vm2158_vm11, %v2162_v35, %v2164_v23  ;;  %v2166_v6 = vsel %vm2158_vm11, %v2164_v23, %v2162_v35  ;;  %v2202_v59 = vpop.permute.xlu1 %2201  ;;  %v2306_v35 = vstv %s5013_s27 }
 0x257   : > { %v2150_v45 = vrot.slane %v2143_v21, %v3382_v34  ;;  %v2175_v39 = vmul.f32 %v2174_v14, %v2165_v28  ;;  %v2176_v58 = vmul.f32 %v2174_v14, %v2166_v6  ;;  %v2309_v6 = vstv %s5018_s10 }
 0x259   : > { %v2152_v18 = vmul.f32 %v2150_v45, %v2125_v49  ;;  %v2177_v38 = vadd.f32 %v2175_v39, %v2172_v20  ;;  %v2178_v12 = vadd.f32 %v2176_v58, %v2173_v9  ;;  %v2200_v37 = vpop.permute.xlu0 %2199  ;;  %v2260_v39 = vld [vmem:[#allocation8 + $0x52] ss:$8 sm:$0x3] }
 0x25a   : > { %v2204_v19 = vsel %vm2203_vm12, %v2200_v37, %v2202_v59  ;;  %v2205_v5 = vsel %vm2203_vm12, %v2202_v59, %v2200_v37  ;;  %v2209_v62 = vpop.permute.xlu1 %2208 }
 0x25b   : > { %v4988_v4 = vadd.f32 %v2152_v18, %v4912_v24  ;;  %v2181_v3 = vcombine.low %v2177_v38, %v2178_v12  ;;  %v2217_v24 = vmul.f32 %v2216_v40, %v2204_v19  ;;  %v2218_v7 = vmul.f32 %v2216_v40, %v2205_v5 }
 0x25d   : > { %v2188_v25 = vrot.slane %v2181_v3, %v3382_v34  ;;  %v2207_v26 = vpop.permute.xlu0 %2206 }
 0x25e   : > { %v2210_v44 = vsel %vm2203_vm12, %v2207_v26, %v2209_v62  ;;  %v2211_v30 = vsel %vm2203_vm12, %v2209_v62, %v2207_v26  ;;  %v2247_v31 = vpop.permute.xlu1 %2246  ;;  %v2351_v26 = vstv %s5033_s19 }
 0x25f   : > { %v2195_v17 = vrot.slane %v2188_v25, %v3382_v34  ;;  %v2220_v16 = vmul.f32 %v2219_v36, %v2210_v44  ;;  %v2221_v53 = vmul.f32 %v2219_v36, %v2211_v30  ;;  %v2354_v30 = vstv %s5038_s26 }
 0x261   : > { %v2197_v27 = vmul.f32 %v2195_v17, %v2170_v0  ;;  %v2222_v29 = vadd.f32 %v2220_v16, %v2217_v24  ;;  %v2223_v1 = vadd.f32 %v2221_v53, %v2218_v7  ;;  %v2245_v52 = vpop.permute.xlu0 %2244  ;;  %v2305_v16 = vld [vmem:[#allocation8 + $0x53] ss:$8 sm:$0x3] }
 0x262   : > { %v2249_v11 = vsel %vm2248_vm13, %v2245_v52, %v2247_v31  ;;  %v2250_v48 = vsel %vm2248_vm13, %v2247_v31, %v2245_v52  ;;  %v2254_v63 = vpop.permute.xlu1 %2253 }
 0x263   : > { %v5008_v13 = vadd.f32 %v2197_v27, %v4932_v10  ;;  %v2226_v56 = vcombine.low %v2222_v29, %v2223_v1  ;;  %v2262_v10 = vmul.f32 %v2261_v41, %v2249_v11  ;;  %v2263_v55 = vmul.f32 %v2261_v41, %v2250_v48 }
 0x265   : > { %v2233_v51 = vrot.slane %v2226_v56, %v3382_v34  ;;  %v2252_v42 = vpop.permute.xlu0 %2251 }
 0x266   : > { %v2255_v50 = vsel %vm2248_vm13, %v2252_v42, %v2254_v63  ;;  %v2256_v22 = vsel %vm2248_vm13, %v2254_v63, %v2252_v42  ;;  %v2292_v61 = vpop.permute.xlu1 %2291  ;;  %v2396_v42 = vstv %s5053_s17 }
 0x267   : > { %v2240_v33 = vrot.slane %v2233_v51, %v3382_v34  ;;  %v2265_v2 = vmul.f32 %v2264_v32, %v2255_v50  ;;  %v2266_v47 = vmul.f32 %v2264_v32, %v2256_v22  ;;  %v2399_v22 = vstv %s5058_s16 }
 0x269   : > { %v2242_v46 = vmul.f32 %v2240_v33, %v2215_v60  ;;  %v2267_v54 = vadd.f32 %v2265_v2, %v2262_v10  ;;  %v2268_v57 = vadd.f32 %v2266_v47, %v2263_v55  ;;  %v2290_v23 = vpop.permute.xlu0 %2289  ;;  %v2350_v2 = vld [vmem:[#allocation8 + $0x54] ss:$8 sm:$0x3] }
 0x26a   : > { %v2294_v49 = vsel %vm2293_vm14, %v2290_v23, %v2292_v61  ;;  %v2295_v20 = vsel %vm2293_vm14, %v2292_v61, %v2290_v23  ;;  %v2299_v28 = vpop.permute.xlu1 %2298 }
 0x26b   : > { %v5028_v14 = vadd.f32 %v2242_v46, %v4952_v8  ;;  %v2271_v21 = vcombine.low %v2267_v54, %v2268_v57  ;;  %v2307_v8 = vmul.f32 %v2306_v35, %v2294_v49  ;;  %v2308_v38 = vmul.f32 %v2306_v35, %v2295_v20 }
 0x26d   : > { %v2278_v45 = vrot.slane %v2271_v21, %v3382_v34  ;;  %v2297_v9 = vpop.permute.xlu0 %2296 }
 0x26e   : > { %v2300_v58 = vsel %vm2293_vm14, %v2297_v9, %v2299_v28  ;;  %v2301_v59 = vsel %vm2293_vm14, %v2299_v28, %v2297_v9  ;;  %v2337_v3 = vpop.permute.xlu1 %2336  ;;  %v2441_v9 = vstv %s5073_s9 }
 0x26f   : > { %v2285_v18 = vrot.slane %v2278_v45, %v3382_v34  ;;  %v2310_v12 = vmul.f32 %v2309_v6, %v2300_v58  ;;  %v2311_v37 = vmul.f32 %v2309_v6, %v2301_v59  ;;  %v2444_v59 = vstv %s5078_s18 }
 0x271   : > { %v2287_v40 = vmul.f32 %v2285_v18, %v2260_v39  ;;  %v2312_v19 = vadd.f32 %v2310_v12, %v2307_v8  ;;  %v2313_v5 = vadd.f32 %v2311_v37, %v2308_v38  ;;  %v2335_v62 = vpop.permute.xlu0 %2334  ;;  %v2395_v12 = vld [vmem:[#allocation8 + $0x55] ss:$8 sm:$0x3] }
 0x272   : > { %v2339_v0 = vsel %vm2338_vm15, %v2335_v62, %v2337_v3  ;;  %v2340_v24 = vsel %vm2338_vm15, %v2337_v3, %v2335_v62  ;;  %v2344_v44 = vpop.permute.xlu1 %2343 }
 0x273   : > { %v5048_v36 = vadd.f32 %v2287_v40, %v4972_v15  ;;  %v2316_v25 = vcombine.low %v2312_v19, %v2313_v5  ;;  %v2352_v15 = vmul.f32 %v2351_v26, %v2339_v0  ;;  %v2353_v29 = vmul.f32 %v2351_v26, %v2340_v24 }
 0x275   : > { %v2323_v17 = vrot.slane %v2316_v25, %v3382_v34  ;;  %v2342_v7 = vpop.permute.xlu0 %2341 }
 0x276   : > { %v2345_v53 = vsel %vm2338_vm15, %v2342_v7, %v2344_v44  ;;  %v2346_v31 = vsel %vm2338_vm15, %v2344_v44, %v2342_v7  ;;  %v2382_v56 = vpop.permute.xlu1 %2381  ;;  %v2486_v7 = vstv %s5093_s29 }
 0x277   : > { %v2330_v27 = vrot.slane %v2323_v17, %v3382_v34  ;;  %v2355_v1 = vmul.f32 %v2354_v30, %v2345_v53  ;;  %v2356_v52 = vmul.f32 %v2354_v30, %v2346_v31  ;;  %v2489_v31 = vstv %s5098_s28 }
 0x279   : > { %v2332_v41 = vmul.f32 %v2330_v27, %v2305_v16  ;;  %v2357_v11 = vadd.f32 %v2355_v1, %v2352_v15  ;;  %v2358_v48 = vadd.f32 %v2356_v52, %v2353_v29  ;;  %v2380_v63 = vpop.permute.xlu0 %2379  ;;  %v2440_v1 = vld [vmem:[#allocation8 + $0x56] ss:$8 sm:$0x3] }
 0x27a   : > { %v2384_v60 = vsel %vm2383_vm0, %v2380_v63, %v2382_v56  ;;  %v2385_v10 = vsel %vm2383_vm0, %v2382_v56, %v2380_v63  ;;  %v2389_v50 = vpop.permute.xlu1 %2388 }
 0x27b   : > { %v5068_v32 = vadd.f32 %v2332_v41, %v4988_v4  ;;  %v2361_v51 = vcombine.low %v2357_v11, %v2358_v48  ;;  %v2397_v4 = vmul.f32 %v2396_v42, %v2384_v60  ;;  %v2398_v54 = vmul.f32 %v2396_v42, %v2385_v10 }
 0x27d   : > { %v2368_v33 = vrot.slane %v2361_v51, %v3382_v34  ;;  %v2387_v55 = vpop.permute.xlu0 %2386 }
 0x27e   : > { %v2390_v47 = vsel %vm2383_vm0, %v2387_v55, %v2389_v50  ;;  %v2391_v61 = vsel %vm2383_vm0, %v2389_v50, %v2387_v55  ;;  %v2427_v21 = vpop.permute.xlu1 %2426  ;;  %v2531_v55 = vstv %s5111_s2 }
 0x27f   : > { %v2375_v46 = vrot.slane %v2368_v33, %v3382_v34  ;;  %v2400_v57 = vmul.f32 %v2399_v22, %v2390_v47  ;;  %v2401_v23 = vmul.f32 %v2399_v22, %v2391_v61  ;;  %v2534_v61 = vstv %s5116_s1 }
 0x281   : > { %v2377_v35 = vmul.f32 %v2375_v46, %v2350_v2  ;;  %v2402_v49 = vadd.f32 %v2400_v57, %v2397_v4  ;;  %v2403_v20 = vadd.f32 %v2401_v23, %v2398_v54  ;;  %v2425_v28 = vpop.permute.xlu0 %2424  ;;  %v2485_v57 = vld [vmem:[#allocation8 + $0x57] ss:$8 sm:$0x3] }
 0x282   : > { %v2429_v39 = vsel %vm2428_vm2, %v2425_v28, %v2427_v21  ;;  %v2430_v8 = vsel %vm2428_vm2, %v2427_v21, %v2425_v28  ;;  %v2434_v58 = vpop.permute.xlu1 %2433 }
 0x283   : > { %v5088_v6 = vadd.f32 %v2377_v35, %v5008_v13  ;;  %v2406_v45 = vcombine.low %v2402_v49, %v2403_v20  ;;  %v2442_v13 = vmul.f32 %v2441_v9, %v2429_v39  ;;  %v2443_v19 = vmul.f32 %v2441_v9, %v2430_v8 }
 0x285   : > { %v2413_v18 = vrot.slane %v2406_v45, %v3382_v34  ;;  %v2432_v38 = vpop.permute.xlu0 %2431 }
 0x286   : > { %v2435_v37 = vsel %vm2428_vm2, %v2432_v38, %v2434_v58  ;;  %v2436_v3 = vsel %vm2428_vm2, %v2434_v58, %v2432_v38  ;;  %v2472_v25 = vpop.permute.xlu1 %2471  ;;  %v2530_v38 = vld [vmem:[#allocation8 + $0x60] ss:$8 sm:$0x3] }
 0x287   : > { %v2420_v40 = vrot.slane %v2413_v18, %v3382_v34  ;;  %v2445_v5 = vmul.f32 %v2444_v59, %v2435_v37  ;;  %v2446_v62 = vmul.f32 %v2444_v59, %v2436_v3 }
 0x289   : > { %v2422_v26 = vmul.f32 %v2420_v40, %v2395_v12  ;;  %v2447_v0 = vadd.f32 %v2445_v5, %v2442_v13  ;;  %v2448_v24 = vadd.f32 %v2446_v62, %v2443_v19  ;;  %v2470_v44 = vpop.permute.xlu0 %2469 }
 0x28a   : > { %v2474_v16 = vsel %vm2473_vm3, %v2470_v44, %v2472_v25  ;;  %v2475_v15 = vsel %vm2473_vm3, %v2472_v25, %v2470_v44  ;;  %v2479_v53 = vpop.permute.xlu1 %2478 }
 0x28b   : > { %v2423_v30 = vadd.f32 %v2422_v26, %v5028_v14  ;;  %v2451_v17 = vcombine.low %v2447_v0, %v2448_v24  ;;  %v2487_v14 = vmul.f32 %v2486_v7, %v2474_v16  ;;  %v2488_v11 = vmul.f32 %v2486_v7, %v2475_v15 }
 0x28d   : > { %v2458_v27 = vrot.slane %v2451_v17, %v3382_v34  ;;  %v2477_v29 = vpop.permute.xlu0 %2476 }
 0x28e   : > { %v2480_v52 = vsel %vm2473_vm3, %v2477_v29, %v2479_v53  ;;  %v2481_v56 = vsel %vm2473_vm3, %v2479_v53, %v2477_v29  ;;  %v2517_v51 = vpop.permute.xlu1 %2516 }
 0x28f   : > { %v2465_v41 = vrot.slane %v2458_v27, %v3382_v34  ;;  %v2490_v48 = vmul.f32 %v2489_v31, %v2480_v52  ;;  %v2491_v63 = vmul.f32 %v2489_v31, %v2481_v56 }
 0x291   : > { %v2467_v42 = vmul.f32 %v2465_v41, %v2440_v1  ;;  %v2492_v60 = vadd.f32 %v2490_v48, %v2487_v14  ;;  %v2493_v10 = vadd.f32 %v2491_v63, %v2488_v11  ;;  %v2515_v50 = vpop.permute.xlu0 %2514 }
 0x292   : > { %v2519_v2 = vsel %vm2518_vm4, %v2515_v50, %v2517_v51  ;;  %v2520_v4 = vsel %vm2518_vm4, %v2517_v51, %v2515_v50  ;;  %v2524_v47 = vpop.permute.xlu1 %2523 }
 0x293   : > { %v2468_v22 = vadd.f32 %v2467_v42, %v5048_v36  ;;  %v2496_v33 = vcombine.low %v2492_v60, %v2493_v10  ;;  %v2532_v23 = vmul.f32 %v2531_v55, %v2519_v2  ;;  %v2533_v49 = vmul.f32 %v2531_v55, %v2520_v4 }
 0x295   : > { %v2503_v46 = vrot.slane %v2496_v33, %v3382_v34  ;;  %v2522_v54 = vpop.permute.xlu0 %2521 }
 0x296   : > { %v2525_v21 = vsel %vm2518_vm4, %v2522_v54, %v2524_v47  ;;  %v2526_v36 = vsel %vm2518_vm4, %v2524_v47, %v2522_v54 }
 0x297   : > { %v2510_v35 = vrot.slane %v2503_v46, %v3382_v34  ;;  %v2535_v20 = vmul.f32 %v2534_v61, %v2525_v21  ;;  %v2536_v28 = vmul.f32 %v2534_v61, %v2526_v36 }
 0x299   : > { %v2512_v45 = vmul.f32 %v2510_v35, %v2485_v57  ;;  %v2537_v9 = vadd.f32 %v2535_v20, %v2532_v23  ;;  %v2538_v39 = vadd.f32 %v2536_v28, %v2533_v49 }
 0x29b   : > { %v2513_v8 = vadd.f32 %v2512_v45, %v5068_v32  ;;  %v2541_v58 = vcombine.low %v2537_v9, %v2538_v39 }
 0x29d   : > { %v2560_v59 = vadd.f32 %v2513_v8, %v2468_v22  ;;  %v2548_v18 = vrot.slane %v2541_v58, %v3382_v34 }
 0x29f   : > { %v2555_v43 = vrot.slane %v2548_v18, %v3382_v34 }
 0x2a1   : > { %v2557_v12 = vmul.f32 %v2555_v43, %v2530_v38 }
 0x2a3   : > { %v2558_v13 = vadd.f32 %v2557_v12, %v5088_v6 }
 0x2a5   : > { %v2559_v37 = vadd.f32 %v2558_v13, %v2423_v30 }
 0x2a7   : > { %v2561_v3 = vadd.f32 %v2560_v59, %v2559_v37 }
 0x2a9   : > { %v2804_v40 = vmul.f32 -1.442695, %v2561_v3 }
 0x2ab   : > { %2947 = vpow2.f32 %v2804_v40 }
 0x2b5   : > { %v2948_v19 = vpop.eup %2947 }
 0x2b6   : > { %v2565_v5 = vadd.f32 1.0, %v2948_v19 }
 0x2b8   : > { %2949 = vrcp.f32 %v2565_v5 }
 0x2c2   : > { %v2950_v34 = vpop.eup %2949 }
 0x2c3   : > { %2572 = vst.msk [vmem:[%s229_s13] sm:$0x3] %vm3386_vm1, %v2950_v34 }
 0x2c4   : > { %3036 = shalt.err (!%p3033_p11)
}
 0x2c5   : > { %s3037_s8 = scalar_lea.hbm %s5147_s20, 32  ;;  %s3041_s27 = scalar_lea.hbm %s5411_s5, 64 }
 0x2c6   : > { %p3038_p7 = scmp.ne.s32.totalorder %s5147_s20, %s3037_s8  ;;  %p3042_p4 = scmp.lt.u32.totalorder %s5147_s20, %s5411_s5 }
 0x2c7   : > { %p3043_p5 = scmp.lt.u32.totalorder %s3041_s27, %s3037_s8  ;;  %p3045_p0 = scmp.lt.u32.totalorder %s3037_s8, %s5147_s20 }
 0x2c8   : > { %p3039_p12 = pnand %p3038_p7, %p5413_p2 }
 0x2c9   : > { %p3044_p8 = por %p3043_p5, %p3042_p4 }
 0x2ca   : > { %p3040_p1 = pneg %p3039_p12 }
 0x2cb   : > { %p3046_p10 = por %p3045_p0, %p3044_p8 }
 0x2cd   : > { %p3047_p6 = pnand %p3046_p10, %p3040_p1 }
 0x2cf   : > { %3050 = shalt.err (!%p3047_p6)
}
 0x2d0   : > { %2822 = dma.vmem_to_hbm [thread:$0]  (%p5413_p2), %s5149_s12, 32, %s5147_s20, %s2574_s6  }
 0x2d1 PF: > { %s5414_s26 = sld [smem:[#allocation16_spill]]  ;;  %s5415_s17 = sld [smem:[#allocation22_spill]] }
 0x2d2   : > { %s5416_s16 = sld [smem:[#allocation21_spill]] }
 0x2d7   : > { %s2600_s9 = sand.u32 1, %s5414_s26   ;;  %p5417_p9 = scmp.ne.s32.totalorder %s5415_s17, 0 }
 0x2d8   : > { %p5418_p13 = scmp.ge.s32.totalorder %s5416_s16, 2  ;;  %s2601_s18 = scalar_lea.sflag [#allocation6], %s2600_s9 }
 0x2da   : > { %p2836_p3 = pnand %p5418_p13, %p5417_p9 }
 0x2dc   : > { %3088 = dma.done.wait (!%p2836_p3), %s2601_s18, 32  }
 0x2dd   : > { %3090 = vsyncadd (!%p2836_p3), %s2601_s18, 4294967264  ;;  %s21_s17 = sadd.s32 1, %s5416_s16   ;;  %s5419_s12 = sld [smem:[#allocation17_spill]] }
 0x2de   : > { %p18_p11 = scmp.ge.s32.totalorder %s21_s17, 4   ;;  %s5420_s13 = sld [smem:[#allocation18_spill]] }
 0x2df   : > { %s5421_s14 = sld [smem:[#allocation25_spill]]  ;;  %s5422_s15 = sld [smem:[#allocation20_spill]] }
 0x2e0   : > { %s5423_s16 = sld [smem:[#allocation23_spill]]  ;;  %20 = sbr.rel (!%p18_p11) target bundleno = 13 (0xd), region = 147 }
 0x2e7   :  { %2606 = vsyncpa [#allocation5], 1 }
 0x2e8   :  { %2608 = vsyncpa [#allocation5 + $0x1], 1 }
 0x2e9   :  { %2609 = vsyncpa [#allocation10], 1 }
 0x2ea   :  { %2611 = vsyncpa [#allocation10 + $0x1], 1 }
 0x2eb   :  { %2612 = vsyncpa [#allocation6], 1 }
 0x2ec   :  { %2614 = vsyncpa [#allocation6 + $0x1], 1 }
 0x2ed   :  { %2615 = vsyncpa [#allocation7], 1 }
 0x2ee   :  { %2617 = vsyncpa [#allocation7 + $0x1], 1 }

</bundles_post_ra>
